<compile_context>
chip_gen: v6e
topology: v6e:2x2x1
jax: 0.10.0
libtpu: 0.0.40
codegen_flags: <defaults>
</compile_context>

<pallas_src>
import jax
import jax.numpy as jnp
from jax import lax
from jax.experimental import pallas as pl
from jax.experimental.pallas import tpu as pltpu


_NUM_CORES = 2                          # leading "parallel" grid axis (both TCs on v7x)
_TARGET_BLOCK_BYTES = 2 * 1024 * 1024   # per-input, per-pipeline-buffer block target (~2 MiB)
_MAX_BLOCK_ROWS = 1024
_VMEM_LIMIT_BYTES = 32 * 1024 * 1024    # explicit scoped-VMEM limit, safe on v5e/v6e/v7x


def _round_up(x, m):
    return (x + m - 1) // m * m


def _make_mse_kernel(*, rows, cols, block_rows, tiles_per_core, full_blocks,
                     needs_mask, inv_n):
    """Row-tiled sum((s - t)^2) * inv_n with one partial-sum output per core."""

    def kernel(s_ref, t_ref, out_ref, acc_ref):
        c = pl.program_id(0)   # core (parallel) axis
        i = pl.program_id(1)   # row-tile (reduction) axis

        @pl.when(i == 0)
        def _():
            acc_ref[...] = jnp.zeros_like(acc_ref)

        d = s_ref[...].astype(jnp.float32) - t_ref[...].astype(jnp.float32)
        sq = d * d
        gblk = c * tiles_per_core + i   # global (unclamped) row-block index

        if needs_mask:
            # Fully in-range blocks: no mask cost.
            @pl.when(gblk < full_blocks)
            def _():
                acc_ref[...] += jnp.sum(sq, axis=0, keepdims=True)

            # Ragged tail / fully out-of-range (padding) blocks: mask rows >= `rows`.
            @pl.when(gblk >= full_blocks)
            def _():
                row = lax.broadcasted_iota(jnp.int32, sq.shape, 0) + gblk * block_rows
                acc_ref[...] += jnp.sum(jnp.where(row < rows, sq, 0.0),
                                        axis=0, keepdims=True)
        else:
            acc_ref[...] += jnp.sum(sq, axis=0, keepdims=True)

        @pl.when(i == pl.num_programs(1) - 1)
        def _():
            # per-core partial, already scaled by 1/N
            out_ref[...] = (jnp.sum(acc_ref[...]) * inv_n) + jnp.zeros_like(out_ref)

    return kernel


def complex_compressed_loss(separated, target):
    """MSE (mean reduction) between two equal-shaped arrays, hot path in Pallas."""
    assert separated.shape == target.shape, "separated/target shape mismatch"
    n_elems = separated.size
    shape = separated.shape

    # Lane-dense 2D view (contiguous reshape — no copy, no pad).
    if separated.ndim >= 3:
        cols = shape[-1] * shape[-2]           # e.g. 298*2 = 596 for the STFT layout
    elif separated.ndim == 2:
        cols = shape[-1]
    else:
        cols = n_elems
    rows = max(1, n_elems // cols)
    s2 = separated.reshape(rows, cols)
    t2 = target.reshape(rows, cols)

    itemsize = jnp.dtype(separated.dtype).itemsize
    sub = max(8, 32 // itemsize)               # sublane multiple for the native dtype

    # Modest, always-pipelined tiles, split roughly evenly across the two cores.
    block_rows = (_TARGET_BLOCK_BYTES // (cols * itemsize)) // sub * sub
    block_rows = max(sub, min(block_rows, _MAX_BLOCK_ROWS,
                              _round_up(pl.cdiv(rows, _NUM_CORES), sub)))

    total_blocks = pl.cdiv(rows, block_rows)
    tiles_per_core = pl.cdiv(total_blocks, _NUM_CORES)
    padded_blocks = tiles_per_core * _NUM_CORES
    full_blocks = rows // block_rows           # blocks entirely in range (never masked)
    needs_mask = full_blocks != padded_blocks
    last_block = total_blocks - 1

    def in_map(c, i):
        # Clamp so the DMA never starts past the end of the array; clamped (duplicate)
        # and ragged blocks are zeroed in-kernel via the row mask.
        return (jnp.minimum(c * tiles_per_core + i, last_block), 0)

    kernel = _make_mse_kernel(
        rows=rows, cols=cols, block_rows=block_rows,
        tiles_per_core=tiles_per_core, full_blocks=full_blocks,
        needs_mask=needs_mask, inv_n=1.0 / float(n_elems))

    partials = pl.pallas_call(
        kernel,
        out_shape=jax.ShapeDtypeStruct((_NUM_CORES, 1, 1), jnp.float32),
        grid_spec=pltpu.PrefetchScalarGridSpec(
            num_scalar_prefetch=0,
            grid=(_NUM_CORES, tiles_per_core),
            in_specs=[
                pl.BlockSpec((block_rows, cols), in_map),
                pl.BlockSpec((block_rows, cols), in_map),
            ],
            out_specs=pl.BlockSpec((1, 1, 1), lambda c, i: (c, 0, 0)),
            scratch_shapes=[pltpu.VMEM((1, cols), jnp.float32)],
        ),
        compiler_params=pltpu.CompilerParams(
            dimension_semantics=("parallel", "arbitrary"),
            vmem_limit_bytes=_VMEM_LIMIT_BYTES),
    )(s2, t2)

    # Sum the per-core partials (each already scaled by 1/N).
    return jnp.sum(partials)


if __name__ == "__main__":
    key = jax.random.PRNGKey(0)
    k1, k2 = jax.random.split(key)

    # Shapes implied by the module's forward: [batch, 257, 298, 2]
    batch = 2
    shape = (batch, 257, 298, 2)
    separated = jax.random.normal(k1, shape, dtype=jnp.float32)
    target = jax.random.normal(k2, shape, dtype=jnp.float32)

    loss = complex_compressed_loss(separated, target)
    loss = jax.block_until_ready(loss)

    # sanity check against plain-JAX reference (same semantics as F.mse_loss, mean reduction)
    ref = jnp.mean((separated - target) ** 2)
    assert jnp.allclose(loss, ref, rtol=1e-5, atol=1e-6), (loss, ref)

    print("KERNEL_OK")
</pallas_src>

<mosaic_0001>
module attributes {stable_mosaic.version = 11 : i64} {
  func.func @kernel(%arg0: i32, %arg1: i32, %arg2: memref<264x596xf32, #tpu.memory_space<vmem>>, %arg3: memref<264x596xf32, #tpu.memory_space<vmem>>, %arg4: memref<1x1x1xf32, #tpu.memory_space<vmem>>, %arg5: memref<1x596xf32, #tpu.memory_space<vmem>>) attributes {dimension_semantics = [#tpu.dimension_semantics<parallel>, #tpu.dimension_semantics<arbitrary>], iteration_bounds = array<i64: 2, 1>, scalar_prefetch = 0 : i64, scratch_operands = 1 : i64, tpu.core_type = #tpu.core_type<tc>, window_params = [{transform_indices = @transform_0, window_bounds = array<i64: 264, 596>}, {transform_indices = @transform_1, window_bounds = array<i64: 264, 596>}, {transform_indices = @transform_2, window_bounds = array<i64: 1, 1, 1>}]} {
    %c0_i32 = arith.constant 0 : i32
    %0 = arith.cmpi eq, %arg1, %c0_i32 : i32
    %1 = arith.extui %0 : i1 to i32
    %c0_i32_0 = arith.constant 0 : i32
    %2 = arith.cmpi ne, %1, %c0_i32_0 : i32
    scf.if %2 {
      %cst = arith.constant 0.000000e+00 : f32
      %18 = vector.broadcast %cst : f32 to vector<1x596xf32>
      %c0_10 = arith.constant 0 : index
      %c0_11 = arith.constant 0 : index
      %19 = vector.load %arg5[%c0_10, %c0_11] : memref<1x596xf32, #tpu.memory_space<vmem>>, vector<1x596xf32>
      tpu.vector_store %arg5[%c0_10, %c0_11], %18 {strides = array<i32>} : memref<1x596xf32, #tpu.memory_space<vmem>>, vector<1x596xf32>,
    } else {
    }
    %c0 = arith.constant 0 : index
    %c0_1 = arith.constant 0 : index
    %3 = vector.load %arg2[%c0, %c0_1] : memref<264x596xf32, #tpu.memory_space<vmem>>, vector<264x596xf32>
    %c0_2 = arith.constant 0 : index
    %c0_3 = arith.constant 0 : index
    %4 = vector.load %arg3[%c0_2, %c0_3] : memref<264x596xf32, #tpu.memory_space<vmem>>, vector<264x596xf32>
    %5 = arith.subf %3, %4 : vector<264x596xf32>
    %6 = arith.mulf %5, %5 : vector<264x596xf32>
    %c1_i32 = arith.constant 1 : i32
    %7 = arith.muli %arg0, %c1_i32 : i32
    %8 = arith.addi %7, %arg1 : i32
    %c1_i32_4 = arith.constant 1 : i32
    %9 = arith.cmpi slt, %8, %c1_i32_4 : i32
    %10 = arith.extui %9 : i1 to i32
    %c0_i32_5 = arith.constant 0 : i32
    %11 = arith.cmpi ne, %10, %c0_i32_5 : i32
    scf.if %11 {
      %c0_10 = arith.constant 0 : index
      %c0_11 = arith.constant 0 : index
      %18 = vector.load %arg5[%c0_10, %c0_11] : memref<1x596xf32, #tpu.memory_space<vmem>>, vector<1x596xf32>
      %cst = arith.constant dense<0.000000e+00> : vector<596xf32>
      %19 = vector.multi_reduction <add>, %6, %cst [0] : vector<264x596xf32> to vector<596xf32>
      %20 = vector.shape_cast %19 : vector<596xf32> to vector<1x596xf32>
      %21 = arith.addf %18, %20 : vector<1x596xf32>
      %c0_12 = arith.constant 0 : index
      %c0_13 = arith.constant 0 : index
      %22 = vector.load %arg5[%c0_12, %c0_13] : memref<1x596xf32, #tpu.memory_space<vmem>>, vector<1x596xf32>
      tpu.vector_store %arg5[%c0_12, %c0_13], %21 {strides = array<i32>} : memref<1x596xf32, #tpu.memory_space<vmem>>, vector<1x596xf32>,
    } else {
    }
    %c1_i32_6 = arith.constant 1 : i32
    %12 = arith.cmpi sge, %8, %c1_i32_6 : i32
    %13 = arith.extui %12 : i1 to i32
    %c0_i32_7 = arith.constant 0 : i32
    %14 = arith.cmpi ne, %13, %c0_i32_7 : i32
    scf.if %14 {
      %18 = tpu.iota {dimensions = array<i32: 0>} : vector<264x596xi32>
      %c264_i32 = arith.constant 264 : i32
      %19 = arith.muli %8, %c264_i32 : i32
      %20 = vector.broadcast %19 : i32 to vector<264x596xi32>
      %21 = arith.addi %18, %20 : vector<264x596xi32>
      %c0_10 = arith.constant 0 : index
      %c0_11 = arith.constant 0 : index
      %22 = vector.load %arg5[%c0_10, %c0_11] : memref<1x596xf32, #tpu.memory_space<vmem>>, vector<1x596xf32>
      %c514_i32 = arith.constant 514 : i32
      %23 = vector.broadcast %c514_i32 : i32 to vector<264x596xi32>
      %24 = arith.cmpi slt, %21, %23 : vector<264x596xi32>
      %cst = arith.constant 0.000000e+00 : f32
      %25 = vector.broadcast %cst : f32 to vector<264x596xf32>
      %26 = arith.select %24, %6, %25 : vector<264x596xi1>, vector<264x596xf32>
      %cst_12 = arith.constant dense<0.000000e+00> : vector<596xf32>
      %27 = vector.multi_reduction <add>, %26, %cst_12 [0] : vector<264x596xf32> to vector<596xf32>
      %28 = vector.shape_cast %27 : vector<596xf32> to vector<1x596xf32>
      %29 = arith.addf %22, %28 : vector<1x596xf32>
      %c0_13 = arith.constant 0 : index
      %c0_14 = arith.constant 0 : index
      %30 = vector.load %arg5[%c0_13, %c0_14] : memref<1x596xf32, #tpu.memory_space<vmem>>, vector<1x596xf32>
      tpu.vector_store %arg5[%c0_13, %c0_14], %29 {strides = array<i32>} : memref<1x596xf32, #tpu.memory_space<vmem>>, vector<1x596xf32>,
    } else {
    }
    %c0_i32_8 = arith.constant 0 : i32
    %15 = arith.cmpi eq, %arg1, %c0_i32_8 : i32
    %16 = arith.extui %15 : i1 to i32
    %c0_i32_9 = arith.constant 0 : i32
    %17 = arith.cmpi ne, %16, %c0_i32_9 : i32
    scf.if %17 {
      %c0_10 = arith.constant 0 : index
      %c0_11 = arith.constant 0 : index
      %18 = vector.load %arg5[%c0_10, %c0_11] : memref<1x596xf32, #tpu.memory_space<vmem>>, vector<1x596xf32>
      %19 = vector.shape_cast %18 : vector<1x596xf32> to vector<1x1x596xf32>
      %cst = arith.constant dense<0.000000e+00> : vector<1xf32>
      %20 = vector.multi_reduction <add>, %19, %cst [1, 2] : vector<1x1x596xf32> to vector<1xf32>
      %21 = vector.shape_cast %20 : vector<1xf32> to vector<1x1x1xf32>
      %22 = vector.extract %21[0, 0, 0] : f32 from vector<1x1x1xf32>
      %cst_12 = arith.constant 3.26430427E-6 : f32
      %23 = arith.mulf %22, %cst_12 : f32
      %cst_13 = arith.constant 0.000000e+00 : f32
      %24 = vector.broadcast %cst_13 : f32 to vector<1x1x1xf32>
      %25 = vector.broadcast %23 : f32 to vector<1x1x1xf32>
      %26 = arith.addf %25, %24 : vector<1x1x1xf32>
      %c0_14 = arith.constant 0 : index
      %c0_15 = arith.constant 0 : index
      %c0_16 = arith.constant 0 : index
      %27 = vector.load %arg4[%c0_14, %c0_15, %c0_16] : memref<1x1x1xf32, #tpu.memory_space<vmem>>, vector<1x1x1xf32>
      tpu.vector_store %arg4[%c0_14, %c0_15, %c0_16], %26 {strides = array<i32>} : memref<1x1x1xf32, #tpu.memory_space<vmem>>, vector<1x1x1xf32>,
    } else {
    }
    return
  }
  func.func @transform_0(%arg0: i32, %arg1: i32) -> (i32, i32) {
    %c1_i32 = arith.constant 1 : i32
    %0 = arith.muli %arg0, %c1_i32 : i32
    %1 = arith.addi %0, %arg1 : i32
    %c1_i32_0 = arith.constant 1 : i32
    %2 = arith.minsi %1, %c1_i32_0 : i32
    %c0_i32 = arith.constant 0 : i32
    %c0_i32_1 = arith.constant 0 : i32
    return %2, %c0_i32 : i32, i32
  }
  func.func @transform_1(%arg0: i32, %arg1: i32) -> (i32, i32) {
    %c1_i32 = arith.constant 1 : i32
    %0 = arith.muli %arg0, %c1_i32 : i32
    %1 = arith.addi %0, %arg1 : i32
    %c1_i32_0 = arith.constant 1 : i32
    %2 = arith.minsi %1, %c1_i32_0 : i32
    %c0_i32 = arith.constant 0 : i32
    %c0_i32_1 = arith.constant 0 : i32
    return %2, %c0_i32 : i32, i32
  }
  func.func @transform_2(%arg0: i32, %arg1: i32) -> (i32, i32, i32) {
    %c0_i32 = arith.constant 0 : i32
    %c0_i32_0 = arith.constant 0 : i32
    %c0_i32_1 = arith.constant 0 : i32
    return %arg0, %c0_i32, %c0_i32_0 : i32, i32, i32
  }
}

</mosaic_0001>

<bundles_post_ra>
// kernel: tpu_custom_call.1
= control target key start
LH: loop header
LB: loop body
LE: loop exit
PB: predicated region body
PF: predicated region fallthrough
CT: control target
= control target key end

     0   :  { %7 = vsyncpa [#allocation4], 0  ;;  %s4883_s0 = inlined_call_operand.hbm [shape: f32[514,596], index: 0, kind: input, shape index: {}]   ;;  %s4884_s1 = inlined_call_operand.hbm [shape: f32[514,596], index: 1, kind: input, shape index: {}]   ;;  %s4885_s2 = inlined_call_operand.vmem [shape: f32[2,1,1], index: 2, kind: output, shape index: {}]  }
   0x1   :  { %9 = vsyncpa [#allocation4 + $0x1], 0 }
   0x2   :  { %10 = vsyncpa [#allocation6], 0 }
   0x3   :  { %12 = vsyncpa [#allocation6 + $0x1], 0  ;;  %s2123_s9 = smov 0   ;;  %s2125_s10 = smov 0  }
   0x4   :  { %s2127_s11 = smov 0   ;;  %s2129_s12 = smov 0  }
   0x5   :  { %s2131_s13 = smov 0   ;;  %s2133_s14 = smov 0  }
   0x6 LB: > { %s30_s15 = sadd.s32 1, %s2093_s13  ;;  %p35_p1 = scmp.lt.s32.totalorder %s2093_s13, 1  ;;  %s2097_s14 = sphi %s2133_s14, %s18_s14   ;;  %s2093_s13 = sphi %s2131_s13, %s5633_s13   ;;  %s2089_s12 = sphi %s2129_s12, %s5632_s12   ;;  %s2085_s11 = sphi %s2127_s11, %s5631_s11   ;;  %s2081_s10 = sphi %s2125_s10, %s5630_s10   ;;  %s2077_s9 = sphi %s2123_s9, %s5629_s9  }
   0x7   : > { %p32_p0 = scmp.ge.s32.totalorder %s30_s15, 2  ;;  %s1906_s16 = sadd.s32 4294967295, %s2097_s14  }
   0x8   : > { %p50_p2 = scmp.ne.s32.totalorder %s2085_s11, %s2081_s10  ;;  %p51_p4 = scmp.eq.s32.totalorder %s2097_s14, 0 }
   0x9   : > { %s5635_s15 = smov (%p32_p0, %s30_s15), 0  ;;  %p56_p5 = scmp.ne.s32.totalorder %s2081_s10, %s2077_s9 }
   0xa   : > { %s2159_s17 = scalar_select %p35_p1, %s2093_s13, 1 }
   0xb   : > { %p38_p3 = scmp.lt.s32.totalorder %s5635_s15, 1  ;;  %p57_p6 = scmp.eq.s32.totalorder %s1906_s16, 0 }
   0xc   : > { %p2165_p7 = por %p51_p4, %p50_p2  ;;  %s43_s22 = sadd.s32 1, %s2085_s11 }
   0xd   : > { %s39_s18 = scalar_select %p38_p3, %s5635_s15, 1 }
   0xe   : > { %p2169_p8 = por %p57_p6, %p56_p5  ;;  %p1909_p10 = scmp.ge.s32.totalorder %s2097_s14, 2 }
   0xf   : > { %s40_s21 = ssub.s32 %s2159_s17, %s39_s18 }
  0x10   : > { %p41_p9 = scmp.eq.s32.totalorder %s40_s21, 0  ;;  %134 = sbr.rel (%p1909_p10) target bundleno = 91 (0x5b), region = 16 }
  0x12   : > { %s2176_s23 = scalar_select %p41_p9, %s2085_s11, %s43_s22  }
  0x15   : > { %137 = sbr.rel (!%p2165_p7) target bundleno = 56 (0x38), region = 20  ;;  %s138_s24 = sand.u32 (%p2165_p7), 1, %s2085_s11  }
  0x16   : > { %s146_s25 = smul.u32 (%p2165_p7), 33, %s2159_s17  ;;  %s2186_s30 = scalar_lea.sflag (%p2165_p7), [#allocation4], %s138_s24 }
  0x17   : > { %s1925_s26 = smul.u32 (%p2165_p7), 1320, %s138_s24 }
  0x18   : > { %s147_s27 = ssub.s32 (%p2165_p7), 65, %s146_s25 }
  0x19   : > { %p148_p11 = scmp.lt.s32.totalorder (%p2165_p7), %s147_s27, 33  ;;  %s142_s3 = scalar_lea.vmem (%p2165_p7), [#allocation3], %s1925_s26 }
  0x1b   : > { %s5637_s27 = smov (!%p148_p11, %s147_s27), 33 }
  0x1c   : > { %s2183_s28 = smul.u32 640, %s5637_s27 }
  0x1e   : > { %s153_s29 = ssub.s32 21120, %s2183_s28 }
  0x1f   : > { %154 = vsyncadd %s2186_s30, %s153_s29  ;;  %p1912_p12 = scmp.ne.s32.totalorder %s2183_s28, 0  ;;  %s1934_s4 = smul.u32 21120, %s2159_s17 }
  0x20   : > { %s160_s5 = sshll.u32 %s142_s3, 4  ;;  %s1995_s21 = scalar_lea.hbm %s4883_s0, 41600  ;;  %s2196_s5 = int_to_ptr.vmem [resolvable:$true] %s160_s5 }
  0x21   : > { %s2194_s8 = scalar_lea.hbm %s4883_s0, %s1934_s4 }
  0x22   : > { %s1991_s9 = scalar_lea.hbm %s2194_s8, %s2183_s28 }
  0x23   : > { %p1992_p13 = scmp.ne.s32.totalorder %s2194_s8, %s1991_s9  ;;  %p1997_p2 = scmp.lt.s32.totalorder %s1995_s21, %s1991_s9 }
  0x25   : > { %p1993_p0 = pnand %p1992_p13, %p1912_p12 }
  0x27   : > { %p1994_p1 = pneg %p1993_p0 }
  0x29   : > { %p1999_p3 = pnand %p1997_p2, %p1994_p1 }
  0x2b   : > { %2002 = shalt.err (!%p1999_p3)
}
  0x2c   : > { %s2003_s22 = scalar_lea.vmem %s2196_s5, %s2183_s28  ;;  %s2099_s24 = smov [#allocation3]  }
  0x2d   : > { %p2004_p4 = scmp.ne.s32.totalorder %s2196_s5, %s2003_s22  ;;  %s2007_s25 = sshll.u32 %s2099_s24, 4  ;;  %s2008_s25 = int_to_ptr.vmem [resolvable:$false] %s2007_s25 }
  0x2e   : > { %s2009_s26 = scalar_lea.vmem %s2008_s25, 42240  ;;  %p2010_p9 = scmp.lt.s32.totalorder %s2196_s5, %s2008_s25 }
  0x2f   : > { %p2005_p5 = pnand %p2004_p4, %p1912_p12  ;;  %p2011_p10 = scmp.lt.s32.totalorder %s2009_s26, %s2003_s22 }
  0x31   : > { %p2006_p6 = pneg %p2005_p5  ;;  %p2012_p11 = por %p2011_p10, %p2010_p9 }
  0x33   : > { %p2013_p13 = pnand %p2012_p11, %p2006_p6 }
  0x35   : > { %2016 = shalt.err (!%p2013_p13)
}
  0x36   : > { %s2100_s27 = smov 640   ;;  %s2101_s29 = smov 40  }
  0x37   : > { %166 = dma.hbm_to_vmem [thread:$0]  (%p1912_p12), %s2194_s8, %s2183_s28, %s2196_s5, %s2186_s30, %s2100_s27, %s2100_s27, %s2101_s29  }
  0x38 PF: > { %169 = sbr.rel (!%p2165_p7) target bundleno = 91 (0x5b), region = 24  ;;  %s170_s3 = sand.u32 (%p2165_p7), 1, %s2085_s11  }
  0x39   : > { %s178_s4 = smul.u32 (%p2165_p7), 33, %s2159_s17  ;;  %s2225_s18 = scalar_lea.sflag (%p2165_p7), [#allocation6], %s170_s3 }
  0x3a   : > { %s1927_s6 = smul.u32 (%p2165_p7), 1320, %s170_s3 }
  0x3b   : > { %s179_s7 = ssub.s32 (%p2165_p7), 65, %s178_s4 }
  0x3c   : > { %p180_p0 = scmp.lt.s32.totalorder (%p2165_p7), %s179_s7, 33  ;;  %s174_s28 = scalar_lea.vmem (%p2165_p7), [#allocation5], %s1927_s6 }
  0x3e   : > { %s5639_s7 = smov (!%p180_p0, %s179_s7), 33 }
  0x3f   : > { %s2222_s9 = smul.u32 640, %s5639_s7 }
  0x41   : > { %s185_s16 = ssub.s32 21120, %s2222_s9 }
  0x42   : > { %186 = vsyncadd %s2225_s18, %s185_s16  ;;  %p1917_p7 = scmp.ne.s32.totalorder %s2222_s9, 0  ;;  %s1935_s19 = smul.u32 21120, %s2159_s17 }
  0x43   : > { %s192_s30 = sshll.u32 %s174_s28, 4  ;;  %s2021_s26 = scalar_lea.hbm %s4884_s1, 41600  ;;  %s2235_s30 = int_to_ptr.vmem [resolvable:$true] %s192_s30 }
  0x44   : > { %s2233_s21 = scalar_lea.hbm %s4884_s1, %s1935_s19 }
  0x45   : > { %s2017_s22 = scalar_lea.hbm %s2233_s21, %s2222_s9 }
  0x46   : > { %p2018_p12 = scmp.ne.s32.totalorder %s2233_s21, %s2017_s22  ;;  %p2023_p3 = scmp.lt.s32.totalorder %s2021_s26, %s2017_s22 }
  0x48   : > { %p2019_p1 = pnand %p2018_p12, %p1917_p7 }
  0x4a   : > { %p2020_p2 = pneg %p2019_p1 }
  0x4c   : > { %p2025_p4 = pnand %p2023_p3, %p2020_p2 }
  0x4e   : > { %2028 = shalt.err (!%p2025_p4)
}
  0x4f   : > { %s2029_s17 = scalar_lea.vmem %s2235_s30, %s2222_s9  ;;  %s2102_s27 = smov [#allocation5]  }
  0x50   : > { %p2030_p5 = scmp.ne.s32.totalorder %s2235_s30, %s2029_s17  ;;  %s2033_s29 = sshll.u32 %s2102_s27, 4  ;;  %s2034_s29 = int_to_ptr.vmem [resolvable:$false] %s2033_s29 }
  0x51   : > { %s2035_s3 = scalar_lea.vmem %s2034_s29, 42240  ;;  %p2036_p10 = scmp.lt.s32.totalorder %s2235_s30, %s2034_s29 }
  0x52   : > { %p2031_p6 = pnand %p2030_p5, %p1917_p7  ;;  %p2037_p11 = scmp.lt.s32.totalorder %s2035_s3, %s2029_s17 }
  0x54   : > { %p2032_p9 = pneg %p2031_p6  ;;  %p2038_p13 = por %p2037_p11, %p2036_p10 }
  0x56   : > { %p2039_p0 = pnand %p2038_p13, %p2032_p9 }
  0x58   : > { %2042 = shalt.err (!%p2039_p0)
}
  0x59   : > { %s2103_s4 = smov 640   ;;  %s2104_s6 = smov 40  }
  0x5a   : > { %198 = dma.hbm_to_vmem [thread:$0]  (%p1917_p7), %s2233_s21, %s2222_s9, %s2235_s30, %s2225_s18, %s2103_s4, %s2103_s4, %s2104_s6  }
  0x5b PF: > { %p1920_p12 = scmp.ge.s32.totalorder %s2097_s14, 1  ;;  %p200_p1 = scmp.lt.s32.totalorder %s2097_s14, 3 }
  0x5d   : > { %p201_p2 = pnand %p1920_p12, %p200_p1 }
  0x5f   : > { %204 = sbr.rel (%p201_p2) target bundleno = 761 (0x2f9), region = 28 }
  0x64   : > { %s206_s7 = sand.u32 1, %s2081_s10  }
  0x65   : > { %s1929_s16 = smul.u32 1320, %s206_s7  ;;  %s207_s28 = scalar_lea.sflag [#allocation4], %s206_s7 }
  0x67   : > { %s2260_s19 = scalar_lea.vmem [#allocation3], %s1929_s16 }
  0x68   : > { %2068 = dma.done.wait (%p2169_p8), %s207_s28, 21120  }
  0x69   : > { %2070 = vsyncadd (%p2169_p8), %s207_s28, 4294946176  ;;  %s216_s9 = scalar_lea.sflag [#allocation6], %s206_s7  ;;  %s2266_s18 = scalar_lea.vmem [#allocation5], %s1929_s16 }
  0x6a   : > { %2072 = dma.done.wait (%p2169_p8), %s216_s9, 21120  }
  0x6b   : > { %2074 = vsyncadd (%p2169_p8), %s216_s9, 4294946176  ;;  %p261_p7 = scmp.lt.s32.totalorder %s2089_s12, 1  ;;  %v4886_v0 = vlaneseq  ;;  %v4919_v1 = vmov 0  ;;  %v2105_v2 = vmov 0.0   ;;  %v273_v3 = vld [vmem:[%s2260_s19] sm:$0xff]  ;;  %v274_v4 = vld [vmem:[%s2260_s19 + $0x8] sm:$0xff] }
  0x6c   : > { %v275_v5 = vld [vmem:[%s2260_s19 + $0x10] sm:$0xff]  ;;  %v276_v6 = vld [vmem:[%s2260_s19 + $0x18] sm:$0xff]  ;;  %v277_v7 = vld [vmem:[%s2260_s19 + $0x20] sm:$0xff]  ;;  %p1921_p8 = scmp.ge.s32.totalorder %s2089_s12, 1 }
  0x6d   : > { %s2276_s30 = scalar_select %p261_p7, %s2089_s12, 1  ;;  %vm2279_vm0 = vcmp.lt.s32.totalorder %v4886_v0, 596  ;;  %v278_v8 = vld [vmem:[%s2260_s19 + $0x28] sm:$0xff]  ;;  %v279_v9 = vld [vmem:[%s2260_s19 + $0x30] sm:$0xff]  ;;  %v280_v10 = vld [vmem:[%s2260_s19 + $0x38] sm:$0xff] }
  0x6e   : > { %v4920_v1 = vsel %vm2279_vm0, 4294967295, %v4919_v1  ;;  %272 = vst.msk [vmem:[#allocation2] sm:$0x1f] %vm2279_vm0, %v2105_v2  ;;  %v281_v11 = vld [vmem:[%s2260_s19 + $0x40] sm:$0xff]  ;;  %v282_v12 = vld [vmem:[%s2260_s19 + $0x48] sm:$0xff]  ;;  %v283_v13 = vld [vmem:[%s2260_s19 + $0x50] sm:$0xff] }
  0x6f   : > { %4921 = vst [vmem:[#allocation9_spill] sm:$0xff] %v4920_v1  ;;  %s263_s8 = scalar_lea.vmem %s4885_s2, %s2276_s30  ;;  %v284_v14 = vld [vmem:[%s2260_s19 + $0x58] sm:$0xff]  ;;  %v285_v15 = vld [vmem:[%s2260_s19 + $0x60] sm:$0xff]  ;;  %v286_v16 = vld [vmem:[%s2260_s19 + $0x68] sm:$0xff] }
  0x70   : > { %v287_v17 = vld [vmem:[%s2260_s19 + $0x70] sm:$0xff]  ;;  %v439_v19 = vld [vmem:[%s2266_s18 + $0x8] sm:$0xff]  ;;  %v440_v20 = vld [vmem:[%s2266_s18 + $0x10] sm:$0xff] }
  0x71   : > { %v438_v18 = vld [vmem:[%s2266_s18] sm:$0xff]  ;;  %v288_v21 = vld [vmem:[%s2260_s19 + $0x78] sm:$0xff]  ;;  %v289_v22 = vld [vmem:[%s2260_s19 + $0x80] sm:$0xff]  ;;  %v604_v28 = vsub.f32 %v274_v4, %v439_v19  ;;  %v605_v29 = vsub.f32 %v275_v5, %v440_v20 }
  0x72   : > { %v290_v23 = vld [vmem:[%s2260_s19 + $0x88] sm:$0xff]  ;;  %v442_v25 = vld [vmem:[%s2266_s18 + $0x20] sm:$0xff]  ;;  %v443_v26 = vld [vmem:[%s2266_s18 + $0x28] sm:$0xff]  ;;  %v603_v27 = vsub.f32 %v273_v3, %v438_v18 }
  0x73   : > { %v441_v24 = vld [vmem:[%s2266_s18 + $0x18] sm:$0xff]  ;;  %v291_v30 = vld [vmem:[%s2260_s19 + $0x90] sm:$0xff]  ;;  %v292_v31 = vld [vmem:[%s2260_s19 + $0x98] sm:$0xff]  ;;  %v607_v37 = vsub.f32 %v277_v7, %v442_v25  ;;  %v608_v38 = vsub.f32 %v278_v8, %v443_v26  ;;  %v2345_v58 = vmul.f32 %v604_v28, %v604_v28 }
  0x74   : > { %v293_v32 = vld [vmem:[%s2260_s19 + $0xa0] sm:$0xff]  ;;  %v445_v34 = vld [vmem:[%s2266_s18 + $0x38] sm:$0xff]  ;;  %v446_v35 = vld [vmem:[%s2266_s18 + $0x40] sm:$0xff]  ;;  %v606_v36 = vsub.f32 %v276_v6, %v441_v24  ;;  %v2331_v48 = vmul.f32 %v603_v27, %v603_v27  ;;  %v2359_v6 = vmul.f32 %v605_v29, %v605_v29 }
  0x75   : > { %v444_v33 = vld [vmem:[%s2266_s18 + $0x30] sm:$0xff]  ;;  %v294_v39 = vld [vmem:[%s2260_s19 + $0xa8] sm:$0xff]  ;;  %v295_v40 = vld [vmem:[%s2260_s19 + $0xb0] sm:$0xff]  ;;  %v2327_v46 = vsub.f32 %v280_v10, %v445_v34  ;;  %v2329_v47 = vsub.f32 %v281_v11, %v446_v35  ;;  %4923 = vst [vmem:[#allocation11_spill] sm:$0xff] %v2345_v58  ;;  %v2387_v26 = vmul.f32 %v607_v37, %v607_v37 }
  0x76   : > { %v296_v41 = vld [vmem:[%s2260_s19 + $0xb8] sm:$0xff]  ;;  %v448_v43 = vld [vmem:[%s2266_s18 + $0x50] sm:$0xff]  ;;  %v449_v44 = vld [vmem:[%s2266_s18 + $0x58] sm:$0xff]  ;;  %v2325_v45 = vsub.f32 %v279_v9, %v444_v33  ;;  %4922 = vst [vmem:[#allocation10_spill] sm:$0xff] %v2331_v48 }
  0x77   : > { %v447_v42 = vld [vmem:[%s2266_s18 + $0x48] sm:$0xff]  ;;  %v297_v49 = vld [vmem:[%s2260_s19 + $0xc0] sm:$0xff]  ;;  %v298_v50 = vld [vmem:[%s2260_s19 + $0xc8] sm:$0xff]  ;;  %v2341_v56 = vsub.f32 %v283_v13, %v448_v43  ;;  %v2343_v57 = vsub.f32 %v284_v14, %v449_v44  ;;  %4924 = vst [vmem:[#allocation12_spill] sm:$0xff] %v2359_v6 }
  0x78   : > { %v299_v51 = vld [vmem:[%s2260_s19 + $0xd0] sm:$0xff]  ;;  %v451_v53 = vld [vmem:[%s2266_s18 + $0x68] sm:$0xff]  ;;  %v452_v54 = vld [vmem:[%s2266_s18 + $0x70] sm:$0xff]  ;;  %v2339_v55 = vsub.f32 %v282_v12, %v447_v42  ;;  %4926 = vst [vmem:[#allocation14_spill] sm:$0xff] %v2387_v26 }
  0x79   : > { %v450_v52 = vld [vmem:[%s2266_s18 + $0x60] sm:$0xff]  ;;  %v300_v59 = vld [vmem:[%s2260_s19 + $0xd8] sm:$0xff]  ;;  %v301_v60 = vld [vmem:[%s2260_s19 + $0xe0] sm:$0xff]  ;;  %v2355_v4 = vsub.f32 %v286_v16, %v451_v53  ;;  %v2357_v5 = vsub.f32 %v287_v17, %v452_v54  ;;  %v2373_v16 = vmul.f32 %v606_v36, %v606_v36  ;;  %v2401_v36 = vmul.f32 %v608_v38, %v608_v38 }
  0x7a   : > { %v302_v61 = vld [vmem:[%s2260_s19 + $0xe8] sm:$0xff]  ;;  %v454_v63 = vld [vmem:[%s2266_s18 + $0x80] sm:$0xff]  ;;  %v455_v2 = vld [vmem:[%s2266_s18 + $0x88] sm:$0xff]  ;;  %v2353_v3 = vsub.f32 %v285_v15, %v450_v52  ;;  %v2417_v38 = vmul.f32 %v2325_v45, %v2325_v45  ;;  %v2433_v45 = vmul.f32 %v2327_v46, %v2327_v46  ;;  %v2449_v46 = vmul.f32 %v2329_v47, %v2329_v47 }
  0x7b   : > { %v453_v62 = vld [vmem:[%s2266_s18 + $0x78] sm:$0xff]  ;;  %v303_v7 = vld [vmem:[%s2260_s19 + $0xf0] sm:$0xff]  ;;  %v304_v8 = vld [vmem:[%s2260_s19 + $0xf8] sm:$0xff]  ;;  %v2369_v14 = vsub.f32 %v289_v22, %v454_v63  ;;  %v2371_v15 = vsub.f32 %v290_v23, %v455_v2  ;;  %4925 = vst [vmem:[#allocation13_spill] sm:$0xff] %v2373_v16  ;;  %v2465_v47 = vmul.f32 %v2339_v55, %v2339_v55  ;;  %v2481_v55 = vmul.f32 %v2341_v56, %v2341_v56 }
  0x7c   : > { %v305_v9 = vld [vmem:[%s2260_s19 + $0x100] sm:$0xff]  ;;  %v457_v11 = vld [vmem:[%s2266_s18 + $0x98] sm:$0xff]  ;;  %v458_v12 = vld [vmem:[%s2266_s18 + $0xa0] sm:$0xff]  ;;  %v2367_v13 = vsub.f32 %v288_v21, %v453_v62  ;;  %4927 = vst [vmem:[#allocation15_spill] sm:$0xff] %v2401_v36  ;;  %v2497_v56 = vmul.f32 %v2343_v57, %v2343_v57  ;;  %v2513_v57 = vmul.f32 %v2353_v3, %v2353_v3  ;;  %v2529_v3 = vmul.f32 %v2355_v4, %v2355_v4 }
  0x7d   : > { %v456_v10 = vld [vmem:[%s2266_s18 + $0x90] sm:$0xff]  ;;  %v306_v17 = vld [vmem:[%s2260_s19 + $0x108] sm:$0xff]  ;;  %v307_v18 = vld [vmem:[%s2260_s19 + $0x110] sm:$0xff]  ;;  %v2383_v22 = vsub.f32 %v292_v31, %v457_v11  ;;  %v2385_v23 = vsub.f32 %v293_v32, %v458_v12  ;;  %4928 = vst [vmem:[#allocation16_spill] sm:$0xff] %v2417_v38  ;;  %v2545_v4 = vmul.f32 %v2357_v5, %v2357_v5 }
  0x7e   : > { %v308_v19 = vld [vmem:[%s2260_s19 + $0x118] sm:$0xff]  ;;  %v460_v24 = vld [vmem:[%s2266_s18 + $0xb0] sm:$0xff]  ;;  %v461_v25 = vld [vmem:[%s2266_s18 + $0xb8] sm:$0xff]  ;;  %v2381_v21 = vsub.f32 %v291_v30, %v456_v10  ;;  %4929 = vst [vmem:[#allocation17_spill] sm:$0xff] %v2433_v45  ;;  %v2561_v5 = vmul.f32 %v2367_v13, %v2367_v13  ;;  %v2577_v13 = vmul.f32 %v2369_v14, %v2369_v14  ;;  %v2593_v14 = vmul.f32 %v2371_v15, %v2371_v15 }
  0x7f   : > { %v459_v20 = vld [vmem:[%s2266_s18 + $0xa8] sm:$0xff]  ;;  %v309_v27 = vld [vmem:[%s2260_s19 + $0x120] sm:$0xff]  ;;  %v310_v28 = vld [vmem:[%s2260_s19 + $0x128] sm:$0xff]  ;;  %v2397_v31 = vsub.f32 %v295_v40, %v460_v24  ;;  %v2399_v32 = vsub.f32 %v296_v41, %v461_v25  ;;  %4930 = vst [vmem:[#allocation18_spill] sm:$0xff] %v2449_v46 }
  0x80   : > { %v311_v29 = vld [vmem:[%s2260_s19 + $0x130] sm:$0xff]  ;;  %v463_v34 = vld [vmem:[%s2266_s18 + $0xc8] sm:$0xff]  ;;  %v464_v35 = vld [vmem:[%s2266_s18 + $0xd0] sm:$0xff]  ;;  %v2395_v30 = vsub.f32 %v294_v39, %v459_v20  ;;  %4931 = vst [vmem:[#allocation19_spill] sm:$0xff] %v2465_v47  ;;  %v2609_v15 = vmul.f32 %v2381_v21, %v2381_v21  ;;  %v2625_v21 = vmul.f32 %v2383_v22, %v2383_v22  ;;  %v2641_v22 = vmul.f32 %v2385_v23, %v2385_v23 }
  0x81   : > { %v462_v33 = vld [vmem:[%s2266_s18 + $0xc0] sm:$0xff]  ;;  %v312_v37 = vld [vmem:[%s2260_s19 + $0x138] sm:$0xff]  ;;  %v313_v42 = vld [vmem:[%s2260_s19 + $0x140] sm:$0xff]  ;;  %v2411_v40 = vsub.f32 %v298_v50, %v463_v34  ;;  %v2413_v41 = vsub.f32 %v299_v51, %v464_v35  ;;  %4932 = vst [vmem:[#allocation20_spill] sm:$0xff] %v2481_v55 }
  0x82   : > { %v314_v43 = vld [vmem:[%s2260_s19 + $0x148] sm:$0xff]  ;;  %v466_v52 = vld [vmem:[%s2266_s18 + $0xe0] sm:$0xff]  ;;  %v467_v53 = vld [vmem:[%s2266_s18 + $0xe8] sm:$0xff]  ;;  %v2409_v39 = vsub.f32 %v297_v49, %v462_v33  ;;  %4933 = vst [vmem:[#allocation21_spill] sm:$0xff] %v2497_v56  ;;  %v2657_v23 = vmul.f32 %v2395_v30, %v2395_v30  ;;  %v2673_v30 = vmul.f32 %v2397_v31, %v2397_v31  ;;  %v2689_v31 = vmul.f32 %v2399_v32, %v2399_v32 }
  0x83   : > { %v465_v44 = vld [vmem:[%s2266_s18 + $0xd8] sm:$0xff]  ;;  %v315_v54 = vld [vmem:[%s2260_s19 + $0x150] sm:$0xff]  ;;  %v316_v62 = vld [vmem:[%s2260_s19 + $0x158] sm:$0xff]  ;;  %v2427_v50 = vsub.f32 %v301_v60, %v466_v52  ;;  %v2429_v51 = vsub.f32 %v302_v61, %v467_v53  ;;  %4935 = vst [vmem:[#allocation23_spill] sm:$0xff] %v2513_v57 }
  0x84   : > { %v317_v63 = vld [vmem:[%s2260_s19 + $0x160] sm:$0xff]  ;;  %v469_v10 = vld [vmem:[%s2266_s18 + $0xf8] sm:$0xff]  ;;  %v470_v49 = vld [vmem:[%s2266_s18 + $0x100] sm:$0xff]  ;;  %v2425_v11 = vsub.f32 %v300_v59, %v465_v44  ;;  %4938 = vst [vmem:[#allocation26_spill] sm:$0xff] %v2529_v3  ;;  %v2705_v32 = vmul.f32 %v2409_v39, %v2409_v39  ;;  %v2721_v39 = vmul.f32 %v2411_v40, %v2411_v40  ;;  %v2737_v40 = vmul.f32 %v2413_v41, %v2413_v41 }
  0x85   : > { %v468_v2 = vld [vmem:[%s2266_s18 + $0xf0] sm:$0xff]  ;;  %v318_v12 = vld [vmem:[%s2260_s19 + $0x168] sm:$0xff]  ;;  %v319_v20 = vld [vmem:[%s2260_s19 + $0x170] sm:$0xff]  ;;  %v2443_v60 = vsub.f32 %v304_v8, %v469_v10  ;;  %v2445_v61 = vsub.f32 %v305_v9, %v470_v49  ;;  %4941 = vst [vmem:[#allocation29_spill] sm:$0xff] %v2545_v4 }
  0x86   : > { %v320_v24 = vld [vmem:[%s2260_s19 + $0x178] sm:$0xff]  ;;  %v472_v33 = vld [vmem:[%s2266_s18 + $0x110] sm:$0xff]  ;;  %v473_v59 = vld [vmem:[%s2266_s18 + $0x118] sm:$0xff]  ;;  %v2441_v34 = vsub.f32 %v303_v7, %v468_v2  ;;  %4944 = vst [vmem:[#allocation32_spill] sm:$0xff] %v2561_v5  ;;  %v2753_v41 = vmul.f32 %v2425_v11, %v2425_v11  ;;  %v2769_v11 = vmul.f32 %v2427_v50, %v2427_v50  ;;  %v2785_v50 = vmul.f32 %v2429_v51, %v2429_v51 }
  0x87   : > { %v471_v25 = vld [vmem:[%s2266_s18 + $0x108] sm:$0xff]  ;;  %v321_v35 = vld [vmem:[%s2260_s19 + $0x180] sm:$0xff]  ;;  %v322_v44 = vld [vmem:[%s2260_s19 + $0x188] sm:$0xff]  ;;  %v2459_v8 = vsub.f32 %v307_v18, %v472_v33  ;;  %v2461_v9 = vsub.f32 %v308_v19, %v473_v59  ;;  %4947 = vst [vmem:[#allocation35_spill] sm:$0xff] %v2577_v13 }
  0x88   : > { %v323_v52 = vld [vmem:[%s2260_s19 + $0x190] sm:$0xff]  ;;  %v475_v0 = vld [vmem:[%s2266_s18 + $0x128] sm:$0xff]  ;;  %v476_v7 = vld [vmem:[%s2266_s18 + $0x130] sm:$0xff]  ;;  %v2457_v2 = vsub.f32 %v306_v17, %v471_v25  ;;  %4950 = vst [vmem:[#allocation38_spill] sm:$0xff] %v2593_v14  ;;  %v2801_v51 = vmul.f32 %v2441_v34, %v2441_v34  ;;  %v2817_v34 = vmul.f32 %v2443_v60, %v2443_v60  ;;  %v2833_v60 = vmul.f32 %v2445_v61, %v2445_v61 }
  0x89   : > { %v474_v53 = vld [vmem:[%s2266_s18 + $0x120] sm:$0xff]  ;;  %v324_v10 = vld [vmem:[%s2260_s19 + $0x198] sm:$0xff]  ;;  %v325_v49 = vld [vmem:[%s2260_s19 + $0x1a0] sm:$0xff]  ;;  %v2475_v18 = vsub.f32 %v310_v28, %v475_v0  ;;  %v2477_v19 = vsub.f32 %v311_v29, %v476_v7  ;;  %4953 = vst [vmem:[#allocation41_spill] sm:$0xff] %v2609_v15 }
  0x8a   : > { %v326_v1 = vld [vmem:[%s2260_s19 + $0x1a8] sm:$0xff]  ;;  %v478_v46 = vld [vmem:[%s2266_s18 + $0x140] sm:$0xff]  ;;  %v479_v17 = vld [vmem:[%s2266_s18 + $0x148] sm:$0xff]  ;;  %v2473_v25 = vsub.f32 %v309_v27, %v474_v53  ;;  %4956 = vst [vmem:[#allocation44_spill] sm:$0xff] %v2625_v21  ;;  %v2849_v61 = vmul.f32 %v2457_v2, %v2457_v2  ;;  %v2865_v2 = vmul.f32 %v2459_v8, %v2459_v8  ;;  %v2881_v8 = vmul.f32 %v2461_v9, %v2461_v9 }
  0x8b   : > { %v477_v26 = vld [vmem:[%s2266_s18 + $0x138] sm:$0xff]  ;;  %v327_v33 = vld [vmem:[%s2260_s19 + $0x1b0] sm:$0xff]  ;;  %v328_v59 = vld [vmem:[%s2260_s19 + $0x1b8] sm:$0xff]  ;;  %v2491_v0 = vsub.f32 %v313_v42, %v478_v46  ;;  %v2493_v28 = vsub.f32 %v314_v43, %v479_v17  ;;  %4959 = vst [vmem:[#allocation47_spill] sm:$0xff] %v2641_v22 }
  0x8c   : > { %v329_v47 = vld [vmem:[%s2260_s19 + $0x1c0] sm:$0xff]  ;;  %v481_v45 = vld [vmem:[%s2266_s18 + $0x158] sm:$0xff]  ;;  %v482_v27 = vld [vmem:[%s2266_s18 + $0x160] sm:$0xff]  ;;  %v2489_v53 = vsub.f32 %v312_v37, %v477_v26  ;;  %4962 = vst [vmem:[#allocation50_spill] sm:$0xff] %v2657_v23  ;;  %v2897_v9 = vmul.f32 %v2473_v25, %v2473_v25  ;;  %v2913_v25 = vmul.f32 %v2475_v18, %v2475_v18  ;;  %v2929_v18 = vmul.f32 %v2477_v19, %v2477_v19 }
  0x8d   : > { %v480_v16 = vld [vmem:[%s2266_s18 + $0x150] sm:$0xff]  ;;  %v330_v29 = vld [vmem:[%s2260_s19 + $0x1c8] sm:$0xff]  ;;  %v331_v7 = vld [vmem:[%s2260_s19 + $0x1d0] sm:$0xff]  ;;  %v2507_v42 = vsub.f32 %v316_v62, %v481_v45  ;;  %v2509_v43 = vsub.f32 %v317_v63, %v482_v27  ;;  %4965 = vst [vmem:[#allocation53_spill] sm:$0xff] %v2673_v30 }
  0x8e   : > { %v332_v55 = vld [vmem:[%s2260_s19 + $0x1d8] sm:$0xff]  ;;  %v484_v38 = vld [vmem:[%s2266_s18 + $0x170] sm:$0xff]  ;;  %v485_v26 = vld [vmem:[%s2266_s18 + $0x178] sm:$0xff]  ;;  %v2505_v37 = vsub.f32 %v315_v54, %v480_v16  ;;  %4968 = vst [vmem:[#allocation56_spill] sm:$0xff] %v2689_v31  ;;  %v2945_v19 = vmul.f32 %v2489_v53, %v2489_v53  ;;  %v2961_v53 = vmul.f32 %v2491_v0, %v2491_v0  ;;  %v2977_v0 = vmul.f32 %v2493_v28, %v2493_v28 }
  0x8f   : > { %v483_v6 = vld [vmem:[%s2266_s18 + $0x168] sm:$0xff]  ;;  %4934 = vst [vmem:[#allocation22_spill] sm:$0xff] %v2509_v43  ;;  %v333_v46 = vld [vmem:[%s2260_s19 + $0x1e0] sm:$0xff]  ;;  %v334_v17 = vld [vmem:[%s2260_s19 + $0x1e8] sm:$0xff]  ;;  %v2523_v62 = vsub.f32 %v319_v20, %v484_v38  ;;  %v2525_v63 = vsub.f32 %v320_v24, %v485_v26 }
  0x90   : > { %v335_v56 = vld [vmem:[%s2260_s19 + $0x1f0] sm:$0xff]  ;;  %v487_v36 = vld [vmem:[%s2266_s18 + $0x188] sm:$0xff]  ;;  %v488_v16 = vld [vmem:[%s2266_s18 + $0x190] sm:$0xff]  ;;  %v2521_v54 = vsub.f32 %v318_v12, %v483_v6  ;;  %4971 = vst [vmem:[#allocation59_spill] sm:$0xff] %v2705_v32  ;;  %v2993_v28 = vmul.f32 %v2505_v37, %v2505_v37  ;;  %v3009_v37 = vmul.f32 %v2507_v42, %v2507_v42 }
  0x91   : > { %v486_v58 = vld [vmem:[%s2266_s18 + $0x180] sm:$0xff]  ;;  %4936 = vst [vmem:[#allocation24_spill] sm:$0xff] %v2523_v62  ;;  %4937 = vst [vmem:[#allocation25_spill] sm:$0xff] %v2525_v63  ;;  %v336_v45 = vld [vmem:[%s2260_s19 + $0x1f8] sm:$0xff]  ;;  %v2539_v38 = vsub.f32 %v322_v44, %v487_v36  ;;  %v2541_v20 = vsub.f32 %v323_v52, %v488_v16 }
  0x92   : > { %v337_v27 = vld [vmem:[%s2260_s19 + $0x200] sm:$0xff]  ;;  %v338_v57 = vld [vmem:[%s2260_s19 + $0x208] sm:$0xff]  ;;  %v490_v43 = vld [vmem:[%s2266_s18 + $0x1a0] sm:$0xff]  ;;  %v2537_v12 = vsub.f32 %v321_v35, %v486_v58  ;;  %4974 = vst [vmem:[#allocation62_spill] sm:$0xff] %v2721_v39 }
  0x93   : > { %v489_v48 = vld [vmem:[%s2266_s18 + $0x198] sm:$0xff]  ;;  %v491_v6 = vld [vmem:[%s2266_s18 + $0x1a8] sm:$0xff]  ;;  %4939 = vst [vmem:[#allocation27_spill] sm:$0xff] %v2539_v38  ;;  %4940 = vst [vmem:[#allocation28_spill] sm:$0xff] %v2541_v20  ;;  %v2555_v36 = vsub.f32 %v325_v49, %v490_v43 }
  0x94   : > { %v339_v24 = vld [vmem:[%s2260_s19 + $0x210] sm:$0xff]  ;;  %v340_v26 = vld [vmem:[%s2260_s19 + $0x218] sm:$0xff]  ;;  %v341_v3 = vld [vmem:[%s2260_s19 + $0x220] sm:$0xff]  ;;  %v2553_v35 = vsub.f32 %v324_v10, %v489_v48  ;;  %v2557_v44 = vsub.f32 %v326_v1, %v491_v6  ;;  %4977 = vst [vmem:[#allocation65_spill] sm:$0xff] %v2737_v40 }
  0x95   : > { %v492_v63 = vld [vmem:[%s2266_s18 + $0x1b0] sm:$0xff]  ;;  %v493_v62 = vld [vmem:[%s2266_s18 + $0x1b8] sm:$0xff]  ;;  %v494_v58 = vld [vmem:[%s2266_s18 + $0x1c0] sm:$0xff]  ;;  %4942 = vst [vmem:[#allocation30_spill] sm:$0xff] %v2555_v36 }
  0x96   : > { %4943 = vst [vmem:[#allocation31_spill] sm:$0xff] %v2557_v44  ;;  %v342_v52 = vld [vmem:[%s2260_s19 + $0x228] sm:$0xff]  ;;  %v343_v16 = vld [vmem:[%s2260_s19 + $0x230] sm:$0xff]  ;;  %v344_v4 = vld [vmem:[%s2260_s19 + $0x238] sm:$0xff]  ;;  %v2569_v10 = vsub.f32 %v327_v33, %v492_v63  ;;  %v2571_v49 = vsub.f32 %v328_v59, %v493_v62  ;;  %v2573_v1 = vsub.f32 %v329_v47, %v494_v58 }
  0x97   : > { %v495_v20 = vld [vmem:[%s2266_s18 + $0x1c8] sm:$0xff]  ;;  %v496_v38 = vld [vmem:[%s2266_s18 + $0x1d0] sm:$0xff]  ;;  %v497_v48 = vld [vmem:[%s2266_s18 + $0x1d8] sm:$0xff]  ;;  %4980 = vst [vmem:[#allocation68_spill] sm:$0xff] %v2753_v41 }
  0x98   : > { %4945 = vst [vmem:[#allocation33_spill] sm:$0xff] %v2571_v49  ;;  %4946 = vst [vmem:[#allocation34_spill] sm:$0xff] %v2573_v1  ;;  %v345_v43 = vld [vmem:[%s2260_s19 + $0x240] sm:$0xff]  ;;  %v346_v6 = vld [vmem:[%s2260_s19 + $0x248] sm:$0xff]  ;;  %v2585_v63 = vsub.f32 %v330_v29, %v495_v20  ;;  %v2587_v59 = vsub.f32 %v331_v7, %v496_v38  ;;  %v2589_v47 = vsub.f32 %v332_v55, %v497_v48 }
  0x99   : > { %v347_v5 = vld [vmem:[%s2260_s19 + $0x250] sm:$0xff]  ;;  %v499_v36 = vld [vmem:[%s2266_s18 + $0x1e8] sm:$0xff]  ;;  %v500_v33 = vld [vmem:[%s2266_s18 + $0x1f0] sm:$0xff]  ;;  %4983 = vst [vmem:[#allocation71_spill] sm:$0xff] %v2769_v11 }
  0x9a   : > { %v498_v44 = vld [vmem:[%s2266_s18 + $0x1e0] sm:$0xff]  ;;  %4948 = vst [vmem:[#allocation36_spill] sm:$0xff] %v2587_v59  ;;  %4949 = vst [vmem:[#allocation37_spill] sm:$0xff] %v2589_v47  ;;  %v348_v62 = vld [vmem:[%s2260_s19 + $0x258] sm:$0xff]  ;;  %v2603_v7 = vsub.f32 %v334_v17, %v499_v36  ;;  %v2605_v55 = vsub.f32 %v335_v56, %v500_v33 }
  0x9b   : > { %v349_v58 = vld [vmem:[%s2260_s19 + $0x260] sm:$0xff]  ;;  %v350_v13 = vld [vmem:[%s2260_s19 + $0x268] sm:$0xff]  ;;  %v502_v49 = vld [vmem:[%s2266_s18 + $0x200] sm:$0xff]  ;;  %v2601_v20 = vsub.f32 %v333_v46, %v498_v44  ;;  %4986 = vst [vmem:[#allocation74_spill] sm:$0xff] %v2785_v50 }
  0x9c   : > { %v501_v1 = vld [vmem:[%s2266_s18 + $0x1f8] sm:$0xff]  ;;  %v503_v29 = vld [vmem:[%s2266_s18 + $0x208] sm:$0xff]  ;;  %4951 = vst [vmem:[#allocation39_spill] sm:$0xff] %v2603_v7  ;;  %4952 = vst [vmem:[#allocation40_spill] sm:$0xff] %v2605_v55  ;;  %v2619_v17 = vsub.f32 %v337_v27, %v502_v49 }
  0x9d   : > { %v351_v38 = vld [vmem:[%s2260_s19 + $0x270] sm:$0xff]  ;;  %v352_v48 = vld [vmem:[%s2260_s19 + $0x278] sm:$0xff]  ;;  %v353_v14 = vld [vmem:[%s2260_s19 + $0x280] sm:$0xff]  ;;  %v2617_v44 = vsub.f32 %v336_v45, %v501_v1  ;;  %v2621_v56 = vsub.f32 %v338_v57, %v503_v29  ;;  %4989 = vst [vmem:[#allocation77_spill] sm:$0xff] %v2801_v51 }
  0x9e   : > { %v504_v47 = vld [vmem:[%s2266_s18 + $0x210] sm:$0xff]  ;;  %v505_v59 = vld [vmem:[%s2266_s18 + $0x218] sm:$0xff]  ;;  %v506_v46 = vld [vmem:[%s2266_s18 + $0x220] sm:$0xff]  ;;  %4954 = vst [vmem:[#allocation42_spill] sm:$0xff] %v2619_v17 }
  0x9f   : > { %4955 = vst [vmem:[#allocation43_spill] sm:$0xff] %v2621_v56  ;;  %v354_v36 = vld [vmem:[%s2260_s19 + $0x288] sm:$0xff]  ;;  %v355_v33 = vld [vmem:[%s2260_s19 + $0x290] sm:$0xff]  ;;  %v356_v15 = vld [vmem:[%s2260_s19 + $0x298] sm:$0xff]  ;;  %v2633_v1 = vsub.f32 %v339_v24, %v504_v47  ;;  %v2635_v27 = vsub.f32 %v340_v26, %v505_v59  ;;  %v2637_v57 = vsub.f32 %v341_v3, %v506_v46 }
  0xa0   : > { %v507_v55 = vld [vmem:[%s2266_s18 + $0x228] sm:$0xff]  ;;  %v508_v7 = vld [vmem:[%s2266_s18 + $0x230] sm:$0xff]  ;;  %v509_v45 = vld [vmem:[%s2266_s18 + $0x238] sm:$0xff]  ;;  %4992 = vst [vmem:[#allocation80_spill] sm:$0xff] %v2817_v34 }
  0xa1   : > { %4957 = vst [vmem:[#allocation45_spill] sm:$0xff] %v2635_v27  ;;  %4958 = vst [vmem:[#allocation46_spill] sm:$0xff] %v2637_v57  ;;  %v357_v49 = vld [vmem:[%s2260_s19 + $0x2a0] sm:$0xff]  ;;  %v358_v29 = vld [vmem:[%s2260_s19 + $0x2a8] sm:$0xff]  ;;  %v2649_v47 = vsub.f32 %v342_v52, %v507_v55  ;;  %v2651_v26 = vsub.f32 %v343_v16, %v508_v7  ;;  %v2653_v3 = vsub.f32 %v344_v4, %v509_v45 }
  0xa2   : > { %v359_v21 = vld [vmem:[%s2260_s19 + $0x2b0] sm:$0xff]  ;;  %v511_v17 = vld [vmem:[%s2266_s18 + $0x248] sm:$0xff]  ;;  %v512_v24 = vld [vmem:[%s2266_s18 + $0x250] sm:$0xff]  ;;  %4995 = vst [vmem:[#allocation83_spill] sm:$0xff] %v2833_v60 }
  0xa3   : > { %v510_v56 = vld [vmem:[%s2266_s18 + $0x240] sm:$0xff]  ;;  %4960 = vst [vmem:[#allocation48_spill] sm:$0xff] %v2651_v26  ;;  %4961 = vst [vmem:[#allocation49_spill] sm:$0xff] %v2653_v3  ;;  %v360_v59 = vld [vmem:[%s2260_s19 + $0x2b8] sm:$0xff]  ;;  %v2667_v16 = vsub.f32 %v346_v6, %v511_v17  ;;  %v2669_v4 = vsub.f32 %v347_v5, %v512_v24 }
  0xa4   : > { %v361_v46 = vld [vmem:[%s2260_s19 + $0x2c0] sm:$0xff]  ;;  %v362_v22 = vld [vmem:[%s2260_s19 + $0x2c8] sm:$0xff]  ;;  %v514_v27 = vld [vmem:[%s2266_s18 + $0x260] sm:$0xff]  ;;  %v2665_v55 = vsub.f32 %v345_v43, %v510_v56  ;;  %4998 = vst [vmem:[#allocation86_spill] sm:$0xff] %v2849_v61 }
  0xa5   : > { %v513_v57 = vld [vmem:[%s2266_s18 + $0x258] sm:$0xff]  ;;  %v515_v52 = vld [vmem:[%s2266_s18 + $0x268] sm:$0xff]  ;;  %4963 = vst [vmem:[#allocation51_spill] sm:$0xff] %v2667_v16  ;;  %4964 = vst [vmem:[#allocation52_spill] sm:$0xff] %v2669_v4  ;;  %v2683_v6 = vsub.f32 %v349_v58, %v514_v27 }
  0xa6   : > { %v363_v7 = vld [vmem:[%s2260_s19 + $0x2d0] sm:$0xff]  ;;  %v364_v45 = vld [vmem:[%s2260_s19 + $0x2d8] sm:$0xff]  ;;  %v365_v23 = vld [vmem:[%s2260_s19 + $0x2e0] sm:$0xff]  ;;  %v2681_v56 = vsub.f32 %v348_v62, %v513_v57  ;;  %v2685_v5 = vsub.f32 %v350_v13, %v515_v52  ;;  %5001 = vst [vmem:[#allocation89_spill] sm:$0xff] %v2865_v2 }
  0xa7   : > { %v516_v3 = vld [vmem:[%s2266_s18 + $0x270] sm:$0xff]  ;;  %v517_v26 = vld [vmem:[%s2266_s18 + $0x278] sm:$0xff]  ;;  %v518_v43 = vld [vmem:[%s2266_s18 + $0x280] sm:$0xff]  ;;  %4966 = vst [vmem:[#allocation54_spill] sm:$0xff] %v2683_v6 }
  0xa8   : > { %4967 = vst [vmem:[#allocation55_spill] sm:$0xff] %v2685_v5  ;;  %v366_v17 = vld [vmem:[%s2260_s19 + $0x2e8] sm:$0xff]  ;;  %v367_v24 = vld [vmem:[%s2260_s19 + $0x2f0] sm:$0xff]  ;;  %v368_v30 = vld [vmem:[%s2260_s19 + $0x2f8] sm:$0xff]  ;;  %v2697_v57 = vsub.f32 %v351_v38, %v516_v3  ;;  %v2699_v58 = vsub.f32 %v352_v48, %v517_v26  ;;  %v2701_v13 = vsub.f32 %v353_v14, %v518_v43 }
  0xa9   : > { %v519_v4 = vld [vmem:[%s2266_s18 + $0x288] sm:$0xff]  ;;  %v520_v16 = vld [vmem:[%s2266_s18 + $0x290] sm:$0xff]  ;;  %v521_v62 = vld [vmem:[%s2266_s18 + $0x298] sm:$0xff]  ;;  %5004 = vst [vmem:[#allocation92_spill] sm:$0xff] %v2881_v8 }
  0xaa   : > { %4969 = vst [vmem:[#allocation57_spill] sm:$0xff] %v2699_v58  ;;  %4970 = vst [vmem:[#allocation58_spill] sm:$0xff] %v2701_v13  ;;  %v369_v27 = vld [vmem:[%s2260_s19 + $0x300] sm:$0xff]  ;;  %v370_v52 = vld [vmem:[%s2260_s19 + $0x308] sm:$0xff]  ;;  %v2713_v3 = vsub.f32 %v354_v36, %v519_v4  ;;  %v2715_v48 = vsub.f32 %v355_v33, %v520_v16  ;;  %v2717_v14 = vsub.f32 %v356_v15, %v521_v62 }
  0xab   : > { %v371_v31 = vld [vmem:[%s2260_s19 + $0x310] sm:$0xff]  ;;  %v523_v6 = vld [vmem:[%s2266_s18 + $0x2a8] sm:$0xff]  ;;  %v524_v38 = vld [vmem:[%s2266_s18 + $0x2b0] sm:$0xff]  ;;  %5007 = vst [vmem:[#allocation95_spill] sm:$0xff] %v2897_v9 }
  0xac   : > { %v522_v5 = vld [vmem:[%s2266_s18 + $0x2a0] sm:$0xff]  ;;  %4972 = vst [vmem:[#allocation60_spill] sm:$0xff] %v2715_v48  ;;  %4973 = vst [vmem:[#allocation61_spill] sm:$0xff] %v2717_v14  ;;  %v372_v26 = vld [vmem:[%s2260_s19 + $0x318] sm:$0xff]  ;;  %v2731_v33 = vsub.f32 %v358_v29, %v523_v6  ;;  %v2733_v15 = vsub.f32 %v359_v21, %v524_v38 }
  0xad   : > { %v373_v43 = vld [vmem:[%s2260_s19 + $0x320] sm:$0xff]  ;;  %v374_v32 = vld [vmem:[%s2260_s19 + $0x328] sm:$0xff]  ;;  %v526_v58 = vld [vmem:[%s2266_s18 + $0x2c0] sm:$0xff]  ;;  %v2729_v4 = vsub.f32 %v357_v49, %v522_v5  ;;  %5010 = vst [vmem:[#allocation98_spill] sm:$0xff] %v2913_v25 }
  0xae   : > { %v525_v13 = vld [vmem:[%s2266_s18 + $0x2b8] sm:$0xff]  ;;  %v527_v36 = vld [vmem:[%s2266_s18 + $0x2c8] sm:$0xff]  ;;  %4975 = vst [vmem:[#allocation63_spill] sm:$0xff] %v2731_v33  ;;  %4976 = vst [vmem:[#allocation64_spill] sm:$0xff] %v2733_v15  ;;  %v2747_v29 = vsub.f32 %v361_v46, %v526_v58 }
  0xaf   : > { %v375_v16 = vld [vmem:[%s2260_s19 + $0x330] sm:$0xff]  ;;  %v376_v62 = vld [vmem:[%s2260_s19 + $0x338] sm:$0xff]  ;;  %v377_v39 = vld [vmem:[%s2260_s19 + $0x340] sm:$0xff]  ;;  %v2745_v5 = vsub.f32 %v360_v59, %v525_v13  ;;  %v2749_v21 = vsub.f32 %v362_v22, %v527_v36  ;;  %5013 = vst [vmem:[#allocation101_spill] sm:$0xff] %v2929_v18 }
  0xb0   : > { %v528_v14 = vld [vmem:[%s2266_s18 + $0x2d0] sm:$0xff]  ;;  %v529_v48 = vld [vmem:[%s2266_s18 + $0x2d8] sm:$0xff]  ;;  %v530_v49 = vld [vmem:[%s2266_s18 + $0x2e0] sm:$0xff]  ;;  %4978 = vst [vmem:[#allocation66_spill] sm:$0xff] %v2747_v29 }
  0xb1   : > { %4979 = vst [vmem:[#allocation67_spill] sm:$0xff] %v2749_v21  ;;  %v378_v6 = vld [vmem:[%s2260_s19 + $0x348] sm:$0xff]  ;;  %v379_v38 = vld [vmem:[%s2260_s19 + $0x350] sm:$0xff]  ;;  %v380_v40 = vld [vmem:[%s2260_s19 + $0x358] sm:$0xff]  ;;  %v2761_v13 = vsub.f32 %v363_v7, %v528_v14  ;;  %v2763_v46 = vsub.f32 %v364_v45, %v529_v48  ;;  %v2765_v22 = vsub.f32 %v365_v23, %v530_v49 }
  0xb2   : > { %v531_v15 = vld [vmem:[%s2266_s18 + $0x2e8] sm:$0xff]  ;;  %v532_v33 = vld [vmem:[%s2266_s18 + $0x2f0] sm:$0xff]  ;;  %v533_v59 = vld [vmem:[%s2266_s18 + $0x2f8] sm:$0xff]  ;;  %5016 = vst [vmem:[#allocation104_spill] sm:$0xff] %v2945_v19 }
  0xb3   : > { %4981 = vst [vmem:[#allocation69_spill] sm:$0xff] %v2763_v46  ;;  %4982 = vst [vmem:[#allocation70_spill] sm:$0xff] %v2765_v22  ;;  %v381_v58 = vld [vmem:[%s2260_s19 + $0x360] sm:$0xff]  ;;  %v382_v36 = vld [vmem:[%s2260_s19 + $0x368] sm:$0xff]  ;;  %v2777_v14 = vsub.f32 %v366_v17, %v531_v15  ;;  %v2779_v45 = vsub.f32 %v367_v24, %v532_v33  ;;  %v2781_v23 = vsub.f32 %v368_v30, %v533_v59 }
  0xb4   : > { %v383_v41 = vld [vmem:[%s2260_s19 + $0x370] sm:$0xff]  ;;  %v535_v29 = vld [vmem:[%s2266_s18 + $0x308] sm:$0xff]  ;;  %v536_v7 = vld [vmem:[%s2266_s18 + $0x310] sm:$0xff]  ;;  %5019 = vst [vmem:[#allocation107_spill] sm:$0xff] %v2961_v53 }
  0xb5   : > { %v534_v21 = vld [vmem:[%s2266_s18 + $0x300] sm:$0xff]  ;;  %4984 = vst [vmem:[#allocation72_spill] sm:$0xff] %v2779_v45  ;;  %4985 = vst [vmem:[#allocation73_spill] sm:$0xff] %v2781_v23  ;;  %v384_v48 = vld [vmem:[%s2260_s19 + $0x378] sm:$0xff]  ;;  %v2795_v24 = vsub.f32 %v370_v52, %v535_v29  ;;  %v2797_v30 = vsub.f32 %v371_v31, %v536_v7 }
  0xb6   : > { %v385_v49 = vld [vmem:[%s2260_s19 + $0x380] sm:$0xff]  ;;  %v386_v11 = vld [vmem:[%s2260_s19 + $0x388] sm:$0xff]  ;;  %v538_v46 = vld [vmem:[%s2266_s18 + $0x320] sm:$0xff]  ;;  %v2793_v15 = vsub.f32 %v369_v27, %v534_v21  ;;  %5022 = vst [vmem:[#allocation110_spill] sm:$0xff] %v2977_v0 }
  0xb7   : > { %v537_v22 = vld [vmem:[%s2266_s18 + $0x318] sm:$0xff]  ;;  %v539_v17 = vld [vmem:[%s2266_s18 + $0x328] sm:$0xff]  ;;  %4987 = vst [vmem:[#allocation75_spill] sm:$0xff] %v2795_v24  ;;  %4988 = vst [vmem:[#allocation76_spill] sm:$0xff] %v2797_v30  ;;  %v2811_v52 = vsub.f32 %v373_v43, %v538_v46 }
  0xb8   : > { %v387_v33 = vld [vmem:[%s2260_s19 + $0x390] sm:$0xff]  ;;  %v388_v59 = vld [vmem:[%s2260_s19 + $0x398] sm:$0xff]  ;;  %v389_v50 = vld [vmem:[%s2260_s19 + $0x3a0] sm:$0xff]  ;;  %v2809_v21 = vsub.f32 %v372_v26, %v537_v22  ;;  %v2813_v31 = vsub.f32 %v374_v32, %v539_v17  ;;  %5025 = vst [vmem:[#allocation113_spill] sm:$0xff] %v2993_v28 }
  0xb9   : > { %v540_v23 = vld [vmem:[%s2266_s18 + $0x330] sm:$0xff]  ;;  %v541_v45 = vld [vmem:[%s2266_s18 + $0x338] sm:$0xff]  ;;  %v542_v27 = vld [vmem:[%s2266_s18 + $0x340] sm:$0xff]  ;;  %4990 = vst [vmem:[#allocation78_spill] sm:$0xff] %v2811_v52 }
  0xba   : > { %4991 = vst [vmem:[#allocation79_spill] sm:$0xff] %v2813_v31  ;;  %v390_v29 = vld [vmem:[%s2260_s19 + $0x3a8] sm:$0xff]  ;;  %v391_v7 = vld [vmem:[%s2260_s19 + $0x3b0] sm:$0xff]  ;;  %v392_v51 = vld [vmem:[%s2260_s19 + $0x3b8] sm:$0xff]  ;;  %v2825_v22 = vsub.f32 %v375_v16, %v540_v23  ;;  %v2827_v43 = vsub.f32 %v376_v62, %v541_v45  ;;  %v2829_v32 = vsub.f32 %v377_v39, %v542_v27 }
  0xbb   : > { %v543_v30 = vld [vmem:[%s2266_s18 + $0x348] sm:$0xff]  ;;  %v544_v24 = vld [vmem:[%s2266_s18 + $0x350] sm:$0xff]  ;;  %v545_v26 = vld [vmem:[%s2266_s18 + $0x358] sm:$0xff]  ;;  %5029 = vst [vmem:[#allocation117_spill] sm:$0xff] %v3009_v37 }
  0xbc   : > { %4993 = vst [vmem:[#allocation81_spill] sm:$0xff] %v2827_v43  ;;  %4994 = vst [vmem:[#allocation82_spill] sm:$0xff] %v2829_v32  ;;  %v393_v46 = vld [vmem:[%s2260_s19 + $0x3c0] sm:$0xff]  ;;  %v394_v17 = vld [vmem:[%s2260_s19 + $0x3c8] sm:$0xff]  ;;  %v2841_v23 = vsub.f32 %v378_v6, %v543_v30  ;;  %v2843_v62 = vsub.f32 %v379_v38, %v544_v24  ;;  %v2845_v39 = vsub.f32 %v380_v40, %v545_v26 }
  0xbd   : > { %v395_v34 = vld [vmem:[%s2260_s19 + $0x3d0] sm:$0xff]  ;;  %v547_v52 = vld [vmem:[%s2266_s18 + $0x368] sm:$0xff]  ;;  %v548_v16 = vld [vmem:[%s2266_s18 + $0x370] sm:$0xff] }
  0xbe   : > { %v546_v31 = vld [vmem:[%s2266_s18 + $0x360] sm:$0xff]  ;;  %4996 = vst [vmem:[#allocation84_spill] sm:$0xff] %v2843_v62  ;;  %4997 = vst [vmem:[#allocation85_spill] sm:$0xff] %v2845_v39  ;;  %v396_v45 = vld [vmem:[%s2260_s19 + $0x3d8] sm:$0xff]  ;;  %v2859_v38 = vsub.f32 %v382_v36, %v547_v52  ;;  %v2861_v40 = vsub.f32 %v383_v41, %v548_v16 }
  0xbf   : > { %v397_v27 = vld [vmem:[%s2260_s19 + $0x3e0] sm:$0xff]  ;;  %v398_v60 = vld [vmem:[%s2260_s19 + $0x3e8] sm:$0xff]  ;;  %v550_v43 = vld [vmem:[%s2266_s18 + $0x380] sm:$0xff]  ;;  %v2857_v30 = vsub.f32 %v381_v58, %v546_v31 }
  0xc0   : > { %v549_v32 = vld [vmem:[%s2266_s18 + $0x378] sm:$0xff]  ;;  %v551_v6 = vld [vmem:[%s2266_s18 + $0x388] sm:$0xff]  ;;  %4999 = vst [vmem:[#allocation87_spill] sm:$0xff] %v2859_v38  ;;  %5000 = vst [vmem:[#allocation88_spill] sm:$0xff] %v2861_v40  ;;  %v2875_v36 = vsub.f32 %v385_v49, %v550_v43 }
  0xc1   : > { %v399_v24 = vld [vmem:[%s2260_s19 + $0x3f0] sm:$0xff]  ;;  %v400_v26 = vld [vmem:[%s2260_s19 + $0x3f8] sm:$0xff]  ;;  %v401_v61 = vld [vmem:[%s2260_s19 + $0x400] sm:$0xff]  ;;  %v2873_v31 = vsub.f32 %v384_v48, %v549_v32  ;;  %v2877_v41 = vsub.f32 %v386_v11, %v551_v6 }
  0xc2   : > { %v552_v39 = vld [vmem:[%s2266_s18 + $0x390] sm:$0xff]  ;;  %v553_v62 = vld [vmem:[%s2266_s18 + $0x398] sm:$0xff]  ;;  %v554_v58 = vld [vmem:[%s2266_s18 + $0x3a0] sm:$0xff]  ;;  %5002 = vst [vmem:[#allocation90_spill] sm:$0xff] %v2875_v36 }
  0xc3   : > { %5003 = vst [vmem:[#allocation91_spill] sm:$0xff] %v2877_v41  ;;  %v402_v52 = vld [vmem:[%s2260_s19 + $0x408] sm:$0xff]  ;;  %v403_v16 = vld [vmem:[%s2260_s19 + $0x410] sm:$0xff]  ;;  %v404_v2 = vld [vmem:[%s2260_s19 + $0x418] sm:$0xff]  ;;  %v2889_v32 = vsub.f32 %v387_v33, %v552_v39  ;;  %v2891_v49 = vsub.f32 %v388_v59, %v553_v62  ;;  %v2893_v11 = vsub.f32 %v389_v50, %v554_v58 }
  0xc4   : > { %v555_v40 = vld [vmem:[%s2266_s18 + $0x3a8] sm:$0xff]  ;;  %v556_v38 = vld [vmem:[%s2266_s18 + $0x3b0] sm:$0xff]  ;;  %v557_v48 = vld [vmem:[%s2266_s18 + $0x3b8] sm:$0xff] }
  0xc5   : > { %5005 = vst [vmem:[#allocation93_spill] sm:$0xff] %v2891_v49  ;;  %5006 = vst [vmem:[#allocation94_spill] sm:$0xff] %v2893_v11  ;;  %v405_v43 = vld [vmem:[%s2260_s19 + $0x420] sm:$0xff]  ;;  %v406_v6 = vld [vmem:[%s2260_s19 + $0x428] sm:$0xff]  ;;  %v2905_v39 = vsub.f32 %v390_v29, %v555_v40  ;;  %v2907_v59 = vsub.f32 %v391_v7, %v556_v38  ;;  %v2909_v50 = vsub.f32 %v392_v51, %v557_v48 }
  0xc6   : > { %v407_v8 = vld [vmem:[%s2260_s19 + $0x430] sm:$0xff]  ;;  %v559_v36 = vld [vmem:[%s2266_s18 + $0x3c8] sm:$0xff]  ;;  %v560_v33 = vld [vmem:[%s2266_s18 + $0x3d0] sm:$0xff] }
  0xc7   : > { %v558_v41 = vld [vmem:[%s2266_s18 + $0x3c0] sm:$0xff]  ;;  %5008 = vst [vmem:[#allocation96_spill] sm:$0xff] %v2907_v59  ;;  %5009 = vst [vmem:[#allocation97_spill] sm:$0xff] %v2909_v50  ;;  %v408_v62 = vld [vmem:[%s2260_s19 + $0x438] sm:$0xff]  ;;  %v2923_v7 = vsub.f32 %v394_v17, %v559_v36  ;;  %v2925_v51 = vsub.f32 %v395_v34, %v560_v33 }
  0xc8   : > { %v409_v58 = vld [vmem:[%s2260_s19 + $0x440] sm:$0xff]  ;;  %v410_v9 = vld [vmem:[%s2260_s19 + $0x448] sm:$0xff]  ;;  %v562_v49 = vld [vmem:[%s2266_s18 + $0x3e0] sm:$0xff]  ;;  %v2921_v40 = vsub.f32 %v393_v46, %v558_v41 }
  0xc9   : > { %v561_v11 = vld [vmem:[%s2266_s18 + $0x3d8] sm:$0xff]  ;;  %v563_v29 = vld [vmem:[%s2266_s18 + $0x3e8] sm:$0xff]  ;;  %5011 = vst [vmem:[#allocation99_spill] sm:$0xff] %v2923_v7  ;;  %5012 = vst [vmem:[#allocation100_spill] sm:$0xff] %v2925_v51  ;;  %v2939_v17 = vsub.f32 %v397_v27, %v562_v49 }
  0xca   : > { %v411_v38 = vld [vmem:[%s2260_s19 + $0x450] sm:$0xff]  ;;  %v412_v48 = vld [vmem:[%s2260_s19 + $0x458] sm:$0xff]  ;;  %v413_v25 = vld [vmem:[%s2260_s19 + $0x460] sm:$0xff]  ;;  %v2937_v41 = vsub.f32 %v396_v45, %v561_v11  ;;  %v2941_v34 = vsub.f32 %v398_v60, %v563_v29 }
  0xcb   : > { %v564_v50 = vld [vmem:[%s2266_s18 + $0x3f0] sm:$0xff]  ;;  %v565_v59 = vld [vmem:[%s2266_s18 + $0x3f8] sm:$0xff]  ;;  %v566_v46 = vld [vmem:[%s2266_s18 + $0x400] sm:$0xff]  ;;  %5014 = vst [vmem:[#allocation102_spill] sm:$0xff] %v2939_v17 }
  0xcc   : > { %5015 = vst [vmem:[#allocation103_spill] sm:$0xff] %v2941_v34  ;;  %v414_v36 = vld [vmem:[%s2260_s19 + $0x468] sm:$0xff]  ;;  %v415_v33 = vld [vmem:[%s2260_s19 + $0x470] sm:$0xff]  ;;  %v416_v18 = vld [vmem:[%s2260_s19 + $0x478] sm:$0xff]  ;;  %v2953_v11 = vsub.f32 %v399_v24, %v564_v50  ;;  %v2955_v27 = vsub.f32 %v400_v26, %v565_v59  ;;  %v2957_v60 = vsub.f32 %v401_v61, %v566_v46 }
  0xcd   : > { %v567_v51 = vld [vmem:[%s2266_s18 + $0x408] sm:$0xff]  ;;  %v568_v7 = vld [vmem:[%s2266_s18 + $0x410] sm:$0xff]  ;;  %v569_v45 = vld [vmem:[%s2266_s18 + $0x418] sm:$0xff] }
  0xce   : > { %5017 = vst [vmem:[#allocation105_spill] sm:$0xff] %v2955_v27  ;;  %5018 = vst [vmem:[#allocation106_spill] sm:$0xff] %v2957_v60  ;;  %v417_v49 = vld [vmem:[%s2260_s19 + $0x480] sm:$0xff]  ;;  %v418_v29 = vld [vmem:[%s2260_s19 + $0x488] sm:$0xff]  ;;  %v2969_v50 = vsub.f32 %v402_v52, %v567_v51  ;;  %v2971_v26 = vsub.f32 %v403_v16, %v568_v7  ;;  %v2973_v61 = vsub.f32 %v404_v2, %v569_v45 }
  0xcf   : > { %v419_v19 = vld [vmem:[%s2260_s19 + $0x490] sm:$0xff]  ;;  %v571_v17 = vld [vmem:[%s2266_s18 + $0x428] sm:$0xff]  ;;  %v572_v24 = vld [vmem:[%s2266_s18 + $0x430] sm:$0xff] }
  0xd0   : > { %v570_v34 = vld [vmem:[%s2266_s18 + $0x420] sm:$0xff]  ;;  %5020 = vst [vmem:[#allocation108_spill] sm:$0xff] %v2971_v26  ;;  %5021 = vst [vmem:[#allocation109_spill] sm:$0xff] %v2973_v61  ;;  %v420_v59 = vld [vmem:[%s2260_s19 + $0x498] sm:$0xff]  ;;  %v2987_v16 = vsub.f32 %v406_v6, %v571_v17  ;;  %v2989_v2 = vsub.f32 %v407_v8, %v572_v24 }
  0xd1   : > { %v421_v46 = vld [vmem:[%s2260_s19 + $0x4a0] sm:$0xff]  ;;  %v422_v53 = vld [vmem:[%s2260_s19 + $0x4a8] sm:$0xff]  ;;  %v574_v27 = vld [vmem:[%s2266_s18 + $0x440] sm:$0xff]  ;;  %v2985_v51 = vsub.f32 %v405_v43, %v570_v34 }
  0xd2   : > { %v573_v60 = vld [vmem:[%s2266_s18 + $0x438] sm:$0xff]  ;;  %v575_v52 = vld [vmem:[%s2266_s18 + $0x448] sm:$0xff]  ;;  %5023 = vst [vmem:[#allocation111_spill] sm:$0xff] %v2987_v16  ;;  %5024 = vst [vmem:[#allocation112_spill] sm:$0xff] %v2989_v2  ;;  %v3003_v6 = vsub.f32 %v409_v58, %v574_v27 }
  0xd3   : > { %v423_v7 = vld [vmem:[%s2260_s19 + $0x4b0] sm:$0xff]  ;;  %v424_v45 = vld [vmem:[%s2260_s19 + $0x4b8] sm:$0xff]  ;;  %v425_v0 = vld [vmem:[%s2260_s19 + $0x4c0] sm:$0xff]  ;;  %v3001_v34 = vsub.f32 %v408_v62, %v573_v60  ;;  %v3005_v8 = vsub.f32 %v410_v9, %v575_v52 }
  0xd4   : > { %v576_v61 = vld [vmem:[%s2266_s18 + $0x450] sm:$0xff]  ;;  %v577_v26 = vld [vmem:[%s2266_s18 + $0x458] sm:$0xff]  ;;  %v578_v43 = vld [vmem:[%s2266_s18 + $0x460] sm:$0xff]  ;;  %5027 = vst [vmem:[#allocation115_spill] sm:$0xff] %v3003_v6 }
  0xd5   : > { %5026 = vst [vmem:[#allocation114_spill] sm:$0xff] %v3001_v34  ;;  %5028 = vst [vmem:[#allocation116_spill] sm:$0xff] %v3005_v8  ;;  %v426_v17 = vld [vmem:[%s2260_s19 + $0x4c8] sm:$0xff]  ;;  %v427_v24 = vld [vmem:[%s2260_s19 + $0x4d0] sm:$0xff]  ;;  %v3017_v60 = vsub.f32 %v411_v38, %v576_v61  ;;  %v3019_v58 = vsub.f32 %v412_v48, %v577_v26  ;;  %v3021_v9 = vsub.f32 %v413_v25, %v578_v43 }
  0xd6   : > { %v428_v28 = vld [vmem:[%s2260_s19 + $0x4d8] sm:$0xff]  ;;  %v580_v16 = vld [vmem:[%s2266_s18 + $0x470] sm:$0xff]  ;;  %v581_v62 = vld [vmem:[%s2266_s18 + $0x478] sm:$0xff]  ;;  %v3041_v26 = vmul.f32 %v2521_v54, %v2521_v54 }
  0xd7   : > { %v579_v2 = vld [vmem:[%s2266_s18 + $0x468] sm:$0xff]  ;;  %5030 = vst [vmem:[#allocation118_spill] sm:$0xff] %v3017_v60  ;;  %5031 = vst [vmem:[#allocation119_spill] sm:$0xff] %v3019_v58  ;;  %v5033_v27 = vld [vmem:[#allocation22_spill] sm:$0xff]  ;;  %v3035_v48 = vsub.f32 %v415_v33, %v580_v16  ;;  %v3037_v25 = vsub.f32 %v416_v18, %v581_v62 }
  0xd8   : > { %5032 = vst [vmem:[#allocation120_spill] sm:$0xff] %v3021_v9  ;;  %v3025_v42 = vmul.f32 %v5033_v27, %v5033_v27  ;;  %v429_v52 = vld [vmem:[%s2260_s19 + $0x4e0] sm:$0xff]  ;;  %v430_v37 = vld [vmem:[%s2260_s19 + $0x4e8] sm:$0xff]  ;;  %v431_v8 = vld [vmem:[%s2260_s19 + $0x4f0] sm:$0xff]  ;;  %v3033_v61 = vsub.f32 %v414_v36, %v579_v2 }
  0xd9   : > { %v582_v6 = vld [vmem:[%s2266_s18 + $0x480] sm:$0xff]  ;;  %v583_v34 = vld [vmem:[%s2266_s18 + $0x488] sm:$0xff]  ;;  %v584_v38 = vld [vmem:[%s2266_s18 + $0x490] sm:$0xff]  ;;  %5036 = vst [vmem:[#allocation122_spill] sm:$0xff] %v3035_v48 }
  0xda   : > { %5034 = vst [vmem:[#allocation22_spill] sm:$0xff] %v3025_v42  ;;  %5035 = vst [vmem:[#allocation121_spill] sm:$0xff] %v3033_v61  ;;  %v432_v43 = vld [vmem:[%s2260_s19 + $0x4f8] sm:$0xff]  ;;  %v433_v27 = vld [vmem:[%s2260_s19 + $0x500] sm:$0xff]  ;;  %v3049_v2 = vsub.f32 %v417_v49, %v582_v6  ;;  %v3051_v33 = vsub.f32 %v418_v29, %v583_v34  ;;  %v3053_v18 = vsub.f32 %v419_v19, %v584_v38 }
  0xdb   : > { %5037 = vst [vmem:[#allocation123_spill] sm:$0xff] %v3037_v25  ;;  %5038 = vst [vmem:[#allocation124_spill] sm:$0xff] %v3041_v26  ;;  %v434_v42 = vld [vmem:[%s2260_s19 + $0x508] sm:$0xff]  ;;  %v586_v58 = vld [vmem:[%s2266_s18 + $0x4a0] sm:$0xff] }
  0xdc   : > { %v585_v9 = vld [vmem:[%s2266_s18 + $0x498] sm:$0xff]  ;;  %v587_v36 = vld [vmem:[%s2266_s18 + $0x4a8] sm:$0xff]  ;;  %5039 = vst [vmem:[#allocation125_spill] sm:$0xff] %v3051_v33  ;;  %5040 = vst [vmem:[#allocation126_spill] sm:$0xff] %v3053_v18  ;;  %v3067_v6 = vsub.f32 %v421_v46, %v586_v58 }
  0xdd   : > { %v5041_v16 = vld [vmem:[#allocation24_spill] sm:$0xff]  ;;  %v437_v25 = vld [vmem:[%s2260_s19 + $0x520] sm:$0xff]  ;;  %v589_v61 = vld [vmem:[%s2266_s18 + $0x4b8] sm:$0xff]  ;;  %v3065_v49 = vsub.f32 %v420_v59, %v585_v9  ;;  %v3069_v29 = vsub.f32 %v422_v53, %v587_v36  ;;  %v3086_v53 = vmul.f32 %v2537_v12, %v2537_v12 }
  0xde   : > { %v3057_v54 = vmul.f32 %v5041_v16, %v5041_v16  ;;  %v435_v62 = vld [vmem:[%s2260_s19 + $0x510] sm:$0xff]  ;;  %v436_v26 = vld [vmem:[%s2260_s19 + $0x518] sm:$0xff]  ;;  %v588_v48 = vld [vmem:[%s2266_s18 + $0x4b0] sm:$0xff]  ;;  %v3080_v33 = vsub.f32 %v424_v45, %v589_v61 }
  0xdf   : > { %v590_v60 = vld [vmem:[%s2266_s18 + $0x4c0] sm:$0xff]  ;;  %v5043_v19 = vld [vmem:[#allocation25_spill] sm:$0xff]  ;;  %v3078_v18 = vsub.f32 %v423_v7, %v588_v48  ;;  %5046 = vst [vmem:[#allocation128_spill] sm:$0xff] %v3086_v53 }
  0xe0   : > { %5042 = vst [vmem:[#allocation24_spill] sm:$0xff] %v3057_v54  ;;  %v3073_v34 = vmul.f32 %v5043_v19, %v5043_v19  ;;  %v591_v38 = vld [vmem:[%s2266_s18 + $0x4c8] sm:$0xff]  ;;  %v592_v16 = vld [vmem:[%s2266_s18 + $0x4d0] sm:$0xff]  ;;  %v593_v54 = vld [vmem:[%s2266_s18 + $0x4d8] sm:$0xff]  ;;  %v3082_v59 = vsub.f32 %v425_v0, %v590_v60 }
  0xe1   : > { %v594_v46 = vld [vmem:[%s2266_s18 + $0x4e0] sm:$0xff]  ;;  %v595_v58 = vld [vmem:[%s2266_s18 + $0x4e8] sm:$0xff]  ;;  %v596_v9 = vld [vmem:[%s2266_s18 + $0x4f0] sm:$0xff]  ;;  %v3091_v36 = vsub.f32 %v426_v17, %v591_v38  ;;  %v3093_v19 = vsub.f32 %v427_v24, %v592_v16  ;;  %v3095_v7 = vsub.f32 %v428_v28, %v593_v54 }
  0xe2   : > { %5044 = vst [vmem:[#allocation25_spill] sm:$0xff] %v3073_v34  ;;  %5045 = vst [vmem:[#allocation127_spill] sm:$0xff] %v3082_v59  ;;  %v5047_v45 = vld [vmem:[#allocation27_spill] sm:$0xff]  ;;  %v599_v48 = vld [vmem:[%s2266_s18 + $0x508] sm:$0xff]  ;;  %v3104_v12 = vsub.f32 %v429_v52, %v594_v46  ;;  %v3106_v53 = vsub.f32 %v430_v37, %v595_v58  ;;  %v3108_v34 = vsub.f32 %v431_v8, %v596_v9 }
  0xe3   : > { %v3099_v0 = vmul.f32 %v5047_v45, %v5047_v45  ;;  %v597_v60 = vld [vmem:[%s2266_s18 + $0x4f8] sm:$0xff]  ;;  %v598_v61 = vld [vmem:[%s2266_s18 + $0x500] sm:$0xff]  ;;  %v600_v24 = vld [vmem:[%s2266_s18 + $0x510] sm:$0xff]  ;;  %v3121_v45 = vsub.f32 %v434_v42, %v599_v48  ;;  %v3125_v52 = vmul.f32 %v2553_v35, %v2553_v35  ;;  %v3143_v42 = vmul.f32 %v2569_v10, %v2569_v10 }
  0xe4   : > { %v5048_v59 = vld [vmem:[#allocation28_spill] sm:$0xff]  ;;  %v601_v28 = vld [vmem:[%s2266_s18 + $0x518] sm:$0xff]  ;;  %v3117_v38 = vsub.f32 %v432_v43, %v597_v60  ;;  %v3119_v16 = vsub.f32 %v433_v27, %v598_v61  ;;  %v3127_v37 = vsub.f32 %v435_v62, %v600_v24  ;;  %v5051_v35 = vld [vmem:[#allocation33_spill] sm:$0xff]  ;;  %v3155_v9 = vmul.f32 %v2585_v63, %v2585_v63 }
  0xe5   : > { %v3112_v17 = vmul.f32 %v5048_v59, %v5048_v59  ;;  %v602_v54 = vld [vmem:[%s2266_s18 + $0x520] sm:$0xff]  ;;  %v3129_v8 = vsub.f32 %v436_v26, %v601_v28  ;;  %v5049_v59 = vld [vmem:[#allocation30_spill] sm:$0xff]  ;;  %v3147_v62 = vmul.f32 %v5051_v35, %v5051_v35  ;;  %v5054_v48 = vld [vmem:[#allocation37_spill] sm:$0xff]  ;;  %v3167_v24 = vmul.f32 %v2601_v20, %v2601_v20 }
  0xe6   : > { %v3131_v46 = vsub.f32 %v437_v25, %v602_v54  ;;  %v3135_v58 = vmul.f32 %v5049_v59, %v5049_v59  ;;  %v5050_v43 = vld [vmem:[#allocation31_spill] sm:$0xff]  ;;  %v5052_v26 = vld [vmem:[#allocation34_spill] sm:$0xff]  ;;  %v5053_v60 = vld [vmem:[#allocation36_spill] sm:$0xff]  ;;  %v3163_v10 = vmul.f32 %v5054_v48, %v5054_v48  ;;  %v3191_v48 = vmul.f32 %v2633_v1, %v2633_v1 }
  0xe7   : > { %v3139_v27 = vmul.f32 %v5050_v43, %v5050_v43  ;;  %v3151_v25 = vmul.f32 %v5052_v26, %v5052_v26  ;;  %v3159_v61 = vmul.f32 %v5053_v60, %v5053_v60  ;;  %v5055_v28 = vld [vmem:[#allocation39_spill] sm:$0xff]  ;;  %v5056_v59 = vld [vmem:[#allocation40_spill] sm:$0xff]  ;;  %v3179_v43 = vmul.f32 %v2617_v44, %v2617_v44  ;;  %v5058_v35 = vld [vmem:[#allocation42_spill] sm:$0xff] }
  0xe8   : > { %v3171_v54 = vmul.f32 %v5055_v28, %v5055_v28  ;;  %v3175_v63 = vmul.f32 %v5056_v59, %v5056_v59  ;;  %v3183_v26 = vmul.f32 %v5058_v35, %v5058_v35  ;;  %v5060_v60 = vld [vmem:[#allocation43_spill] sm:$0xff]  ;;  %v5062_v28 = vld [vmem:[#allocation45_spill] sm:$0xff]  ;;  %v3203_v35 = vmul.f32 %v2649_v47, %v2649_v47 }
  0xe9   : > { %v3187_v20 = vmul.f32 %v5060_v60, %v5060_v60  ;;  %v3195_v59 = vmul.f32 %v5062_v28, %v5062_v28  ;;  %v3215_v28 = vmul.f32 %v2665_v55, %v2665_v55 }
  0xea   : > { %5057 = vst [vmem:[#allocation27_spill] sm:$0xff] %v3175_v63  ;;  %5059 = vst [vmem:[#allocation28_spill] sm:$0xff] %v3183_v26  ;;  %v5064_v63 = vld [vmem:[#allocation46_spill] sm:$0xff]  ;;  %v5066_v26 = vld [vmem:[#allocation48_spill] sm:$0xff] }
  0xeb   : > { %5061 = vst [vmem:[#allocation30_spill] sm:$0xff] %v3187_v20  ;;  %5063 = vst [vmem:[#allocation31_spill] sm:$0xff] %v3195_v59  ;;  %v3199_v44 = vmul.f32 %v5064_v63, %v5064_v63  ;;  %v3207_v60 = vmul.f32 %v5066_v26, %v5066_v26  ;;  %v5068_v20 = vld [vmem:[#allocation49_spill] sm:$0xff]  ;;  %v5070_v59 = vld [vmem:[#allocation51_spill] sm:$0xff]  ;;  %v3227_v26 = vmul.f32 %v2681_v56, %v2681_v56 }
  0xec   : > { %v3211_v1 = vmul.f32 %v5068_v20, %v5068_v20  ;;  %v3219_v63 = vmul.f32 %v5070_v59, %v5070_v59  ;;  %v3239_v59 = vmul.f32 %v2697_v57, %v2697_v57 }
  0xed   : > { %5065 = vst [vmem:[#allocation33_spill] sm:$0xff] %v3199_v44  ;;  %5067 = vst [vmem:[#allocation34_spill] sm:$0xff] %v3207_v60  ;;  %v5072_v44 = vld [vmem:[#allocation52_spill] sm:$0xff]  ;;  %v5074_v60 = vld [vmem:[#allocation54_spill] sm:$0xff] }
  0xee   : > { %5069 = vst [vmem:[#allocation36_spill] sm:$0xff] %v3211_v1  ;;  %5071 = vst [vmem:[#allocation37_spill] sm:$0xff] %v3219_v63  ;;  %v3223_v47 = vmul.f32 %v5072_v44, %v5072_v44  ;;  %v3231_v20 = vmul.f32 %v5074_v60, %v5074_v60  ;;  %v5076_v1 = vld [vmem:[#allocation55_spill] sm:$0xff]  ;;  %v5079_v63 = vld [vmem:[#allocation57_spill] sm:$0xff]  ;;  %v3251_v60 = vmul.f32 %v2713_v3, %v2713_v3 }
  0xef   : > { %v3235_v55 = vmul.f32 %v5076_v1, %v5076_v1  ;;  %5078 = vst [vmem:[#allocation43_spill] sm:$0xff] %v3239_v59  ;;  %v3243_v44 = vmul.f32 %v5079_v63, %v5079_v63  ;;  %v3263_v63 = vmul.f32 %v2729_v4, %v2729_v4 }
  0xf0   : > { %5073 = vst [vmem:[#allocation39_spill] sm:$0xff] %v3223_v47  ;;  %5075 = vst [vmem:[#allocation40_spill] sm:$0xff] %v3231_v20  ;;  %v5081_v47 = vld [vmem:[#allocation58_spill] sm:$0xff]  ;;  %v5084_v20 = vld [vmem:[#allocation60_spill] sm:$0xff] }
  0xf1   : > { %5077 = vst [vmem:[#allocation42_spill] sm:$0xff] %v3235_v55  ;;  %5080 = vst [vmem:[#allocation45_spill] sm:$0xff] %v3243_v44  ;;  %v3247_v56 = vmul.f32 %v5081_v47, %v5081_v47  ;;  %v3255_v1 = vmul.f32 %v5084_v20, %v5084_v20  ;;  %v5086_v55 = vld [vmem:[#allocation61_spill] sm:$0xff]  ;;  %v5089_v44 = vld [vmem:[#allocation63_spill] sm:$0xff]  ;;  %v3275_v20 = vmul.f32 %v2745_v5, %v2745_v5 }
  0xf2   : > { %5083 = vst [vmem:[#allocation48_spill] sm:$0xff] %v3251_v60  ;;  %v3259_v57 = vmul.f32 %v5086_v55, %v5086_v55  ;;  %5088 = vst [vmem:[#allocation52_spill] sm:$0xff] %v3263_v63  ;;  %v3267_v47 = vmul.f32 %v5089_v44, %v5089_v44  ;;  %v3287_v44 = vmul.f32 %v2761_v13, %v2761_v13 }
  0xf3   : > { %5082 = vst [vmem:[#allocation46_spill] sm:$0xff] %v3247_v56  ;;  %5085 = vst [vmem:[#allocation49_spill] sm:$0xff] %v3255_v1  ;;  %v5091_v56 = vld [vmem:[#allocation64_spill] sm:$0xff]  ;;  %v5094_v1 = vld [vmem:[#allocation66_spill] sm:$0xff] }
  0xf4   : > { %5087 = vst [vmem:[#allocation51_spill] sm:$0xff] %v3259_v57  ;;  %5090 = vst [vmem:[#allocation54_spill] sm:$0xff] %v3267_v47  ;;  %v3271_v3 = vmul.f32 %v5091_v56, %v5091_v56  ;;  %v3279_v55 = vmul.f32 %v5094_v1, %v5094_v1  ;;  %v5096_v57 = vld [vmem:[#allocation67_spill] sm:$0xff]  ;;  %v5099_v47 = vld [vmem:[#allocation69_spill] sm:$0xff]  ;;  %v3299_v1 = vmul.f32 %v2777_v14, %v2777_v14 }
  0xf5   : > { %5093 = vst [vmem:[#allocation57_spill] sm:$0xff] %v3275_v20  ;;  %v3283_v4 = vmul.f32 %v5096_v57, %v5096_v57  ;;  %5098 = vst [vmem:[#allocation61_spill] sm:$0xff] %v3287_v44  ;;  %v3291_v56 = vmul.f32 %v5099_v47, %v5099_v47  ;;  %v3311_v47 = vmul.f32 %v2793_v15, %v2793_v15 }
  0xf6   : > { %5092 = vst [vmem:[#allocation55_spill] sm:$0xff] %v3271_v3  ;;  %5095 = vst [vmem:[#allocation58_spill] sm:$0xff] %v3279_v55  ;;  %v5101_v3 = vld [vmem:[#allocation70_spill] sm:$0xff]  ;;  %v5104_v55 = vld [vmem:[#allocation72_spill] sm:$0xff] }
  0xf7   : > { %5097 = vst [vmem:[#allocation60_spill] sm:$0xff] %v3283_v4  ;;  %5100 = vst [vmem:[#allocation63_spill] sm:$0xff] %v3291_v56  ;;  %v3295_v5 = vmul.f32 %v5101_v3, %v5101_v3  ;;  %v3303_v57 = vmul.f32 %v5104_v55, %v5104_v55  ;;  %v5106_v4 = vld [vmem:[#allocation73_spill] sm:$0xff]  ;;  %v5109_v56 = vld [vmem:[#allocation75_spill] sm:$0xff]  ;;  %v3323_v55 = vmul.f32 %v2809_v21, %v2809_v21 }
  0xf8   : > { %5103 = vst [vmem:[#allocation66_spill] sm:$0xff] %v3299_v1  ;;  %v3307_v13 = vmul.f32 %v5106_v4, %v5106_v4  ;;  %5108 = vst [vmem:[#allocation70_spill] sm:$0xff] %v3311_v47  ;;  %v3315_v3 = vmul.f32 %v5109_v56, %v5109_v56  ;;  %v3335_v56 = vmul.f32 %v2825_v22, %v2825_v22 }
  0xf9   : > { %5102 = vst [vmem:[#allocation64_spill] sm:$0xff] %v3295_v5  ;;  %5105 = vst [vmem:[#allocation67_spill] sm:$0xff] %v3303_v57  ;;  %v5111_v5 = vld [vmem:[#allocation76_spill] sm:$0xff]  ;;  %v5114_v57 = vld [vmem:[#allocation78_spill] sm:$0xff] }
  0xfa   : > { %5107 = vst [vmem:[#allocation69_spill] sm:$0xff] %v3307_v13  ;;  %5110 = vst [vmem:[#allocation72_spill] sm:$0xff] %v3315_v3  ;;  %v3319_v14 = vmul.f32 %v5111_v5, %v5111_v5  ;;  %v3327_v4 = vmul.f32 %v5114_v57, %v5114_v57  ;;  %v5116_v13 = vld [vmem:[#allocation79_spill] sm:$0xff]  ;;  %v5119_v3 = vld [vmem:[#allocation81_spill] sm:$0xff]  ;;  %v3347_v57 = vmul.f32 %v2841_v23, %v2841_v23 }
  0xfb   : > { %5113 = vst [vmem:[#allocation75_spill] sm:$0xff] %v3323_v55  ;;  %v3331_v15 = vmul.f32 %v5116_v13, %v5116_v13  ;;  %5118 = vst [vmem:[#allocation79_spill] sm:$0xff] %v3335_v56  ;;  %v3339_v5 = vmul.f32 %v5119_v3, %v5119_v3  ;;  %v3359_v3 = vmul.f32 %v2857_v30, %v2857_v30 }
  0xfc   : > { %5112 = vst [vmem:[#allocation73_spill] sm:$0xff] %v3319_v14  ;;  %5115 = vst [vmem:[#allocation76_spill] sm:$0xff] %v3327_v4  ;;  %v5121_v14 = vld [vmem:[#allocation82_spill] sm:$0xff]  ;;  %v5124_v4 = vld [vmem:[#allocation84_spill] sm:$0xff] }
  0xfd   : > { %5117 = vst [vmem:[#allocation78_spill] sm:$0xff] %v3331_v15  ;;  %5120 = vst [vmem:[#allocation81_spill] sm:$0xff] %v3339_v5  ;;  %v3343_v21 = vmul.f32 %v5121_v14, %v5121_v14  ;;  %v3351_v13 = vmul.f32 %v5124_v4, %v5124_v4  ;;  %v5126_v15 = vld [vmem:[#allocation85_spill] sm:$0xff]  ;;  %v5129_v5 = vld [vmem:[#allocation87_spill] sm:$0xff]  ;;  %v3371_v4 = vmul.f32 %v2873_v31, %v2873_v31 }
  0xfe   : > { %5123 = vst [vmem:[#allocation129_spill] sm:$0xff] %v3347_v57  ;;  %v3355_v22 = vmul.f32 %v5126_v15, %v5126_v15  ;;  %5128 = vst [vmem:[#allocation130_spill] sm:$0xff] %v3359_v3  ;;  %v3363_v14 = vmul.f32 %v5129_v5, %v5129_v5  ;;  %v3383_v5 = vmul.f32 %v2889_v32, %v2889_v32 }
  0xff   : > { %5122 = vst [vmem:[#allocation82_spill] sm:$0xff] %v3343_v21  ;;  %5125 = vst [vmem:[#allocation84_spill] sm:$0xff] %v3351_v13  ;;  %v5131_v21 = vld [vmem:[#allocation88_spill] sm:$0xff]  ;;  %v5134_v13 = vld [vmem:[#allocation90_spill] sm:$0xff] }
 0x100   : > { %5127 = vst [vmem:[#allocation85_spill] sm:$0xff] %v3355_v22  ;;  %5130 = vst [vmem:[#allocation87_spill] sm:$0xff] %v3363_v14  ;;  %v3367_v23 = vmul.f32 %v5131_v21, %v5131_v21  ;;  %v3375_v15 = vmul.f32 %v5134_v13, %v5134_v13  ;;  %v5136_v22 = vld [vmem:[#allocation91_spill] sm:$0xff]  ;;  %v5139_v14 = vld [vmem:[#allocation93_spill] sm:$0xff]  ;;  %v3395_v13 = vmul.f32 %v2905_v39, %v2905_v39 }
 0x101   : > { %5133 = vst [vmem:[#allocation131_spill] sm:$0xff] %v3371_v4  ;;  %v3379_v30 = vmul.f32 %v5136_v22, %v5136_v22  ;;  %5138 = vst [vmem:[#allocation132_spill] sm:$0xff] %v3383_v5  ;;  %v3387_v21 = vmul.f32 %v5139_v14, %v5139_v14  ;;  %v3407_v14 = vmul.f32 %v2921_v40, %v2921_v40 }
 0x102   : > { %5132 = vst [vmem:[#allocation88_spill] sm:$0xff] %v3367_v23  ;;  %5135 = vst [vmem:[#allocation90_spill] sm:$0xff] %v3375_v15  ;;  %v5141_v23 = vld [vmem:[#allocation94_spill] sm:$0xff]  ;;  %v5144_v15 = vld [vmem:[#allocation96_spill] sm:$0xff] }
 0x103   : > { %5137 = vst [vmem:[#allocation91_spill] sm:$0xff] %v3379_v30  ;;  %5140 = vst [vmem:[#allocation93_spill] sm:$0xff] %v3387_v21  ;;  %v3391_v31 = vmul.f32 %v5141_v23, %v5141_v23  ;;  %v3399_v22 = vmul.f32 %v5144_v15, %v5144_v15  ;;  %v5146_v30 = vld [vmem:[#allocation97_spill] sm:$0xff]  ;;  %v5149_v21 = vld [vmem:[#allocation99_spill] sm:$0xff]  ;;  %v3419_v15 = vmul.f32 %v2937_v41, %v2937_v41 }
 0x104   : > { %5143 = vst [vmem:[#allocation133_spill] sm:$0xff] %v3395_v13  ;;  %v3403_v32 = vmul.f32 %v5146_v30, %v5146_v30  ;;  %5148 = vst [vmem:[#allocation134_spill] sm:$0xff] %v3407_v14  ;;  %v3411_v23 = vmul.f32 %v5149_v21, %v5149_v21  ;;  %v3431_v21 = vmul.f32 %v2953_v11, %v2953_v11 }
 0x105   : > { %5142 = vst [vmem:[#allocation94_spill] sm:$0xff] %v3391_v31  ;;  %5145 = vst [vmem:[#allocation96_spill] sm:$0xff] %v3399_v22  ;;  %v5151_v31 = vld [vmem:[#allocation100_spill] sm:$0xff]  ;;  %v5154_v22 = vld [vmem:[#allocation102_spill] sm:$0xff] }
 0x106   : > { %5147 = vst [vmem:[#allocation97_spill] sm:$0xff] %v3403_v32  ;;  %5150 = vst [vmem:[#allocation99_spill] sm:$0xff] %v3411_v23  ;;  %v3415_v39 = vmul.f32 %v5151_v31, %v5151_v31  ;;  %v3423_v30 = vmul.f32 %v5154_v22, %v5154_v22  ;;  %v5156_v32 = vld [vmem:[#allocation103_spill] sm:$0xff]  ;;  %v5159_v23 = vld [vmem:[#allocation105_spill] sm:$0xff]  ;;  %v3443_v22 = vmul.f32 %v2969_v50, %v2969_v50 }
 0x107   : > { %5153 = vst [vmem:[#allocation135_spill] sm:$0xff] %v3419_v15  ;;  %v3427_v40 = vmul.f32 %v5156_v32, %v5156_v32  ;;  %5158 = vst [vmem:[#allocation136_spill] sm:$0xff] %v3431_v21  ;;  %v3435_v31 = vmul.f32 %v5159_v23, %v5159_v23  ;;  %v3455_v23 = vmul.f32 %v2985_v51, %v2985_v51 }
 0x108   : > { %5152 = vst [vmem:[#allocation100_spill] sm:$0xff] %v3415_v39  ;;  %5155 = vst [vmem:[#allocation102_spill] sm:$0xff] %v3423_v30  ;;  %v5161_v39 = vld [vmem:[#allocation106_spill] sm:$0xff]  ;;  %v5164_v30 = vld [vmem:[#allocation108_spill] sm:$0xff] }
 0x109   : > { %5157 = vst [vmem:[#allocation103_spill] sm:$0xff] %v3427_v40  ;;  %5160 = vst [vmem:[#allocation105_spill] sm:$0xff] %v3435_v31  ;;  %v3439_v41 = vmul.f32 %v5161_v39, %v5161_v39  ;;  %v3447_v32 = vmul.f32 %v5164_v30, %v5164_v30  ;;  %v5166_v40 = vld [vmem:[#allocation109_spill] sm:$0xff]  ;;  %v5169_v31 = vld [vmem:[#allocation111_spill] sm:$0xff] }
 0x10a   : > { %5163 = vst [vmem:[#allocation137_spill] sm:$0xff] %v3443_v22  ;;  %v3451_v11 = vmul.f32 %v5166_v40, %v5166_v40  ;;  %5168 = vst [vmem:[#allocation138_spill] sm:$0xff] %v3455_v23  ;;  %v3459_v39 = vmul.f32 %v5169_v31, %v5169_v31  ;;  %v5173_v22 = vld [vmem:[#allocation114_spill] sm:$0xff] }
 0x10b   : > { %5162 = vst [vmem:[#allocation106_spill] sm:$0xff] %v3439_v41  ;;  %5165 = vst [vmem:[#allocation108_spill] sm:$0xff] %v3447_v32  ;;  %v5171_v41 = vld [vmem:[#allocation112_spill] sm:$0xff]  ;;  %v3467_v30 = vmul.f32 %v5173_v22, %v5173_v22  ;;  %v5175_v32 = vld [vmem:[#allocation115_spill] sm:$0xff] }
 0x10c   : > { %5167 = vst [vmem:[#allocation109_spill] sm:$0xff] %v3451_v11  ;;  %5170 = vst [vmem:[#allocation111_spill] sm:$0xff] %v3459_v39  ;;  %v3463_v50 = vmul.f32 %v5171_v41, %v5171_v41  ;;  %v3471_v40 = vmul.f32 %v5175_v32, %v5175_v32  ;;  %v5177_v11 = vld [vmem:[#allocation116_spill] sm:$0xff]  ;;  %v5179_v23 = vld [vmem:[#allocation118_spill] sm:$0xff] }
 0x10d   : > { %5174 = vst [vmem:[#allocation114_spill] sm:$0xff] %v3467_v30  ;;  %v3475_v51 = vmul.f32 %v5177_v11, %v5177_v11  ;;  %v3479_v31 = vmul.f32 %v5179_v23, %v5179_v23  ;;  %v5181_v39 = vld [vmem:[#allocation119_spill] sm:$0xff]  ;;  %v5185_v30 = vld [vmem:[#allocation121_spill] sm:$0xff] }
 0x10e   : > { %5172 = vst [vmem:[#allocation112_spill] sm:$0xff] %v3463_v50  ;;  %5176 = vst [vmem:[#allocation115_spill] sm:$0xff] %v3471_v40  ;;  %v3483_v41 = vmul.f32 %v5181_v39, %v5181_v39  ;;  %v5183_v50 = vld [vmem:[#allocation120_spill] sm:$0xff]  ;;  %v3491_v32 = vmul.f32 %v5185_v30, %v5185_v30  ;;  %v5187_v40 = vld [vmem:[#allocation122_spill] sm:$0xff]  ;;  %v3503_v39 = vmul.f32 %v3049_v2, %v3049_v2 }
 0x10f   : > { %5178 = vst [vmem:[#allocation116_spill] sm:$0xff] %v3475_v51  ;;  %5180 = vst [vmem:[#allocation118_spill] sm:$0xff] %v3479_v31  ;;  %v3487_v22 = vmul.f32 %v5183_v50, %v5183_v50  ;;  %v3495_v11 = vmul.f32 %v5187_v40, %v5187_v40  ;;  %v5189_v51 = vld [vmem:[#allocation123_spill] sm:$0xff]  ;;  %v3515_v40 = vmul.f32 %v3065_v49, %v3065_v49 }
 0x110   : > { %5182 = vst [vmem:[#allocation119_spill] sm:$0xff] %v3483_v41  ;;  %5186 = vst [vmem:[#allocation121_spill] sm:$0xff] %v3491_v32  ;;  %v3499_v23 = vmul.f32 %v5189_v51, %v5189_v51  ;;  %v5192_v41 = vld [vmem:[#allocation125_spill] sm:$0xff]  ;;  %v3519_v51 = vmul.f32 %v3067_v6, %v3067_v6  ;;  %v3523_v2 = vmul.f32 %v3069_v29, %v3069_v29 }
 0x111   : > { %5184 = vst [vmem:[#allocation120_spill] sm:$0xff] %v3487_v22  ;;  %5188 = vst [vmem:[#allocation122_spill] sm:$0xff] %v3495_v11  ;;  %v3507_v50 = vmul.f32 %v5192_v41, %v5192_v41  ;;  %v5194_v22 = vld [vmem:[#allocation126_spill] sm:$0xff]  ;;  %v3527_v41 = vmul.f32 %v3078_v18, %v3078_v18  ;;  %v3539_v6 = vmul.f32 %v3091_v36, %v3091_v36 }
 0x112   : > { %5190 = vst [vmem:[#allocation123_spill] sm:$0xff] %v3499_v23  ;;  %5191 = vst [vmem:[#allocation139_spill] sm:$0xff] %v3503_v39  ;;  %v3511_v30 = vmul.f32 %v5194_v22, %v5194_v22  ;;  %v3531_v22 = vmul.f32 %v3080_v33, %v3080_v33  ;;  %v3543_v29 = vmul.f32 %v3093_v19, %v3093_v19 }
 0x113   : > { %5193 = vst [vmem:[#allocation125_spill] sm:$0xff] %v3507_v50  ;;  %5196 = vst [vmem:[#allocation140_spill] sm:$0xff] %v3515_v40  ;;  %v3547_v18 = vmul.f32 %v3095_v7, %v3095_v7  ;;  %v3551_v33 = vmul.f32 %v3104_v12, %v3104_v12  ;;  %v3559_v36 = vmul.f32 %v3108_v34, %v3108_v34 }
 0x114   : > { %5195 = vst [vmem:[#allocation126_spill] sm:$0xff] %v3511_v30  ;;  %5197 = vst [vmem:[#allocation141_spill] sm:$0xff] %v3519_v51  ;;  %v5201_v30 = vld [vmem:[#allocation127_spill] sm:$0xff]  ;;  %v3563_v19 = vmul.f32 %v3117_v38, %v3117_v38  ;;  %v3567_v7 = vmul.f32 %v3119_v16, %v3119_v16  ;;  %v3571_v12 = vmul.f32 %v3121_v45, %v3121_v45 }
 0x115   : > { %5198 = vst [vmem:[#allocation142_spill] sm:$0xff] %v3523_v2  ;;  %5199 = vst [vmem:[#allocation143_spill] sm:$0xff] %v3527_v41  ;;  %v3535_v49 = vmul.f32 %v5201_v30, %v5201_v30  ;;  %v3555_v30 = vmul.f32 %v3106_v53, %v3106_v53  ;;  %v3575_v53 = vmul.f32 %v3127_v37, %v3127_v37 }
 0x116   : > { %5200 = vst [vmem:[#allocation144_spill] sm:$0xff] %v3531_v22  ;;  %5203 = vst [vmem:[#allocation145_spill] sm:$0xff] %v3539_v6  ;;  %v3579_v34 = vmul.f32 %v3129_v8, %v3129_v8  ;;  %v3583_v38 = vmul.f32 %v3131_v46, %v3131_v46 }
 0x117   : > { %5202 = vst [vmem:[#allocation127_spill] sm:$0xff] %v3535_v49  ;;  %5204 = vst [vmem:[#allocation146_spill] sm:$0xff] %v3543_v29 }
 0x118   : > { %5205 = vst [vmem:[#allocation147_spill] sm:$0xff] %v3547_v18  ;;  %5206 = vst [vmem:[#allocation148_spill] sm:$0xff] %v3551_v33  ;;  %937 = sbr.rel (%p1921_p8) target bundleno = 377 (0x179), region = 44 }
 0x119   : > { %5207 = vst [vmem:[#allocation149_spill] sm:$0xff] %v3555_v30  ;;  %5208 = vst [vmem:[#allocation150_spill] sm:$0xff] %v3559_v36 }
 0x11a   : > { %5209 = vst [vmem:[#allocation151_spill] sm:$0xff] %v3563_v19  ;;  %5210 = vst [vmem:[#allocation152_spill] sm:$0xff] %v3567_v7 }
 0x11b   : > { %5211 = vst [vmem:[#allocation153_spill] sm:$0xff] %v3571_v12  ;;  %5212 = vst [vmem:[#allocation154_spill] sm:$0xff] %v3575_v53 }
 0x11c   : > { %5213 = vst [vmem:[#allocation155_spill] sm:$0xff] %v3579_v34  ;;  %5214 = vst [vmem:[#allocation156_spill] sm:$0xff] %v3583_v38 }
 0x11d   : > { %v5215_v16 = vld [vmem:[#allocation10_spill] sm:$0xff]  ;;  %v5216_v7 = vld [vmem:[#allocation15_spill] sm:$0xff]  ;;  %v5218_v12 = vld [vmem:[#allocation16_spill] sm:$0xff]  ;;  %vm1091_vm1 = vcmask 687104  }
 0x11e   : > { %v939_v19 = vadd.f32 %v5216_v7, %v5215_v16  ;;  %v5217_v45 = vld [vmem:[#allocation11_spill] sm:$0xff]  ;;  %v5219_v30 = vld [vmem:[#allocation12_spill] sm:$0xff]  ;;  %v5220_v37 = vld [vmem:[#allocation17_spill] sm:$0xff] }
 0x11f   : > { %v977_v36 = vadd.f32 %v5218_v12, %v5217_v45  ;;  %v1015_v53 = vadd.f32 %v5220_v37, %v5219_v30  ;;  %v5221_v33 = vld [vmem:[#allocation13_spill] sm:$0xff]  ;;  %v5222_v18 = vld [vmem:[#allocation18_spill] sm:$0xff]  ;;  %v5223_v34 = vld [vmem:[#allocation20_spill] sm:$0xff] }
 0x120   : > { %v1053_v8 = vadd.f32 %v5222_v18, %v5221_v33  ;;  %v940_v29 = vadd.f32 %v939_v19, %v5223_v34  ;;  %v5224_v46 = vld [vmem:[#allocation21_spill] sm:$0xff]  ;;  %v5225_v6 = vld [vmem:[#allocation23_spill] sm:$0xff]  ;;  %v5226_v22 = vld [vmem:[#allocation26_spill] sm:$0xff] }
 0x121   : > { %v978_v38 = vadd.f32 %v977_v36, %v5224_v46  ;;  %v1016_v49 = vadd.f32 %v1015_v53, %v5225_v6  ;;  %v5227_v2 = vld [vmem:[#allocation14_spill] sm:$0xff]  ;;  %v5228_v16 = vld [vmem:[#allocation19_spill] sm:$0xff]  ;;  %v5229_v45 = vld [vmem:[#allocation29_spill] sm:$0xff] }
 0x122   : > { %v1054_v41 = vadd.f32 %v1053_v8, %v5226_v22  ;;  %v1092_v7 = vsel %vm1091_vm1, %v5227_v2, 0.0  ;;  %v1093_v12 = vsel %vm1091_vm1, %v5228_v16, 0.0  ;;  %v1095_v30 = vsel %vm1091_vm1, %v5229_v45, 0.0  ;;  %v5230_v37 = vld [vmem:[#allocation32_spill] sm:$0xff]  ;;  %v5231_v33 = vld [vmem:[#allocation35_spill] sm:$0xff]  ;;  %v5232_v19 = vld [vmem:[#allocation38_spill] sm:$0xff] }
 0x123   : > { %v941_v18 = vadd.f32 %v940_v29, %v5230_v37  ;;  %v979_v51 = vadd.f32 %v978_v38, %v5231_v33  ;;  %v1017_v34 = vadd.f32 %v1016_v49, %v5232_v19  ;;  %v5233_v36 = vld [vmem:[#allocation41_spill] sm:$0xff]  ;;  %v1094_v6 = vadd.f32 %v1093_v12, %v1092_v7  ;;  %v5234_v53 = vld [vmem:[#allocation44_spill] sm:$0xff]  ;;  %v5235_v8 = vld [vmem:[#allocation47_spill] sm:$0xff] }
 0x124   : > { %v1055_v46 = vadd.f32 %v1054_v41, %v5233_v36  ;;  %v1097_v22 = vsel %vm1091_vm1, %v5234_v53, 0.0  ;;  %v5236_v40 = vld [vmem:[#allocation50_spill] sm:$0xff]  ;;  %v5237_v16 = vld [vmem:[#allocation53_spill] sm:$0xff]  ;;  %v5238_v23 = vld [vmem:[#allocation56_spill] sm:$0xff] }
 0x125   : > { %v942_v2 = vadd.f32 %v941_v18, %v5235_v8  ;;  %v980_v50 = vadd.f32 %v979_v51, %v5236_v40  ;;  %v1018_v39 = vadd.f32 %v1017_v34, %v5237_v16  ;;  %v1096_v11 = vadd.f32 %v1095_v30, %v1094_v6  ;;  %v5239_v29 = vld [vmem:[#allocation59_spill] sm:$0xff]  ;;  %v5240_v37 = vld [vmem:[#allocation62_spill] sm:$0xff]  ;;  %v5241_v33 = vld [vmem:[#allocation65_spill] sm:$0xff] }
 0x126   : > { %v1056_v45 = vadd.f32 %v1055_v46, %v5238_v23  ;;  %v1099_v38 = vsel %vm1091_vm1, %v5239_v29, 0.0  ;;  %v5242_v7 = vld [vmem:[#allocation68_spill] sm:$0xff]  ;;  %v5243_v19 = vld [vmem:[#allocation71_spill] sm:$0xff]  ;;  %v5244_v18 = vld [vmem:[#allocation74_spill] sm:$0xff] }
 0x127   : > { %v943_v49 = vadd.f32 %v942_v2, %v5240_v37  ;;  %v981_v41 = vadd.f32 %v980_v50, %v5241_v33  ;;  %v1019_v12 = vadd.f32 %v1018_v39, %v5242_v7  ;;  %v1098_v53 = vadd.f32 %v1097_v22, %v1096_v11  ;;  %v5245_v51 = vld [vmem:[#allocation77_spill] sm:$0xff]  ;;  %v5246_v8 = vld [vmem:[#allocation80_spill] sm:$0xff]  ;;  %v5247_v30 = vld [vmem:[#allocation83_spill] sm:$0xff] }
 0x128   : > { %v1057_v36 = vadd.f32 %v1056_v45, %v5243_v19  ;;  %v1101_v40 = vsel %vm1091_vm1, %v5244_v18, 0.0  ;;  %v5248_v6 = vld [vmem:[#allocation86_spill] sm:$0xff]  ;;  %v5249_v2 = vld [vmem:[#allocation89_spill] sm:$0xff]  ;;  %v5250_v37 = vld [vmem:[#allocation92_spill] sm:$0xff] }
 0x129   : > { %v944_v34 = vadd.f32 %v943_v49, %v5245_v51  ;;  %v982_v23 = vadd.f32 %v981_v41, %v5246_v8  ;;  %v1020_v46 = vadd.f32 %v1019_v12, %v5247_v30  ;;  %v1100_v29 = vadd.f32 %v1099_v38, %v1098_v53  ;;  %v5251_v33 = vld [vmem:[#allocation95_spill] sm:$0xff]  ;;  %v5252_v11 = vld [vmem:[#allocation98_spill] sm:$0xff]  ;;  %v5253_v7 = vld [vmem:[#allocation101_spill] sm:$0xff] }
 0x12a   : > { %v1058_v16 = vadd.f32 %v1057_v36, %v5248_v6  ;;  %v1103_v50 = vsel %vm1091_vm1, %v5249_v2, 0.0  ;;  %v5254_v49 = vld [vmem:[#allocation104_spill] sm:$0xff]  ;;  %v5255_v51 = vld [vmem:[#allocation107_spill] sm:$0xff]  ;;  %v5256_v8 = vld [vmem:[#allocation110_spill] sm:$0xff] }
 0x12b   : > { %v945_v39 = vadd.f32 %v944_v34, %v5250_v37  ;;  %v983_v45 = vadd.f32 %v982_v23, %v5251_v33  ;;  %v1021_v22 = vadd.f32 %v1020_v46, %v5252_v11  ;;  %v1102_v18 = vadd.f32 %v1101_v40, %v1100_v29  ;;  %v5257_v38 = vld [vmem:[#allocation113_spill] sm:$0xff]  ;;  %v5259_v34 = vld [vmem:[#allocation22_spill] sm:$0xff]  ;;  %v5260_v37 = vld [vmem:[#allocation124_spill] sm:$0xff] }
 0x12c   : > { %v1059_v19 = vadd.f32 %v1058_v16, %v5253_v7  ;;  %v1105_v41 = vsel %vm1091_vm1, %v5254_v49, 0.0  ;;  %v5258_v30 = vld [vmem:[#allocation117_spill] sm:$0xff]  ;;  %v1107_v23 = vsel %vm1091_vm1, %v5259_v34, 0.0  ;;  %v5261_v33 = vld [vmem:[#allocation24_spill] sm:$0xff] }
 0x12d   : > { %v946_v12 = vadd.f32 %v945_v39, %v5255_v51  ;;  %v984_v36 = vadd.f32 %v983_v45, %v5256_v8  ;;  %v1022_v53 = vadd.f32 %v1021_v22, %v5257_v38  ;;  %v1104_v2 = vadd.f32 %v1103_v50, %v1102_v18  ;;  %v5262_v40 = vld [vmem:[#allocation25_spill] sm:$0xff]  ;;  %v5263_v11 = vld [vmem:[#allocation128_spill] sm:$0xff] }
 0x12e   : > { %v1060_v6 = vadd.f32 %v1059_v19, %v5258_v30  ;;  %v1109_v39 = vsel %vm1091_vm1, %v3099_v0, 0.0  ;;  %v1111_v51 = vsel %vm1091_vm1, %v3143_v42, 0.0 }
 0x12f   : > { %v947_v46 = vadd.f32 %v946_v12, %v5260_v37  ;;  %v985_v16 = vadd.f32 %v984_v36, %v5261_v33  ;;  %v1023_v29 = vadd.f32 %v1022_v53, %v5262_v40  ;;  %v1106_v49 = vadd.f32 %v1105_v41, %v1104_v2  ;;  %v5264_v2 = vld [vmem:[#allocation27_spill] sm:$0xff] }
 0x130   : > { %v1061_v7 = vadd.f32 %v1060_v6, %v5263_v11  ;;  %v1113_v53 = vsel %vm1091_vm1, %v3163_v10, 0.0  ;;  %v5267_v11 = vld [vmem:[#allocation31_spill] sm:$0xff] }
 0x131   : > { %v948_v45 = vadd.f32 %v947_v46, %v3112_v17  ;;  %v986_v22 = vadd.f32 %v985_v16, %v3125_v52  ;;  %v1024_v50 = vadd.f32 %v1023_v29, %v3135_v58  ;;  %v1108_v18 = vadd.f32 %v1107_v23, %v1106_v49  ;;  %v5265_v46 = vld [vmem:[#allocation28_spill] sm:$0xff]  ;;  %v5266_v16 = vld [vmem:[#allocation30_spill] sm:$0xff]  ;;  %v5268_v49 = vld [vmem:[#allocation33_spill] sm:$0xff] }
 0x132   : > { %v1062_v19 = vadd.f32 %v1061_v7, %v3139_v27  ;;  %v1115_v33 = vsel %vm1091_vm1, %v5265_v46, 0.0 }
 0x133   : > { %v949_v12 = vadd.f32 %v948_v45, %v3147_v62  ;;  %v987_v8 = vadd.f32 %v986_v22, %v3151_v25  ;;  %v1025_v41 = vadd.f32 %v1024_v50, %v3155_v9  ;;  %v1110_v38 = vadd.f32 %v1109_v39, %v1108_v18  ;;  %v5269_v50 = vld [vmem:[#allocation34_spill] sm:$0xff]  ;;  %v5270_v18 = vld [vmem:[#allocation36_spill] sm:$0xff] }
 0x134   : > { %v1063_v36 = vadd.f32 %v1062_v19, %v3159_v61  ;;  %v1117_v22 = vsel %vm1091_vm1, %v3203_v35, 0.0 }
 0x135   : > { %v950_v30 = vadd.f32 %v949_v12, %v3167_v24  ;;  %v988_v6 = vadd.f32 %v987_v8, %v3171_v54  ;;  %v1026_v34 = vadd.f32 %v1025_v41, %v5264_v2  ;;  %v1112_v37 = vadd.f32 %v1111_v51, %v1110_v38  ;;  %v5271_v8 = vld [vmem:[#allocation37_spill] sm:$0xff]  ;;  %v5272_v38 = vld [vmem:[#allocation39_spill] sm:$0xff]  ;;  %v5273_v2 = vld [vmem:[#allocation40_spill] sm:$0xff] }
 0x136   : > { %v1064_v23 = vadd.f32 %v1063_v36, %v3179_v43 }
 0x137   : > { %v951_v40 = vadd.f32 %v950_v30, %v5266_v16  ;;  %v989_v29 = vadd.f32 %v988_v6, %v3191_v48  ;;  %v1027_v7 = vadd.f32 %v1026_v34, %v5267_v11  ;;  %v1114_v45 = vadd.f32 %v1113_v53, %v1112_v37  ;;  %v5274_v53 = vld [vmem:[#allocation42_spill] sm:$0xff]  ;;  %v5275_v16 = vld [vmem:[#allocation45_spill] sm:$0xff] }
 0x138   : > { %v1065_v39 = vadd.f32 %v1064_v23, %v5268_v49  ;;  %v1119_v30 = vsel %vm1091_vm1, %v5272_v38, 0.0 }
 0x139   : > { %v952_v19 = vadd.f32 %v951_v40, %v5269_v50  ;;  %v990_v12 = vadd.f32 %v989_v29, %v5270_v18  ;;  %v1028_v51 = vadd.f32 %v1027_v7, %v3215_v28  ;;  %v1116_v36 = vadd.f32 %v1115_v33, %v1114_v45  ;;  %v5276_v29 = vld [vmem:[#allocation46_spill] sm:$0xff]  ;;  %v5277_v33 = vld [vmem:[#allocation49_spill] sm:$0xff] }
 0x13a   : > { %v1066_v41 = vadd.f32 %v1065_v39, %v5271_v8  ;;  %v1121_v40 = vsel %vm1091_vm1, %v5275_v16, 0.0  ;;  %v5278_v39 = vld [vmem:[#allocation51_spill] sm:$0xff]  ;;  %v5279_v18 = vld [vmem:[#allocation54_spill] sm:$0xff] }
 0x13b   : > { %v953_v6 = vadd.f32 %v952_v19, %v3227_v26  ;;  %v991_v34 = vadd.f32 %v990_v12, %v5273_v2  ;;  %v1029_v23 = vadd.f32 %v1028_v51, %v5274_v53  ;;  %v1118_v46 = vadd.f32 %v1117_v22, %v1116_v36  ;;  %v5280_v51 = vld [vmem:[#allocation55_spill] sm:$0xff] }
 0x13c   : > { %v1067_v37 = vadd.f32 %v1066_v41, %v3239_v59  ;;  %v1123_v19 = vsel %vm1091_vm1, %v3263_v63, 0.0  ;;  %v5281_v41 = vld [vmem:[#allocation58_spill] sm:$0xff]  ;;  %v5283_v53 = vld [vmem:[#allocation63_spill] sm:$0xff] }
 0x13d   : > { %v954_v11 = vadd.f32 %v953_v6, %v5276_v29  ;;  %v992_v7 = vadd.f32 %v991_v34, %v3251_v60  ;;  %v1030_v49 = vadd.f32 %v1029_v23, %v5277_v33  ;;  %v1120_v50 = vadd.f32 %v1119_v30, %v1118_v46  ;;  %v5282_v6 = vld [vmem:[#allocation60_spill] sm:$0xff]  ;;  %v5285_v29 = vld [vmem:[#allocation67_spill] sm:$0xff] }
 0x13e   : > { %v1068_v45 = vadd.f32 %v1067_v37, %v5278_v39  ;;  %v1125_v2 = vsel %vm1091_vm1, %v5282_v6, 0.0  ;;  %v5284_v30 = vld [vmem:[#allocation64_spill] sm:$0xff] }
 0x13f   : > { %v955_v12 = vadd.f32 %v954_v11, %v5279_v18  ;;  %v993_v8 = vadd.f32 %v992_v7, %v5280_v51  ;;  %v1031_v22 = vadd.f32 %v1030_v49, %v3275_v20  ;;  %v1122_v38 = vadd.f32 %v1121_v40, %v1120_v50  ;;  %v5286_v7 = vld [vmem:[#allocation69_spill] sm:$0xff]  ;;  %v5287_v40 = vld [vmem:[#allocation72_spill] sm:$0xff] }
 0x140   : > { %v1069_v36 = vadd.f32 %v1068_v45, %v5281_v41  ;;  %v1127_v11 = vsel %vm1091_vm1, %v5285_v29, 0.0  ;;  %v5288_v45 = vld [vmem:[#allocation73_spill] sm:$0xff]  ;;  %v5289_v51 = vld [vmem:[#allocation76_spill] sm:$0xff] }
 0x141   : > { %v956_v34 = vadd.f32 %v955_v12, %v3287_v44  ;;  %v994_v23 = vadd.f32 %v993_v8, %v5283_v53  ;;  %v1032_v37 = vadd.f32 %v1031_v22, %v5284_v30  ;;  %v1124_v16 = vadd.f32 %v1123_v19, %v1122_v38  ;;  %v5290_v22 = vld [vmem:[#allocation78_spill] sm:$0xff]  ;;  %v5293_v30 = vld [vmem:[#allocation84_spill] sm:$0xff] }
 0x142   : > { %v1070_v46 = vadd.f32 %v1069_v36, %v3299_v1  ;;  %v1129_v12 = vsel %vm1091_vm1, %v3323_v55, 0.0  ;;  %v5291_v36 = vld [vmem:[#allocation81_spill] sm:$0xff] }
 0x143   : > { %v957_v33 = vadd.f32 %v956_v34, %v5286_v7  ;;  %v995_v49 = vadd.f32 %v994_v23, %v3311_v47  ;;  %v1033_v39 = vadd.f32 %v1032_v37, %v5287_v40  ;;  %v1126_v18 = vadd.f32 %v1125_v2, %v1124_v16  ;;  %v5292_v34 = vld [vmem:[#allocation82_spill] sm:$0xff]  ;;  %v5294_v2 = vld [vmem:[#allocation85_spill] sm:$0xff]  ;;  %v5295_v7 = vld [vmem:[#allocation87_spill] sm:$0xff] }
 0x144   : > { %v1071_v50 = vadd.f32 %v1070_v46, %v5288_v45  ;;  %v1131_v53 = vsel %vm1091_vm1, %v5292_v34, 0.0 }
 0x145   : > { %v958_v8 = vadd.f32 %v957_v33, %v5289_v51  ;;  %v996_v41 = vadd.f32 %v995_v49, %v5290_v22  ;;  %v1034_v19 = vadd.f32 %v1033_v39, %v3335_v56  ;;  %v1128_v6 = vadd.f32 %v1127_v11, %v1126_v18  ;;  %v5296_v49 = vld [vmem:[#allocation88_spill] sm:$0xff]  ;;  %v5297_v11 = vld [vmem:[#allocation90_spill] sm:$0xff]  ;;  %v5299_v22 = vld [vmem:[#allocation93_spill] sm:$0xff] }
 0x146   : > { %v1072_v38 = vadd.f32 %v1071_v50, %v5291_v36  ;;  %v1133_v33 = vsel %vm1091_vm1, %v5295_v7, 0.0  ;;  %v5298_v50 = vld [vmem:[#allocation91_spill] sm:$0xff] }
 0x147   : > { %v959_v23 = vadd.f32 %v958_v8, %v3347_v57  ;;  %v997_v37 = vadd.f32 %v996_v41, %v5293_v30  ;;  %v1035_v46 = vadd.f32 %v1034_v19, %v5294_v2  ;;  %v1130_v29 = vadd.f32 %v1129_v12, %v1128_v6  ;;  %v5300_v19 = vld [vmem:[#allocation94_spill] sm:$0xff]  ;;  %v5303_v2 = vld [vmem:[#allocation99_spill] sm:$0xff] }
 0x148   : > { %v1073_v16 = vadd.f32 %v1072_v38, %v3359_v3  ;;  %v1135_v8 = vsel %vm1091_vm1, %v3383_v5, 0.0  ;;  %v5301_v38 = vld [vmem:[#allocation96_spill] sm:$0xff] }
 0x149   : > { %v960_v40 = vadd.f32 %v959_v23, %v5296_v49  ;;  %v998_v39 = vadd.f32 %v997_v37, %v3371_v4  ;;  %v1036_v45 = vadd.f32 %v1035_v46, %v5297_v11  ;;  %v1132_v51 = vadd.f32 %v1131_v53, %v1130_v29  ;;  %v5302_v23 = vld [vmem:[#allocation97_spill] sm:$0xff]  ;;  %v5304_v53 = vld [vmem:[#allocation100_spill] sm:$0xff]  ;;  %v5305_v49 = vld [vmem:[#allocation102_spill] sm:$0xff] }
 0x14a   : > { %v1074_v18 = vadd.f32 %v1073_v16, %v5298_v50  ;;  %v1137_v30 = vsel %vm1091_vm1, %v5302_v23, 0.0  ;;  %v5313_v23 = vld [vmem:[#allocation111_spill] sm:$0xff] }
 0x14b   : > { %v961_v41 = vadd.f32 %v960_v40, %v5299_v22  ;;  %v999_v36 = vadd.f32 %v998_v39, %v5300_v19  ;;  %v1037_v12 = vadd.f32 %v1036_v45, %v3395_v13  ;;  %v1134_v34 = vadd.f32 %v1133_v33, %v1132_v51  ;;  %v5306_v39 = vld [vmem:[#allocation103_spill] sm:$0xff]  ;;  %v5307_v33 = vld [vmem:[#allocation105_spill] sm:$0xff] }
 0x14c   : > { %v1075_v6 = vadd.f32 %v1074_v18, %v5301_v38  ;;  %v1139_v40 = vsel %vm1091_vm1, %v5305_v49, 0.0  ;;  %v5308_v18 = vld [vmem:[#allocation106_spill] sm:$0xff]  ;;  %v5311_v38 = vld [vmem:[#allocation109_spill] sm:$0xff] }
 0x14d   : > { %v962_v37 = vadd.f32 %v961_v41, %v3407_v14  ;;  %v1000_v46 = vadd.f32 %v999_v36, %v5303_v2  ;;  %v1038_v16 = vadd.f32 %v1037_v12, %v5304_v53  ;;  %v1136_v7 = vadd.f32 %v1135_v8, %v1134_v34  ;;  %v5309_v41 = vld [vmem:[#allocation137_spill] sm:$0xff]  ;;  %v5310_v36 = vld [vmem:[#allocation108_spill] sm:$0xff]  ;;  %v5312_v8 = vld [vmem:[#allocation138_spill] sm:$0xff] }
 0x14e   : > { %v1076_v29 = vadd.f32 %v1075_v6, %v3419_v15  ;;  %v1141_v19 = vsel %vm1091_vm1, %v5309_v41, 0.0  ;;  %v5315_v49 = vld [vmem:[#allocation114_spill] sm:$0xff]  ;;  %v5319_v41 = vld [vmem:[#allocation120_spill] sm:$0xff] }
 0x14f   : > { %v963_v11 = vadd.f32 %v962_v37, %v5306_v39  ;;  %v1001_v45 = vadd.f32 %v1000_v46, %v3431_v21  ;;  %v1039_v50 = vadd.f32 %v1038_v16, %v5307_v33  ;;  %v1138_v22 = vadd.f32 %v1137_v30, %v1136_v7  ;;  %v5314_v37 = vld [vmem:[#allocation112_spill] sm:$0xff]  ;;  %v5316_v39 = vld [vmem:[#allocation115_spill] sm:$0xff] }
 0x150   : > { %v1077_v51 = vadd.f32 %v1076_v29, %v5308_v18  ;;  %v1143_v46 = vsel %vm1091_vm1, %v5314_v37, 0.0  ;;  %v5317_v30 = vld [vmem:[#allocation116_spill] sm:$0xff]  ;;  %v5324_v37 = vld [vmem:[#allocation126_spill] sm:$0xff] }
 0x151   : > { %v964_v12 = vadd.f32 %v963_v11, %v5310_v36  ;;  %v1002_v6 = vadd.f32 %v1001_v45, %v5311_v38  ;;  %v1040_v34 = vadd.f32 %v1039_v50, %v5312_v8  ;;  %v1140_v53 = vadd.f32 %v1139_v40, %v1138_v22  ;;  %v5318_v11 = vld [vmem:[#allocation119_spill] sm:$0xff]  ;;  %v5320_v40 = vld [vmem:[#allocation122_spill] sm:$0xff] }
 0x152   : > { %v1078_v2 = vadd.f32 %v1077_v51, %v5313_v23  ;;  %v1145_v45 = vsel %vm1091_vm1, %v5318_v11, 0.0  ;;  %v5321_v36 = vld [vmem:[#allocation123_spill] sm:$0xff]  ;;  %v5323_v23 = vld [vmem:[#allocation125_spill] sm:$0xff] }
 0x153   : > { %v965_v16 = vadd.f32 %v964_v12, %v5315_v49  ;;  %v1003_v29 = vadd.f32 %v1002_v6, %v5316_v39  ;;  %v1041_v7 = vadd.f32 %v1040_v34, %v5317_v30  ;;  %v1142_v18 = vadd.f32 %v1141_v19, %v1140_v53  ;;  %v5322_v12 = vld [vmem:[#allocation139_spill] sm:$0xff]  ;;  %v5325_v19 = vld [vmem:[#allocation140_spill] sm:$0xff]  ;;  %v5326_v49 = vld [vmem:[#allocation141_spill] sm:$0xff] }
 0x154   : > { %v1079_v33 = vadd.f32 %v1078_v2, %v3479_v31  ;;  %v1147_v6 = vsel %vm1091_vm1, %v5322_v12, 0.0  ;;  %v5328_v11 = vld [vmem:[#allocation143_spill] sm:$0xff] }
 0x155   : > { %v966_v50 = vadd.f32 %v965_v16, %v5319_v41  ;;  %v1004_v51 = vadd.f32 %v1003_v29, %v3491_v32  ;;  %v1042_v22 = vadd.f32 %v1041_v7, %v5320_v40  ;;  %v1144_v8 = vadd.f32 %v1143_v46, %v1142_v18  ;;  %v5327_v16 = vld [vmem:[#allocation142_spill] sm:$0xff]  ;;  %v5329_v41 = vld [vmem:[#allocation144_spill] sm:$0xff]  ;;  %v5330_v46 = vld [vmem:[#allocation127_spill] sm:$0xff] }
 0x156   : > { %v1080_v38 = vadd.f32 %v1079_v33, %v5321_v36  ;;  %v1149_v29 = vsel %vm1091_vm1, %v5327_v16, 0.0  ;;  %v5331_v40 = vld [vmem:[#allocation145_spill] sm:$0xff] }
 0x157   : > { %v967_v34 = vadd.f32 %v966_v50, %v5323_v23  ;;  %v1005_v2 = vadd.f32 %v1004_v51, %v5324_v37  ;;  %v1043_v53 = vadd.f32 %v1042_v22, %v5325_v19  ;;  %v1146_v30 = vadd.f32 %v1145_v45, %v1144_v8  ;;  %v5332_v50 = vld [vmem:[#allocation146_spill] sm:$0xff]  ;;  %v5333_v23 = vld [vmem:[#allocation147_spill] sm:$0xff]  ;;  %v5334_v37 = vld [vmem:[#allocation148_spill] sm:$0xff] }
 0x158   : > { %v1081_v39 = vadd.f32 %v1080_v38, %v5326_v49  ;;  %v1151_v51 = vsel %vm1091_vm1, %v5332_v50, 0.0  ;;  %v5335_v45 = vld [vmem:[#allocation149_spill] sm:$0xff]  ;;  %v5336_v19 = vld [vmem:[#allocation150_spill] sm:$0xff] }
 0x159   : > { %v968_v7 = vadd.f32 %v967_v34, %v5328_v11  ;;  %v1006_v33 = vadd.f32 %v1005_v2, %v5329_v41  ;;  %v1044_v18 = vadd.f32 %v1043_v53, %v5330_v46  ;;  %v1148_v12 = vadd.f32 %v1147_v6, %v1146_v30  ;;  %v5337_v34 = vld [vmem:[#allocation151_spill] sm:$0xff]  ;;  %v5338_v11 = vld [vmem:[#allocation152_spill] sm:$0xff]  ;;  %v5339_v41 = vld [vmem:[#allocation153_spill] sm:$0xff] }
 0x15a   : > { %v1082_v36 = vadd.f32 %v1081_v39, %v5331_v40  ;;  %v1153_v2 = vsel %vm1091_vm1, %v5337_v34, 0.0  ;;  %v5340_v6 = vld [vmem:[#allocation154_spill] sm:$0xff]  ;;  %v5341_v46 = vld [vmem:[#allocation155_spill] sm:$0xff] }
 0x15b   : > { %v969_v22 = vadd.f32 %v968_v7, %v5333_v23  ;;  %v1007_v38 = vadd.f32 %v1006_v33, %v5334_v37  ;;  %v1045_v8 = vadd.f32 %v1044_v18, %v5335_v45  ;;  %v1150_v16 = vadd.f32 %v1149_v29, %v1148_v12  ;;  %v5342_v7 = vld [vmem:[#allocation156_spill] sm:$0xff] }
 0x15c   : > { %v1083_v49 = vadd.f32 %v1082_v36, %v5336_v19  ;;  %v1155_v33 = vsel %vm1091_vm1, %v5342_v7, 0.0  ;;  %v2106_v12 = vmov 1966171168  }
 0x15d   : > { %v970_v53 = vadd.f32 %v969_v22, %v5338_v11  ;;  %v1008_v39 = vadd.f32 %v1007_v38, %v5339_v41  ;;  %v1046_v30 = vadd.f32 %v1045_v8, %v5340_v6  ;;  %v1152_v50 = vadd.f32 %v1151_v51, %v1150_v16 }
 0x15e   : > { %v1084_v40 = vadd.f32 %v1083_v49, %v5341_v46  ;;  %v1171_v45 = vunpack.c.l.s4 %v2106_v12  ;;  %v5343_v46 = vlaneseq }
 0x15f   : > { %v971_v23 = vrot.slane %v970_v53, 4  ;;  %v1009_v18 = vrot.slane %v1008_v39, 4  ;;  %v1047_v37 = vrot.slane %v1046_v30, 4  ;;  %v1154_v29 = vadd.f32 %v1153_v2, %v1152_v50 }
 0x160   : > { %v1085_v36 = vrot.slane %v1084_v40, 4  ;;  %v1172_v16 = vunpack.c.0.s8 %v1171_v45  ;;  %v1174_v7 = vshrl.u32 %v5343_v46, 7 }
 0x161   : > { %v972_v19 = vadd.f32 %v971_v23, %v970_v53  ;;  %v1010_v34 = vadd.f32 %v1009_v18, %v1008_v39  ;;  %v1048_v22 = vadd.f32 %v1047_v37, %v1046_v30  ;;  %v1156_v38 = vadd.f32 %v1155_v33, %v1154_v29 }
 0x162   : > { %v1086_v11 = vadd.f32 %v1085_v36, %v1084_v40  ;;  %v1175_v40 = vsub.s32 %v1172_v16, %v1174_v7 }
 0x163   : > { %v973_v41 = vrot.slane %v972_v19, 2  ;;  %v1011_v8 = vrot.slane %v1010_v34, 2  ;;  %v1049_v6 = vrot.slane %v1048_v22, 2  ;;  %v1157_v51 = vrot.slane %v1156_v38, 4 }
 0x164   : > { %v1087_v49 = vrot.slane %v1086_v11, 2 }
 0x165   : > { %v974_v32 = vadd.f32 %v973_v41, %v972_v19  ;;  %v1012_v31 = vadd.f32 %v1011_v8, %v1010_v34  ;;  %v1050_v21 = vadd.f32 %v1049_v6, %v1048_v22  ;;  %v1158_v2 = vadd.f32 %v1157_v51, %v1156_v38  ;;  %v938_v8 = vld [vmem:[#allocation2] sm:$0x1f] }
 0x166   : > { %v1088_v15 = vadd.f32 %v1087_v49, %v1086_v11 }
 0x167   : > { %v975_v50 = vrot.slane %v974_v32, 1  ;;  %v1013_v12 = vrot.slane %v1012_v31, 1  ;;  %v1051_v53 = vrot.slane %v1050_v21, 1  ;;  %v1159_v30 = vrot.slane %v1158_v2, 2 }
 0x168   : > { %v1089_v39 = vrot.slane %v1088_v15, 1 }
 0x169   : > { %v976_v33 = vadd.f32 %v975_v50, %v974_v32  ;;  %v1014_v23 = vadd.f32 %v1013_v12, %v1012_v31  ;;  %v1052_v18 = vadd.f32 %v1051_v53, %v1050_v21  ;;  %v1160_v36 = vadd.f32 %v1159_v30, %v1158_v2 }
 0x16a   : > { %v1090_v37 = vadd.f32 %v1089_v39, %v1088_v15 }
 0x16b   : > { %v1168_v29 = vcombine.low %v976_v33, %v1014_v23  ;;  %v1161_v14 = vrot.slane %v1160_v36, 1 }
 0x16c   : > { %v1169_v45 = vcombine.low %v1052_v18, %v1090_v37 }
 0x16d   : > { %v1176_v46 = vrot.slane %v1168_v29, %v1175_v40  ;;  %v1162_v34 = vadd.f32 %v1161_v14, %v1160_v36 }
 0x16e   : > { %v1183_v19 = vrot.slane %v1169_v45, %v1175_v40 }
 0x16f   : > { %v1190_v11 = vrot.slane %v1162_v34, %v1175_v40 }
 0x170   : > { %v1191_v22 = vcombine.low %v1176_v46, %v1183_v19 }
 0x171   : > { %v1205_v41 = vrot.slane %v1190_v11, %v1175_v40 }
 0x172   : > { %v1198_v38 = vrot.slane %v1191_v22, %v1175_v40 }
 0x174   : > { %v1206_v6 = vcombine.low %v1198_v38, %v1205_v41 }
 0x176   : > { %v1208_v49 = vadd.f32 %v1206_v6, %v938_v8 }
 0x178   : > { %1213 = vst.msk [vmem:[#allocation2] sm:$0x1f] %vm2279_vm0, %v1208_v49 }
 0x179 PF: > { %1217 = sbr.rel (%p261_p7) target bundleno = 539 (0x21b), region = 48 }
 0x17e   : > { %v5345_v15 = vlaneseq  ;;  %s1252_s21 = smul.u32 264, %s2089_s12 }
 0x180   : > { %v3790_v21 = vshrl.u32 %v5345_v15, 7  ;;  %v1253_v22 = vstv %s1252_s21 }
 0x182   : > { %5346 = vst [vmem:[#allocation157_spill] sm:$0xff] %v3790_v21  ;;  %v1220_v14 = vadd.s32 8, %v3790_v21  ;;  %v1221_v31 = vadd.s32 16, %v3790_v21  ;;  %v1222_v32 = vadd.s32 24, %v3790_v21  ;;  %v1223_v16 = vadd.s32 32, %v3790_v21 }
 0x183   : > { %v1224_v7 = vadd.s32 40, %v3790_v21  ;;  %v1225_v2 = vadd.s32 48, %v3790_v21  ;;  %v1226_v50 = vadd.s32 56, %v3790_v21  ;;  %v1227_v12 = vadd.s32 64, %v3790_v21 }
 0x184   : > { %v1228_v53 = vadd.s32 72, %v3790_v21  ;;  %v1229_v39 = vadd.s32 80, %v3790_v21  ;;  %v1230_v30 = vadd.s32 88, %v3790_v21  ;;  %v1231_v40 = vadd.s32 96, %v3790_v21 }
 0x185   : > { %v1232_v33 = vadd.s32 104, %v3790_v21  ;;  %v1233_v23 = vadd.s32 112, %v3790_v21  ;;  %v1234_v18 = vadd.s32 120, %v3790_v21  ;;  %v1235_v37 = vadd.s32 128, %v3790_v21 }
 0x186   : > { %v1236_v36 = vadd.s32 136, %v3790_v21  ;;  %v1237_v29 = vadd.s32 144, %v3790_v21  ;;  %v1238_v45 = vadd.s32 152, %v3790_v21  ;;  %v1239_v46 = vadd.s32 160, %v3790_v21 }
 0x187   : > { %v1240_v19 = vadd.s32 168, %v3790_v21  ;;  %v1241_v34 = vadd.s32 176, %v3790_v21  ;;  %v1242_v11 = vadd.s32 184, %v3790_v21  ;;  %v1243_v38 = vadd.s32 192, %v3790_v21 }
 0x188   : > { %v1244_v41 = vadd.s32 200, %v3790_v21  ;;  %v1245_v8 = vadd.s32 208, %v3790_v21  ;;  %v1246_v6 = vadd.s32 216, %v3790_v21  ;;  %v1247_v49 = vadd.s32 224, %v3790_v21 }
 0x189   : > { %v1248_v51 = vadd.s32 232, %v3790_v21  ;;  %v1249_v15 = vadd.s32 240, %v3790_v21  ;;  %v1250_v13 = vadd.s32 248, %v3790_v21  ;;  %v1251_v5 = vadd.s32 256, %v3790_v21 }
 0x18a   : > { %v1254_v4 = vadd.s32 %v1253_v22, %v3790_v21  ;;  %v1255_v3 = vadd.s32 %v1253_v22, %v1220_v14  ;;  %v1256_v57 = vadd.s32 %v1253_v22, %v1221_v31  ;;  %v3826_v56 = vadd.s32 %v1253_v22, %v1222_v32  ;;  %v5364_v21 = vld [vmem:[#allocation18_spill] sm:$0xff] }
 0x18b   : > { %v3828_v55 = vadd.s32 %v1253_v22, %v1223_v16  ;;  %v3830_v47 = vadd.s32 %v1253_v22, %v1224_v7  ;;  %v3832_v1 = vadd.s32 %v1253_v22, %v1225_v2  ;;  %v3834_v44 = vadd.s32 %v1253_v22, %v1226_v50 }
 0x18c   : > { %v3836_v20 = vadd.s32 %v1253_v22, %v1227_v12  ;;  %v3838_v63 = vadd.s32 %v1253_v22, %v1228_v53  ;;  %v3840_v60 = vadd.s32 %v1253_v22, %v1229_v39  ;;  %v3842_v59 = vadd.s32 %v1253_v22, %v1230_v30 }
 0x18d   : > { %v3844_v14 = vadd.s32 %v1253_v22, %v1231_v40  ;;  %v3846_v31 = vadd.s32 %v1253_v22, %v1232_v33  ;;  %v3848_v32 = vadd.s32 %v1253_v22, %v1233_v23  ;;  %v3850_v16 = vadd.s32 %v1253_v22, %v1234_v18 }
 0x18e   : > { %v3852_v7 = vadd.s32 %v1253_v22, %v1235_v37  ;;  %v3854_v2 = vadd.s32 %v1253_v22, %v1236_v36  ;;  %v3856_v50 = vadd.s32 %v1253_v22, %v1237_v29  ;;  %v3858_v12 = vadd.s32 %v1253_v22, %v1238_v45 }
 0x18f   : > { %v3860_v53 = vadd.s32 %v1253_v22, %v1239_v46  ;;  %v3862_v39 = vadd.s32 %v1253_v22, %v1240_v19  ;;  %v3864_v30 = vadd.s32 %v1253_v22, %v1241_v34  ;;  %v3866_v40 = vadd.s32 %v1253_v22, %v1242_v11 }
 0x190   : > { %v3868_v33 = vadd.s32 %v1253_v22, %v1243_v38  ;;  %v3870_v23 = vadd.s32 %v1253_v22, %v1244_v41  ;;  %v3872_v18 = vadd.s32 %v1253_v22, %v1245_v8  ;;  %v3874_v37 = vadd.s32 %v1253_v22, %v1246_v6  ;;  %v5359_v38 = vld [vmem:[#allocation13_spill] sm:$0xff]  ;;  %v5360_v8 = vld [vmem:[#allocation14_spill] sm:$0xff] }
 0x191   : > { %v3876_v36 = vadd.s32 %v1253_v22, %v1247_v49  ;;  %v3878_v29 = vadd.s32 %v1253_v22, %v1248_v51  ;;  %v3880_v45 = vadd.s32 %v1253_v22, %v1249_v15  ;;  %v3882_v46 = vadd.s32 %v1253_v22, %v1250_v13  ;;  %v5356_v13 = vld [vmem:[#allocation10_spill] sm:$0xff]  ;;  %v5361_v49 = vld [vmem:[#allocation15_spill] sm:$0xff]  ;;  %v5362_v15 = vld [vmem:[#allocation16_spill] sm:$0xff] }
 0x192   : > { %5347 = vst [vmem:[#allocation158_spill] sm:$0xff] %v3868_v33  ;;  %5348 = vst [vmem:[#allocation159_spill] sm:$0xff] %v3870_v23  ;;  %v3884_v19 = vadd.s32 %v1253_v22, %v1251_v5  ;;  %vm1288_vm2 = vcmp.lt.s32.totalorder %v1254_v4, 514  ;;  %vm1289_vm3 = vcmp.lt.s32.totalorder %v1255_v3, 514  ;;  %vm1290_vm4 = vcmp.lt.s32.totalorder %v1256_v57, 514  ;;  %v5357_v4 = vld [vmem:[#allocation11_spill] sm:$0xff] }
 0x193   : > { %5349 = vst [vmem:[#allocation160_spill] sm:$0xff] %v3872_v18  ;;  %5350 = vst [vmem:[#allocation161_spill] sm:$0xff] %v3874_v37  ;;  %vm1291_vm5 = vcmp.lt.s32.totalorder %v3826_v56, 514  ;;  %vm1292_vm6 = vcmp.lt.s32.totalorder %v3828_v55, 514  ;;  %vm1293_vm7 = vcmp.lt.s32.totalorder %v3830_v47, 514  ;;  %vm1294_vm8 = vcmp.lt.s32.totalorder %v3832_v1, 514 }
 0x194   : > { %5351 = vst [vmem:[#allocation162_spill] sm:$0xff] %v3876_v36  ;;  %5352 = vst [vmem:[#allocation163_spill] sm:$0xff] %v3878_v29  ;;  %vm1295_vm9 = vcmp.lt.s32.totalorder %v3834_v44, 514  ;;  %vm1296_vm10 = vcmp.lt.s32.totalorder %v3836_v20, 514  ;;  %vm1297_vm11 = vcmp.lt.s32.totalorder %v3838_v63, 514  ;;  %v3894_v5 = vsel %vm1288_vm2, %v5356_v13, 0.0 }
 0x195   : > { %5353 = vst [vmem:[#allocation164_spill] sm:$0xff] %v3880_v45  ;;  %5354 = vst [vmem:[#allocation165_spill] sm:$0xff] %v3882_v46  ;;  %v3897_v34 = vsel %vm1288_vm2, %v5357_v4, 0.0  ;;  %v5358_v22 = vld [vmem:[#allocation12_spill] sm:$0xff]  ;;  %vm1298_vm12 = vcmp.lt.s32.totalorder %v3840_v60, 514  ;;  %v3904_v41 = vsel %vm1288_vm2, %v5359_v38, 0.0 }
 0x196   : > { %5355 = vst [vmem:[#allocation166_spill] sm:$0xff] %v3884_v19  ;;  %v3900_v11 = vsel %vm1288_vm2, %v5358_v22, 0.0  ;;  %v3907_v6 = vsel %vm1288_vm2, %v5360_v8, 0.0  ;;  %v3911_v51 = vsel %vm1289_vm3, %v5361_v49, 0.0  ;;  %v3915_v13 = vsel %vm1289_vm3, %v5362_v15, 0.0  ;;  %v5363_v4 = vld [vmem:[#allocation17_spill] sm:$0xff] }
 0x197   : > { %v3919_v22 = vsel %vm1289_vm3, %v5363_v4, 0.0  ;;  %v3923_v19 = vsel %vm1289_vm3, %v5364_v21, 0.0  ;;  %v5365_v38 = vld [vmem:[#allocation19_spill] sm:$0xff]  ;;  %v5366_v46 = vld [vmem:[#allocation20_spill] sm:$0xff]  ;;  %vm1299_vm13 = vcmp.lt.s32.totalorder %v3842_v59, 514  ;;  %v5367_v15 = vld [vmem:[#allocation21_spill] sm:$0xff] }
 0x198   : > { %v3927_v8 = vsel %vm1289_vm3, %v5365_v38, 0.0  ;;  %v3931_v49 = vsel %vm1290_vm4, %v5366_v46, 0.0  ;;  %v3936_v45 = vsel %vm1290_vm4, %v5367_v15, 0.0  ;;  %v5368_v4 = vld [vmem:[#allocation23_spill] sm:$0xff]  ;;  %v5369_v21 = vld [vmem:[#allocation26_spill] sm:$0xff]  ;;  %v5370_v3 = vld [vmem:[#allocation29_spill] sm:$0xff] }
 0x199   : > { %v3940_v29 = vsel %vm1290_vm4, %v5368_v4, 0.0  ;;  %v3944_v36 = vsel %vm1290_vm4, %v5369_v21, 0.0  ;;  %v3948_v38 = vsel %vm1290_vm4, %v5370_v3, 0.0  ;;  %vm1300_vm14 = vcmp.lt.s32.totalorder %v3844_v14, 514  ;;  %v5371_v46 = vld [vmem:[#allocation32_spill] sm:$0xff]  ;;  %v5372_v15 = vld [vmem:[#allocation35_spill] sm:$0xff] }
 0x19a   : > { %v3954_v37 = vsel %vm1291_vm5, %v5371_v46, 0.0  ;;  %v3959_v4 = vsel %vm1291_vm5, %v5372_v15, 0.0  ;;  %v5374_v18 = vld [vmem:[#allocation38_spill] sm:$0xff]  ;;  %v5376_v57 = vld [vmem:[#allocation41_spill] sm:$0xff]  ;;  %vm1301_vm15 = vcmp.lt.s32.totalorder %v3846_v31, 514  ;;  %v5378_v23 = vld [vmem:[#allocation44_spill] sm:$0xff] }
 0x19b   : > { %5373 = vst [vmem:[#allocation167_spill] sm:$0xff] %v3959_v4  ;;  %v3964_v21 = vsel %vm1291_vm5, %v5374_v18, 0.0  ;;  %v3969_v3 = vsel %vm1291_vm5, %v5376_v57, 0.0  ;;  %v3975_v46 = vsel %vm1291_vm5, %v5378_v23, 0.0  ;;  %v5379_v33 = vld [vmem:[#allocation47_spill] sm:$0xff]  ;;  %v5381_v4 = vld [vmem:[#allocation50_spill] sm:$0xff] }
 0x19c   : > { %5375 = vst [vmem:[#allocation168_spill] sm:$0xff] %v3964_v21  ;;  %5377 = vst [vmem:[#allocation169_spill] sm:$0xff] %v3969_v3  ;;  %v3980_v15 = vsel %vm1292_vm6, %v5379_v33, 0.0  ;;  %v3985_v18 = vsel %vm1292_vm6, %v5381_v4, 0.0  ;;  %v5383_v21 = vld [vmem:[#allocation53_spill] sm:$0xff]  ;;  %vm1302_vm1 = vcmp.lt.s32.totalorder %v3848_v32, 514 }
 0x19d   : > { %5380 = vst [vmem:[#allocation170_spill] sm:$0xff] %v3980_v15  ;;  %5382 = vst [vmem:[#allocation171_spill] sm:$0xff] %v3985_v18  ;;  %v3990_v57 = vsel %vm1292_vm6, %v5383_v21, 0.0  ;;  %v5385_v56 = vld [vmem:[#allocation56_spill] sm:$0xff]  ;;  %v5387_v3 = vld [vmem:[#allocation59_spill] sm:$0xff]  ;;  %vm1303_vm2 = vcmp.lt.s32.totalorder %v3850_v16, 514 }
 0x19e   : > { %5384 = vst [vmem:[#allocation172_spill] sm:$0xff] %v3990_v57  ;;  %v3996_v23 = vsel %vm1292_vm6, %v5385_v56, 0.0  ;;  %v4001_v33 = vsel %vm1292_vm6, %v5387_v3, 0.0  ;;  %v5388_v15 = vld [vmem:[#allocation62_spill] sm:$0xff]  ;;  %v5390_v18 = vld [vmem:[#allocation65_spill] sm:$0xff]  ;;  %v5392_v57 = vld [vmem:[#allocation68_spill] sm:$0xff] }
 0x19f   : > { %5386 = vst [vmem:[#allocation173_spill] sm:$0xff] %v3996_v23  ;;  %v4006_v4 = vsel %vm1293_vm7, %v5388_v15, 0.0  ;;  %v4011_v21 = vsel %vm1293_vm7, %v5390_v18, 0.0  ;;  %v4016_v56 = vsel %vm1293_vm7, %v5392_v57, 0.0  ;;  %v5394_v23 = vld [vmem:[#allocation71_spill] sm:$0xff]  ;;  %v5396_v3 = vld [vmem:[#allocation74_spill] sm:$0xff] }
 0x1a0   : > { %5389 = vst [vmem:[#allocation174_spill] sm:$0xff] %v4006_v4  ;;  %5391 = vst [vmem:[#allocation175_spill] sm:$0xff] %v4011_v21  ;;  %v4021_v55 = vsel %vm1293_vm7, %v5394_v23, 0.0  ;;  %v4026_v15 = vsel %vm1293_vm7, %v5396_v3, 0.0  ;;  %v5397_v4 = vld [vmem:[#allocation77_spill] sm:$0xff]  ;;  %v5399_v21 = vld [vmem:[#allocation80_spill] sm:$0xff] }
 0x1a1   : > { %5393 = vst [vmem:[#allocation176_spill] sm:$0xff] %v4016_v56  ;;  %5395 = vst [vmem:[#allocation177_spill] sm:$0xff] %v4021_v55  ;;  %v4031_v18 = vsel %vm1294_vm8, %v5397_v4, 0.0  ;;  %v4037_v57 = vsel %vm1294_vm8, %v5399_v21, 0.0  ;;  %v5401_v56 = vld [vmem:[#allocation83_spill] sm:$0xff]  ;;  %v5403_v47 = vld [vmem:[#allocation86_spill] sm:$0xff] }
 0x1a2   : > { %5398 = vst [vmem:[#allocation178_spill] sm:$0xff] %v4031_v18  ;;  %5400 = vst [vmem:[#allocation179_spill] sm:$0xff] %v4037_v57  ;;  %v4042_v23 = vsel %vm1294_vm8, %v5401_v56, 0.0  ;;  %v4047_v3 = vsel %vm1294_vm8, %v5403_v47, 0.0  ;;  %v5405_v55 = vld [vmem:[#allocation89_spill] sm:$0xff]  ;;  %vm1304_vm3 = vcmp.lt.s32.totalorder %v3852_v7, 514 }
 0x1a3   : > { %5402 = vst [vmem:[#allocation180_spill] sm:$0xff] %v4042_v23  ;;  %5404 = vst [vmem:[#allocation181_spill] sm:$0xff] %v4047_v3  ;;  %v4052_v4 = vsel %vm1294_vm8, %v5405_v55, 0.0  ;;  %v5406_v18 = vld [vmem:[#allocation92_spill] sm:$0xff]  ;;  %v5408_v57 = vld [vmem:[#allocation95_spill] sm:$0xff]  ;;  %vm1305_vm4 = vcmp.lt.s32.totalorder %v3854_v2, 514 }
 0x1a4   : > { %v4058_v21 = vsel %vm1295_vm9, %v5406_v18, 0.0  ;;  %v4063_v56 = vsel %vm1295_vm9, %v5408_v57, 0.0  ;;  %v5410_v23 = vld [vmem:[#allocation98_spill] sm:$0xff]  ;;  %v5412_v1 = vld [vmem:[#allocation101_spill] sm:$0xff]  ;;  %v5414_v3 = vld [vmem:[#allocation104_spill] sm:$0xff]  ;;  %vm1306_vm5 = vcmp.lt.s32.totalorder %v3856_v50, 514 }
 0x1a5   : > { %5407 = vst [vmem:[#allocation182_spill] sm:$0xff] %v4058_v21  ;;  %5409 = vst [vmem:[#allocation183_spill] sm:$0xff] %v4063_v56  ;;  %v4068_v47 = vsel %vm1295_vm9, %v5410_v23, 0.0  ;;  %v4073_v55 = vsel %vm1295_vm9, %v5412_v1, 0.0  ;;  %v4079_v18 = vsel %vm1295_vm9, %v5414_v3, 0.0  ;;  %v5415_v21 = vld [vmem:[#allocation107_spill] sm:$0xff] }
 0x1a6   : > { %5411 = vst [vmem:[#allocation184_spill] sm:$0xff] %v4068_v47  ;;  %5413 = vst [vmem:[#allocation185_spill] sm:$0xff] %v4073_v55  ;;  %v4084_v57 = vsel %vm1296_vm10, %v5415_v21, 0.0  ;;  %v5417_v56 = vld [vmem:[#allocation110_spill] sm:$0xff]  ;;  %v5419_v47 = vld [vmem:[#allocation113_spill] sm:$0xff]  ;;  %vm1307_vm6 = vcmp.lt.s32.totalorder %v3858_v12, 514 }
 0x1a7   : > { %5416 = vst [vmem:[#allocation186_spill] sm:$0xff] %v4084_v57  ;;  %v4089_v23 = vsel %vm1296_vm10, %v5417_v56, 0.0  ;;  %v4094_v1 = vsel %vm1296_vm10, %v5419_v47, 0.0  ;;  %v5421_v44 = vld [vmem:[#allocation117_spill] sm:$0xff]  ;;  %v5423_v55 = vld [vmem:[#allocation22_spill] sm:$0xff]  ;;  %v5424_v57 = vld [vmem:[#allocation124_spill] sm:$0xff] }
 0x1a8   : > { %5418 = vst [vmem:[#allocation187_spill] sm:$0xff] %v4089_v23  ;;  %5420 = vst [vmem:[#allocation188_spill] sm:$0xff] %v4094_v1  ;;  %v4100_v3 = vsel %vm1296_vm10, %v5421_v44, 0.0  ;;  %v4105_v21 = vsel %vm1296_vm10, %v5423_v55, 0.0  ;;  %v4110_v56 = vsel %vm1297_vm11, %v5424_v57, 0.0  ;;  %v5425_v23 = vld [vmem:[#allocation24_spill] sm:$0xff] }
 0x1a9   : > { %5422 = vst [vmem:[#allocation189_spill] sm:$0xff] %v4100_v3  ;;  %v4115_v47 = vsel %vm1297_vm11, %v5425_v23, 0.0  ;;  %v5426_v1 = vld [vmem:[#allocation25_spill] sm:$0xff]  ;;  %v5427_v3 = vld [vmem:[#allocation128_spill] sm:$0xff]  ;;  %v4130_v55 = vsel %vm1297_vm11, %v3099_v0, 0.0  ;;  %v4135_v57 = vsel %vm1298_vm12, %v3112_v17, 0.0 }
 0x1aa   : > { %v4120_v44 = vsel %vm1297_vm11, %v5426_v1, 0.0  ;;  %v4125_v20 = vsel %vm1297_vm11, %v5427_v3, 0.0  ;;  %v4141_v23 = vsel %vm1298_vm12, %v3125_v52, 0.0  ;;  %v4146_v1 = vsel %vm1298_vm12, %v3135_v58, 0.0  ;;  %v5428_v60 = vld [vmem:[#allocation27_spill] sm:$0xff]  ;;  %v5430_v59 = vld [vmem:[#allocation28_spill] sm:$0xff] }
 0x1ab   : > { %v4151_v0 = vsel %vm1298_vm12, %v3139_v27, 0.0  ;;  %v4156_v17 = vsel %vm1298_vm12, %v3143_v42, 0.0  ;;  %vm1308_vm7 = vcmp.lt.s32.totalorder %v3860_v53, 514  ;;  %v4162_v52 = vsel %vm1299_vm13, %v3147_v62, 0.0  ;;  %v5431_v63 = vld [vmem:[#allocation30_spill] sm:$0xff]  ;;  %v5442_v31 = vld [vmem:[#allocation39_spill] sm:$0xff] }
 0x1ac   : > { %v4167_v58 = vsel %vm1299_vm13, %v3151_v25, 0.0  ;;  %v4172_v27 = vsel %vm1299_vm13, %v3155_v9, 0.0  ;;  %v4177_v42 = vsel %vm1299_vm13, %v3159_v61, 0.0  ;;  %vm1309_vm8 = vcmp.lt.s32.totalorder %v3862_v39, 514  ;;  %v5457_v16 = vld [vmem:[#allocation51_spill] sm:$0xff] }
 0x1ad   : > { %v4183_v62 = vsel %vm1299_vm13, %v3163_v10, 0.0  ;;  %v4188_v25 = vsel %vm1300_vm14, %v3167_v24, 0.0  ;;  %v4193_v9 = vsel %vm1300_vm14, %v3171_v54, 0.0  ;;  %v4198_v61 = vsel %vm1300_vm14, %v5428_v60, 0.0  ;;  %v5433_v60 = vld [vmem:[#allocation31_spill] sm:$0xff] }
 0x1ae   : > { %v4203_v10 = vsel %vm1300_vm14, %v3179_v43, 0.0  ;;  %v4208_v24 = vsel %vm1300_vm14, %v5430_v59, 0.0  ;;  %v4213_v54 = vsel %vm1301_vm15, %v5431_v63, 0.0  ;;  %v4218_v3 = vsel %vm1301_vm15, %v3191_v48, 0.0  ;;  %v5436_v63 = vld [vmem:[#allocation34_spill] sm:$0xff]  ;;  %v5510_v39 = vld [vmem:[#allocation131_spill] sm:$0xff] }
 0x1af   : > { %5429 = vst [vmem:[#allocation190_spill] sm:$0xff] %v4203_v10  ;;  %5432 = vst [vmem:[#allocation191_spill] sm:$0xff] %v4218_v3  ;;  %vm1638_vm9 = vcmask 687104   ;;  %v4223_v43 = vsel %vm1301_vm15, %v5433_v60, 0.0  ;;  %v5434_v10 = vld [vmem:[#allocation33_spill] sm:$0xff]  ;;  %v4233_v59 = vsel %vm1301_vm15, %v3203_v35, 0.0  ;;  %v1600_v53 = vadd.f32 %v3923_v19, %v3904_v41 }
 0x1b0   : > { %v4228_v14 = vsel %vm1301_vm15, %v5434_v10, 0.0  ;;  %v4238_v48 = vsel %vm1302_vm1, %v5436_v63, 0.0  ;;  %v5437_v3 = vld [vmem:[#allocation36_spill] sm:$0xff]  ;;  %v4248_v10 = vsel %vm1302_vm1, %v3215_v28, 0.0  ;;  %v4258_v63 = vsel %vm1302_vm1, %v5442_v31, 0.0  ;;  %v5450_v31 = vld [vmem:[#allocation45_spill] sm:$0xff] }
 0x1b1   : > { %5435 = vst [vmem:[#allocation192_spill] sm:$0xff] %v4228_v14  ;;  %v4243_v60 = vsel %vm1302_vm1, %v5437_v3, 0.0  ;;  %5439 = vst [vmem:[#allocation194_spill] sm:$0xff] %v4248_v10  ;;  %v5440_v14 = vld [vmem:[#allocation37_spill] sm:$0xff]  ;;  %v4263_v3 = vsel %vm1303_vm2, %v3227_v26, 0.0  ;;  %v5446_v10 = vld [vmem:[#allocation42_spill] sm:$0xff]  ;;  %v1601_v41 = vadd.f32 %v1600_v53, %v3944_v36 }
 0x1b2   : > { %5438 = vst [vmem:[#allocation193_spill] sm:$0xff] %v4243_v60  ;;  %v4253_v35 = vsel %vm1302_vm1, %v5440_v14, 0.0  ;;  %5443 = vst [vmem:[#allocation196_spill] sm:$0xff] %v4263_v3  ;;  %v5444_v60 = vld [vmem:[#allocation40_spill] sm:$0xff]  ;;  %v4273_v14 = vsel %vm1303_vm2, %v5446_v10, 0.0  ;;  %v4283_v26 = vsel %vm1303_vm2, %v5450_v31, 0.0 }
 0x1b3   : > { %5441 = vst [vmem:[#allocation195_spill] sm:$0xff] %v4253_v35  ;;  %v4268_v28 = vsel %vm1303_vm2, %v5444_v60, 0.0  ;;  %5447 = vst [vmem:[#allocation198_spill] sm:$0xff] %v4273_v14  ;;  %v5448_v35 = vld [vmem:[#allocation43_spill] sm:$0xff]  ;;  %v5451_v3 = vld [vmem:[#allocation46_spill] sm:$0xff]  ;;  %vm1310_vm10 = vcmp.lt.s32.totalorder %v3864_v30, 514 }
 0x1b4   : > { %5445 = vst [vmem:[#allocation197_spill] sm:$0xff] %v4268_v28  ;;  %v4278_v32 = vsel %vm1303_vm2, %v5448_v35, 0.0  ;;  %v4288_v60 = vsel %vm1304_vm3, %v5451_v3, 0.0  ;;  %v5453_v28 = vld [vmem:[#allocation48_spill] sm:$0xff]  ;;  %v5455_v14 = vld [vmem:[#allocation49_spill] sm:$0xff]  ;;  %v4304_v31 = vsel %vm1304_vm3, %v5457_v16, 0.0 }
 0x1b5   : > { %5449 = vst [vmem:[#allocation199_spill] sm:$0xff] %v4278_v32  ;;  %5452 = vst [vmem:[#allocation200_spill] sm:$0xff] %v4288_v60  ;;  %v4293_v10 = vsel %vm1304_vm3, %v5453_v28, 0.0  ;;  %v4298_v35 = vsel %vm1304_vm3, %v5455_v14, 0.0  ;;  %v5459_v32 = vld [vmem:[#allocation52_spill] sm:$0xff]  ;;  %v5460_v60 = vld [vmem:[#allocation54_spill] sm:$0xff] }
 0x1b6   : > { %5454 = vst [vmem:[#allocation201_spill] sm:$0xff] %v4293_v10  ;;  %5456 = vst [vmem:[#allocation202_spill] sm:$0xff] %v4298_v35  ;;  %v4309_v3 = vsel %vm1304_vm3, %v5459_v32, 0.0  ;;  %v4314_v28 = vsel %vm1305_vm4, %v5460_v60, 0.0  ;;  %v5462_v10 = vld [vmem:[#allocation55_spill] sm:$0xff]  ;;  %v5464_v35 = vld [vmem:[#allocation57_spill] sm:$0xff] }
 0x1b7   : > { %5458 = vst [vmem:[#allocation203_spill] sm:$0xff] %v4304_v31  ;;  %5461 = vst [vmem:[#allocation204_spill] sm:$0xff] %v4314_v28  ;;  %v4319_v14 = vsel %vm1305_vm4, %v5462_v10, 0.0  ;;  %v4324_v16 = vsel %vm1305_vm4, %v5464_v35, 0.0  ;;  %v5466_v31 = vld [vmem:[#allocation58_spill] sm:$0xff]  ;;  %v5468_v32 = vld [vmem:[#allocation60_spill] sm:$0xff] }
 0x1b8   : > { %5463 = vst [vmem:[#allocation205_spill] sm:$0xff] %v4319_v14  ;;  %5465 = vst [vmem:[#allocation206_spill] sm:$0xff] %v4324_v16  ;;  %v4329_v7 = vsel %vm1305_vm4, %v5466_v31, 0.0  ;;  %v4334_v60 = vsel %vm1305_vm4, %v5468_v32, 0.0  ;;  %v5469_v28 = vld [vmem:[#allocation61_spill] sm:$0xff]  ;;  %v5471_v14 = vld [vmem:[#allocation63_spill] sm:$0xff] }
 0x1b9   : > { %5467 = vst [vmem:[#allocation207_spill] sm:$0xff] %v4329_v7  ;;  %v4339_v10 = vsel %vm1306_vm5, %v5469_v28, 0.0  ;;  %v4344_v35 = vsel %vm1306_vm5, %v5471_v14, 0.0  ;;  %v5473_v16 = vld [vmem:[#allocation64_spill] sm:$0xff]  ;;  %v5475_v7 = vld [vmem:[#allocation66_spill] sm:$0xff]  ;;  %v5477_v32 = vld [vmem:[#allocation67_spill] sm:$0xff] }
 0x1ba   : > { %5470 = vst [vmem:[#allocation208_spill] sm:$0xff] %v4339_v10  ;;  %5472 = vst [vmem:[#allocation209_spill] sm:$0xff] %v4344_v35  ;;  %v4349_v31 = vsel %vm1306_vm5, %v5473_v16, 0.0  ;;  %v4354_v2 = vsel %vm1306_vm5, %v5475_v7, 0.0  ;;  %v4359_v28 = vsel %vm1306_vm5, %v5477_v32, 0.0  ;;  %v5478_v10 = vld [vmem:[#allocation69_spill] sm:$0xff] }
 0x1bb   : > { %5474 = vst [vmem:[#allocation210_spill] sm:$0xff] %v4349_v31  ;;  %5476 = vst [vmem:[#allocation211_spill] sm:$0xff] %v4354_v2  ;;  %v4364_v14 = vsel %vm1307_vm6, %v5478_v10, 0.0  ;;  %v5480_v35 = vld [vmem:[#allocation70_spill] sm:$0xff]  ;;  %v5482_v31 = vld [vmem:[#allocation72_spill] sm:$0xff]  ;;  %vm1311_vm11 = vcmp.lt.s32.totalorder %v3866_v40, 514 }
 0x1bc   : > { %5479 = vst [vmem:[#allocation212_spill] sm:$0xff] %v4364_v14  ;;  %v4369_v16 = vsel %vm1307_vm6, %v5480_v35, 0.0  ;;  %v4374_v7 = vsel %vm1307_vm6, %v5482_v31, 0.0  ;;  %v5484_v2 = vld [vmem:[#allocation73_spill] sm:$0xff]  ;;  %v5486_v32 = vld [vmem:[#allocation75_spill] sm:$0xff]  ;;  %v5487_v14 = vld [vmem:[#allocation76_spill] sm:$0xff] }
 0x1bd   : > { %5481 = vst [vmem:[#allocation213_spill] sm:$0xff] %v4369_v16  ;;  %5483 = vst [vmem:[#allocation214_spill] sm:$0xff] %v4374_v7  ;;  %v4379_v50 = vsel %vm1307_vm6, %v5484_v2, 0.0  ;;  %v4384_v10 = vsel %vm1307_vm6, %v5486_v32, 0.0  ;;  %v4389_v35 = vsel %vm1308_vm7, %v5487_v14, 0.0  ;;  %v5489_v16 = vld [vmem:[#allocation78_spill] sm:$0xff] }
 0x1be   : > { %5485 = vst [vmem:[#allocation215_spill] sm:$0xff] %v4379_v50  ;;  %5488 = vst [vmem:[#allocation216_spill] sm:$0xff] %v4389_v35  ;;  %v4394_v31 = vsel %vm1308_vm7, %v5489_v16, 0.0  ;;  %v5491_v7 = vld [vmem:[#allocation79_spill] sm:$0xff]  ;;  %v5492_v50 = vld [vmem:[#allocation81_spill] sm:$0xff] }
 0x1bf   : > { %5490 = vst [vmem:[#allocation217_spill] sm:$0xff] %v4394_v31  ;;  %v4399_v2 = vsel %vm1308_vm7, %v5491_v7, 0.0  ;;  %v4404_v12 = vsel %vm1308_vm7, %v5492_v50, 0.0  ;;  %v5494_v32 = vld [vmem:[#allocation82_spill] sm:$0xff]  ;;  %v5495_v35 = vld [vmem:[#allocation129_spill] sm:$0xff]  ;;  %v1486_v31 = vadd.f32 %v3911_v51, %v3894_v5  ;;  %v1524_v7 = vadd.f32 %v3915_v13, %v3897_v34  ;;  %v5542_v40 = vld [vmem:[#allocation99_spill] sm:$0xff] }
 0x1c0   : > { %5493 = vst [vmem:[#allocation218_spill] sm:$0xff] %v4404_v12  ;;  %v4409_v14 = vsel %vm1308_vm7, %v5494_v32, 0.0  ;;  %v4414_v16 = vsel %vm1309_vm8, %v5495_v35, 0.0  ;;  %v1562_v50 = vadd.f32 %v3919_v22, %v3900_v11  ;;  %v1639_v32 = vsel %vm1638_vm9, %v3907_v6, 0.0  ;;  %v5496_v12 = vld [vmem:[#allocation84_spill] sm:$0xff]  ;;  %v5497_v13 = vld [vmem:[#allocation85_spill] sm:$0xff] }
 0x1c1   : > { %v4430_v35 = vsel %vm1309_vm8, %v5496_v12, 0.0  ;;  %v1487_v5 = vadd.f32 %v1486_v31, %v3931_v49  ;;  %v1640_v51 = vsel %vm1638_vm9, %v3927_v8, 0.0  ;;  %v1642_v34 = vsel %vm1638_vm9, %v3948_v38, 0.0  ;;  %v5498_v12 = vld [vmem:[#allocation130_spill] sm:$0xff]  ;;  %v5502_v31 = vld [vmem:[#allocation168_spill] sm:$0xff] }
 0x1c2   : > { %v1525_v11 = vadd.f32 %v1524_v7, %v3936_v45  ;;  %v1563_v19 = vadd.f32 %v1562_v50, %v3940_v29  ;;  %v1641_v6 = vadd.f32 %v1640_v51, %v1639_v32  ;;  %v4443_v22 = vsel %vm1309_vm8, %v5497_v13, 0.0  ;;  %v5500_v38 = vld [vmem:[#allocation158_spill] sm:$0xff]  ;;  %v5501_v29 = vld [vmem:[#allocation167_spill] sm:$0xff]  ;;  %v5503_v50 = vld [vmem:[#allocation169_spill] sm:$0xff] }
 0x1c3   : > { %v4448_v49 = vsel %vm1309_vm8, %v5498_v12, 0.0  ;;  %v1488_v8 = vadd.f32 %v1487_v5, %v3954_v37  ;;  %v1644_v45 = vsel %vm1638_vm9, %v3975_v46, 0.0  ;;  %vm1312_vm12 = vcmp.lt.s32.totalorder %v5500_v38, 514  ;;  %v5504_v51 = vld [vmem:[#allocation87_spill] sm:$0xff]  ;;  %v5505_v12 = vld [vmem:[#allocation88_spill] sm:$0xff]  ;;  %v5506_v46 = vld [vmem:[#allocation170_spill] sm:$0xff] }
 0x1c4   : > { %5499 = vst [vmem:[#allocation219_spill] sm:$0xff] %v4448_v49  ;;  %v1526_v36 = vadd.f32 %v1525_v11, %v5501_v29  ;;  %v1564_v7 = vadd.f32 %v1563_v19, %v5502_v31  ;;  %v1602_v53 = vadd.f32 %v1601_v41, %v5503_v50  ;;  %v1643_v32 = vadd.f32 %v1642_v34, %v1641_v6  ;;  %v5507_v29 = vld [vmem:[#allocation171_spill] sm:$0xff]  ;;  %v5508_v31 = vld [vmem:[#allocation172_spill] sm:$0xff]  ;;  %v5509_v34 = vld [vmem:[#allocation173_spill] sm:$0xff] }
 0x1c5   : > { %v4460_v13 = vsel %vm1309_vm8, %v5504_v51, 0.0  ;;  %v4465_v37 = vsel %vm1310_vm10, %v5505_v12, 0.0  ;;  %v1489_v5 = vadd.f32 %v1488_v8, %v5506_v46  ;;  %v1646_v11 = vsel %vm1638_vm9, %v4001_v33, 0.0  ;;  %v5512_v49 = vld [vmem:[#allocation90_spill] sm:$0xff] }
 0x1c6   : > { %v1527_v19 = vadd.f32 %v1526_v36, %v5507_v29  ;;  %v1565_v41 = vadd.f32 %v1564_v7, %v5508_v31  ;;  %v1603_v6 = vadd.f32 %v1602_v53, %v5509_v34  ;;  %v1645_v50 = vadd.f32 %v1644_v45, %v1643_v32  ;;  %v5513_v8 = vld [vmem:[#allocation174_spill] sm:$0xff]  ;;  %v5514_v36 = vld [vmem:[#allocation175_spill] sm:$0xff]  ;;  %v5515_v29 = vld [vmem:[#allocation176_spill] sm:$0xff] }
 0x1c7   : > { %v4476_v51 = vsel %vm1310_vm10, %v5510_v39, 0.0  ;;  %v4481_v12 = vsel %vm1310_vm10, %v5512_v49, 0.0  ;;  %v1490_v46 = vadd.f32 %v1489_v5, %v5513_v8  ;;  %v1648_v33 = vsel %vm1638_vm9, %v4026_v15, 0.0  ;;  %v5516_v45 = vld [vmem:[#allocation177_spill] sm:$0xff]  ;;  %v5517_v34 = vld [vmem:[#allocation91_spill] sm:$0xff]  ;;  %v5520_v5 = vld [vmem:[#allocation178_spill] sm:$0xff] }
 0x1c8   : > { %5511 = vst [vmem:[#allocation158_spill] sm:$0xff] %v4476_v51  ;;  %v1528_v7 = vadd.f32 %v1527_v19, %v5514_v36  ;;  %v1566_v53 = vadd.f32 %v1565_v41, %v5515_v29  ;;  %v1604_v32 = vadd.f32 %v1603_v6, %v5516_v45  ;;  %v1647_v31 = vadd.f32 %v1646_v11, %v1645_v50  ;;  %v5519_v51 = vld [vmem:[#allocation132_spill] sm:$0xff]  ;;  %v5521_v19 = vld [vmem:[#allocation159_spill] sm:$0xff]  ;;  %v5524_v36 = vld [vmem:[#allocation181_spill] sm:$0xff] }
 0x1c9   : > { %v4492_v39 = vsel %vm1310_vm10, %v5517_v34, 0.0  ;;  %v4497_v49 = vsel %vm1310_vm10, %v5519_v51, 0.0  ;;  %v1491_v8 = vadd.f32 %v1490_v46, %v5520_v5  ;;  %v1650_v15 = vsel %vm1638_vm9, %v4052_v4, 0.0  ;;  %v5522_v41 = vld [vmem:[#allocation179_spill] sm:$0xff]  ;;  %v5523_v11 = vld [vmem:[#allocation180_spill] sm:$0xff]  ;;  %v5525_v34 = vld [vmem:[#allocation93_spill] sm:$0xff] }
 0x1ca   : > { %5518 = vst [vmem:[#allocation167_spill] sm:$0xff] %v4492_v39  ;;  %vm1313_vm13 = vcmp.lt.s32.totalorder %v5521_v19, 514  ;;  %v1529_v6 = vadd.f32 %v1528_v7, %v5522_v41  ;;  %v1567_v50 = vadd.f32 %v1566_v53, %v5523_v11  ;;  %v1605_v29 = vadd.f32 %v1604_v32, %v5524_v36  ;;  %v5527_v51 = vld [vmem:[#allocation94_spill] sm:$0xff]  ;;  %v5529_v41 = vld [vmem:[#allocation183_spill] sm:$0xff]  ;;  %v5530_v11 = vld [vmem:[#allocation184_spill] sm:$0xff] }
 0x1cb   : > { %v1649_v45 = vadd.f32 %v1648_v33, %v1647_v31  ;;  %v4509_v30 = vsel %vm1311_vm11, %v5525_v34, 0.0  ;;  %v4514_v46 = vsel %vm1311_vm11, %v5527_v51, 0.0  ;;  %v5528_v4 = vld [vmem:[#allocation182_spill] sm:$0xff]  ;;  %v1652_v7 = vsel %vm1638_vm9, %v4079_v18, 0.0  ;;  %v5531_v33 = vld [vmem:[#allocation185_spill] sm:$0xff] }
 0x1cc   : > { %5526 = vst [vmem:[#allocation168_spill] sm:$0xff] %v4509_v30  ;;  %v1492_v5 = vadd.f32 %v1491_v8, %v5528_v4  ;;  %v1530_v53 = vadd.f32 %v1529_v6, %v5529_v41  ;;  %v1568_v32 = vadd.f32 %v1567_v50, %v5530_v11  ;;  %v1606_v31 = vadd.f32 %v1605_v29, %v5531_v33  ;;  %v5532_v39 = vld [vmem:[#allocation133_spill] sm:$0xff]  ;;  %v5534_v30 = vld [vmem:[#allocation96_spill] sm:$0xff]  ;;  %v5535_v8 = vld [vmem:[#allocation186_spill] sm:$0xff] }
 0x1cd   : > { %v1651_v36 = vadd.f32 %v1650_v15, %v1649_v45  ;;  %v4525_v34 = vsel %vm1311_vm11, %v5532_v39, 0.0  ;;  %v4530_v51 = vsel %vm1311_vm11, %v5534_v30, 0.0  ;;  %v1654_v18 = vsel %vm1638_vm9, %v4105_v21, 0.0  ;;  %v5536_v6 = vld [vmem:[#allocation160_spill] sm:$0xff]  ;;  %v5537_v50 = vld [vmem:[#allocation187_spill] sm:$0xff]  ;;  %v5539_v41 = vld [vmem:[#allocation189_spill] sm:$0xff] }
 0x1ce   : > { %5533 = vst [vmem:[#allocation169_spill] sm:$0xff] %v4525_v34  ;;  %v1493_v4 = vadd.f32 %v1492_v5, %v5535_v8  ;;  %vm1314_vm14 = vcmp.lt.s32.totalorder %v5536_v6, 514  ;;  %v1531_v29 = vadd.f32 %v1530_v53, %v5537_v50  ;;  %v5538_v15 = vld [vmem:[#allocation188_spill] sm:$0xff]  ;;  %v1607_v11 = vadd.f32 %v1606_v31, %v5539_v41  ;;  %v5540_v33 = vld [vmem:[#allocation97_spill] sm:$0xff]  ;;  %v5541_v30 = vld [vmem:[#allocation134_spill] sm:$0xff] }
 0x1cf   : > { %v1569_v45 = vadd.f32 %v1568_v32, %v5538_v15  ;;  %v1653_v39 = vadd.f32 %v1652_v7, %v1651_v36  ;;  %v4542_v34 = vsel %vm1311_vm11, %v5540_v33, 0.0  ;;  %v4547_v5 = vsel %vm1312_vm12, %v5541_v30, 0.0  ;;  %v5543_v50 = vld [vmem:[#allocation100_spill] sm:$0xff]  ;;  %v5547_v33 = vld [vmem:[#allocation103_spill] sm:$0xff]  ;;  %v5560_v19 = vld [vmem:[#allocation109_spill] sm:$0xff] }
 0x1d0   : > { %v1494_v21 = vadd.f32 %v1493_v4, %v4110_v56  ;;  %v1656_v53 = vsel %vm1638_vm9, %v4130_v55, 0.0  ;;  %v1532_v32 = vadd.f32 %v1531_v29, %v4115_v47  ;;  %v1608_v7 = vadd.f32 %v1607_v11, %v4125_v20  ;;  %v5548_v30 = vld [vmem:[#allocation136_spill] sm:$0xff] }
 0x1d1   : > { %v1570_v31 = vadd.f32 %v1569_v45, %v4120_v44  ;;  %v1655_v36 = vadd.f32 %v1654_v18, %v1653_v39  ;;  %v4558_v8 = vsel %vm1312_vm12, %v5542_v40, 0.0  ;;  %v4563_v15 = vsel %vm1312_vm12, %v5543_v50, 0.0  ;;  %v5544_v18 = vld [vmem:[#allocation135_spill] sm:$0xff]  ;;  %v5545_v45 = vld [vmem:[#allocation102_spill] sm:$0xff] }
 0x1d2   : > { %v1495_v56 = vadd.f32 %v1494_v21, %v4135_v57  ;;  %v1658_v47 = vsel %vm1638_vm9, %v4156_v17, 0.0  ;;  %v1533_v44 = vadd.f32 %v1532_v32, %v4141_v23  ;;  %v1609_v55 = vadd.f32 %v1608_v7, %v4151_v0  ;;  %v5546_v17 = vld [vmem:[#allocation161_spill] sm:$0xff]  ;;  %v5549_v21 = vld [vmem:[#allocation190_spill] sm:$0xff] }
 0x1d3   : > { %v1571_v20 = vadd.f32 %v1570_v31, %v4146_v1  ;;  %v1657_v4 = vadd.f32 %v1656_v53, %v1655_v36  ;;  %v4574_v29 = vsel %vm1312_vm12, %v5544_v18, 0.0  ;;  %v4579_v41 = vsel %vm1312_vm12, %v5545_v45, 0.0  ;;  %v5550_v31 = vld [vmem:[#allocation105_spill] sm:$0xff]  ;;  %v5551_v36 = vld [vmem:[#allocation106_spill] sm:$0xff]  ;;  %v5556_v18 = vld [vmem:[#allocation108_spill] sm:$0xff] }
 0x1d4   : > { %v1496_v57 = vadd.f32 %v1495_v56, %v4162_v52  ;;  %v1660_v23 = vsel %vm1638_vm9, %v4183_v62, 0.0  ;;  %vm1315_vm15 = vcmp.lt.s32.totalorder %v5546_v17, 514  ;;  %v1534_v1 = vadd.f32 %v1533_v44, %v4167_v58  ;;  %v5592_v17 = vld [vmem:[#allocation121_spill] sm:$0xff] }
 0x1d5   : > { %v1572_v0 = vadd.f32 %v1571_v20, %v4172_v27  ;;  %v1610_v11 = vadd.f32 %v1609_v55, %v4177_v42  ;;  %v1659_v39 = vadd.f32 %v1658_v47, %v1657_v4  ;;  %v4591_v38 = vsel %vm1313_vm13, %v5547_v33, 0.0  ;;  %v5554_v47 = vld [vmem:[#allocation192_spill] sm:$0xff]  ;;  %v5555_v55 = vld [vmem:[#allocation137_spill] sm:$0xff] }
 0x1d6   : > { %v4596_v52 = vsel %vm1313_vm13, %v5548_v30, 0.0  ;;  %v1497_v62 = vadd.f32 %v1496_v57, %v4188_v25  ;;  %v1662_v58 = vsel %vm1638_vm9, %v4208_v24, 0.0  ;;  %v1535_v27 = vadd.f32 %v1534_v1, %v4193_v9  ;;  %v5552_v24 = vld [vmem:[#allocation162_spill] sm:$0xff]  ;;  %v5557_v57 = vld [vmem:[#allocation193_spill] sm:$0xff] }
 0x1d7   : > { %v1573_v42 = vadd.f32 %v1572_v0, %v4198_v61  ;;  %v1611_v53 = vadd.f32 %v1610_v11, %v5549_v21  ;;  %v1661_v32 = vadd.f32 %v1660_v23, %v1659_v39  ;;  %v4607_v7 = vsel %vm1313_vm13, %v5550_v31, 0.0  ;;  %v5553_v61 = vld [vmem:[#allocation191_spill] sm:$0xff]  ;;  %v5558_v23 = vld [vmem:[#allocation194_spill] sm:$0xff] }
 0x1d8   : > { %v4612_v40 = vsel %vm1313_vm13, %v5551_v36, 0.0  ;;  %v1498_v25 = vadd.f32 %v1497_v62, %v4213_v54  ;;  %v1664_v9 = vsel %vm1638_vm9, %v4233_v59, 0.0  ;;  %vm1316_vm1 = vcmp.lt.s32.totalorder %v5552_v24, 514  ;;  %v5559_v0 = vld [vmem:[#allocation195_spill] sm:$0xff]  ;;  %v5561_v30 = vld [vmem:[#allocation138_spill] sm:$0xff] }
 0x1d9   : > { %v1536_v50 = vadd.f32 %v1535_v27, %v5553_v61  ;;  %v1574_v56 = vadd.f32 %v1573_v42, %v4223_v43  ;;  %v1612_v44 = vadd.f32 %v1611_v53, %v5554_v47  ;;  %v1663_v20 = vadd.f32 %v1662_v58, %v1661_v32  ;;  %v5563_v27 = vld [vmem:[#allocation197_spill] sm:$0xff]  ;;  %v5564_v21 = vld [vmem:[#allocation198_spill] sm:$0xff]  ;;  %v5565_v32 = vld [vmem:[#allocation199_spill] sm:$0xff] }
 0x1da   : > { %v4624_v4 = vsel %vm1313_vm13, %v5555_v55, 0.0  ;;  %v4629_v54 = vsel %vm1314_vm14, %v5556_v18, 0.0  ;;  %v1499_v59 = vadd.f32 %v1498_v25, %v4238_v48  ;;  %v1666_v45 = vsel %vm1638_vm9, %v4258_v63, 0.0  ;;  %v5562_v48 = vld [vmem:[#allocation196_spill] sm:$0xff]  ;;  %v5566_v25 = vld [vmem:[#allocation111_spill] sm:$0xff]  ;;  %v5571_v18 = vld [vmem:[#allocation202_spill] sm:$0xff] }
 0x1db   : > { %v1537_v43 = vadd.f32 %v1536_v50, %v5557_v57  ;;  %v1575_v1 = vadd.f32 %v1574_v56, %v5558_v23  ;;  %v1613_v11 = vadd.f32 %v1612_v44, %v5559_v0  ;;  %v1665_v39 = vadd.f32 %v1664_v9, %v1663_v20  ;;  %v5567_v61 = vld [vmem:[#allocation112_spill] sm:$0xff]  ;;  %v5569_v44 = vld [vmem:[#allocation163_spill] sm:$0xff]  ;;  %v5570_v20 = vld [vmem:[#allocation201_spill] sm:$0xff] }
 0x1dc   : > { %v4640_v33 = vsel %vm1314_vm14, %v5560_v19, 0.0  ;;  %v4645_v62 = vsel %vm1314_vm14, %v5561_v30, 0.0  ;;  %v1500_v58 = vadd.f32 %v1499_v59, %v5562_v48  ;;  %v1668_v63 = vsel %vm1638_vm9, %v4283_v26, 0.0  ;;  %v5568_v56 = vld [vmem:[#allocation200_spill] sm:$0xff]  ;;  %v5573_v23 = vld [vmem:[#allocation114_spill] sm:$0xff]  ;;  %v5576_v19 = vld [vmem:[#allocation205_spill] sm:$0xff] }
 0x1dd   : > { %v1538_v42 = vadd.f32 %v1537_v43, %v5563_v27  ;;  %v1576_v53 = vadd.f32 %v1575_v1, %v5564_v21  ;;  %v1614_v31 = vadd.f32 %v1613_v11, %v5565_v32  ;;  %v1667_v36 = vadd.f32 %v1666_v45, %v1665_v39  ;;  %v5572_v45 = vld [vmem:[#allocation203_spill] sm:$0xff]  ;;  %v5577_v48 = vld [vmem:[#allocation206_spill] sm:$0xff]  ;;  %v5579_v21 = vld [vmem:[#allocation116_spill] sm:$0xff] }
 0x1de   : > { %v4656_v9 = vsel %vm1314_vm14, %v5566_v25, 0.0  ;;  %v4661_v50 = vsel %vm1314_vm14, %v5567_v61, 0.0  ;;  %v1501_v47 = vadd.f32 %v1500_v58, %v5568_v56  ;;  %v1670_v26 = vsel %vm1638_vm9, %v4309_v3, 0.0  ;;  %v5574_v1 = vld [vmem:[#allocation115_spill] sm:$0xff]  ;;  %v5575_v3 = vld [vmem:[#allocation204_spill] sm:$0xff]  ;;  %v5580_v32 = vld [vmem:[#allocation118_spill] sm:$0xff] }
 0x1df   : > { %vm1317_vm2 = vcmp.lt.s32.totalorder %v5569_v44, 514  ;;  %v1539_v55 = vadd.f32 %v1538_v42, %v5570_v20  ;;  %v1577_v59 = vadd.f32 %v1576_v53, %v5571_v18  ;;  %v1615_v57 = vadd.f32 %v1614_v31, %v5572_v45  ;;  %v5582_v61 = vld [vmem:[#allocation164_spill] sm:$0xff]  ;;  %v5583_v56 = vld [vmem:[#allocation209_spill] sm:$0xff]  ;;  %v5586_v45 = vld [vmem:[#allocation119_spill] sm:$0xff] }
 0x1e0   : > { %v1669_v43 = vadd.f32 %v1668_v63, %v1667_v36  ;;  %v4673_v6 = vsel %vm1315_vm15, %v5573_v23, 0.0  ;;  %v4678_v0 = vsel %vm1315_vm15, %v5574_v1, 0.0  ;;  %v1502_v11 = vadd.f32 %v1501_v47, %v5575_v3  ;;  %v5578_v63 = vld [vmem:[#allocation207_spill] sm:$0xff]  ;;  %v5581_v36 = vld [vmem:[#allocation208_spill] sm:$0xff]  ;;  %v5602_v24 = vld [vmem:[#allocation126_spill] sm:$0xff] }
 0x1e1   : > { %v1672_v39 = vsel %vm1638_vm9, %v4334_v60, 0.0  ;;  %v1540_v30 = vadd.f32 %v1539_v55, %v5576_v19  ;;  %v1578_v58 = vadd.f32 %v1577_v59, %v5577_v48  ;;  %v1616_v27 = vadd.f32 %v1615_v57, %v5578_v63  ;;  %v5585_v55 = vld [vmem:[#allocation211_spill] sm:$0xff] }
 0x1e2   : > { %v1671_v42 = vadd.f32 %v1670_v26, %v1669_v43  ;;  %v4689_v53 = vsel %vm1315_vm15, %v5579_v21, 0.0  ;;  %v4694_v31 = vsel %vm1315_vm15, %v5580_v32, 0.0  ;;  %v1503_v25 = vadd.f32 %v1502_v11, %v5581_v36  ;;  %v5584_v26 = vld [vmem:[#allocation210_spill] sm:$0xff]  ;;  %v5587_v43 = vld [vmem:[#allocation120_spill] sm:$0xff]  ;;  %v5589_v11 = vld [vmem:[#allocation213_spill] sm:$0xff] }
 0x1e3   : > { %v1674_v60 = vsel %vm1638_vm9, %v4359_v28, 0.0  ;;  %vm1318_vm3 = vcmp.lt.s32.totalorder %v5582_v61, 514  ;;  %v1541_v47 = vadd.f32 %v1540_v30, %v5583_v56  ;;  %v1579_v20 = vadd.f32 %v1578_v58, %v5584_v26  ;;  %v5588_v28 = vld [vmem:[#allocation212_spill] sm:$0xff]  ;;  %v5590_v30 = vld [vmem:[#allocation214_spill] sm:$0xff] }
 0x1e4   : > { %v1617_v18 = vadd.f32 %v1616_v27, %v5585_v55  ;;  %v1673_v59 = vadd.f32 %v1672_v39, %v1671_v42  ;;  %v4706_v57 = vsel %vm1315_vm15, %v5586_v45, 0.0  ;;  %v4711_v23 = vsel %vm1316_vm1, %v5587_v43, 0.0  ;;  %v5591_v39 = vld [vmem:[#allocation215_spill] sm:$0xff]  ;;  %v5593_v42 = vld [vmem:[#allocation122_spill] sm:$0xff]  ;;  %v5594_v32 = vld [vmem:[#allocation216_spill] sm:$0xff] }
 0x1e5   : > { %v1504_v1 = vadd.f32 %v1503_v25, %v5588_v28  ;;  %v1676_v3 = vsel %vm1638_vm9, %v4384_v10, 0.0  ;;  %v1542_v19 = vadd.f32 %v1541_v47, %v5589_v11  ;;  %v1580_v48 = vadd.f32 %v1579_v20, %v5590_v30  ;;  %v5595_v25 = vld [vmem:[#allocation217_spill] sm:$0xff]  ;;  %v5597_v55 = vld [vmem:[#allocation123_spill] sm:$0xff] }
 0x1e6   : > { %v1618_v58 = vadd.f32 %v1617_v18, %v5591_v39  ;;  %v1675_v63 = vadd.f32 %v1674_v60, %v1673_v59  ;;  %v4722_v27 = vsel %vm1316_vm1, %v5592_v17, 0.0  ;;  %v4727_v21 = vsel %vm1316_vm1, %v5593_v42, 0.0  ;;  %v5596_v60 = vld [vmem:[#allocation218_spill] sm:$0xff]  ;;  %v5598_v59 = vld [vmem:[#allocation139_spill] sm:$0xff]  ;;  %v5599_v28 = vld [vmem:[#allocation165_spill] sm:$0xff] }
 0x1e7   : > { %v1505_v36 = vadd.f32 %v1504_v1, %v5594_v32  ;;  %v1678_v10 = vsel %vm1638_vm9, %v4409_v14, 0.0  ;;  %v1543_v56 = vadd.f32 %v1542_v19, %v5595_v25  ;;  %v1581_v47 = vadd.f32 %v1580_v48, %v4399_v2  ;;  %v5601_v30 = vld [vmem:[#allocation125_spill] sm:$0xff]  ;;  %v5605_v32 = vld [vmem:[#allocation140_spill] sm:$0xff] }
 0x1e8   : > { %v1619_v26 = vadd.f32 %v1618_v58, %v5596_v60  ;;  %v1677_v20 = vadd.f32 %v1676_v3, %v1675_v63  ;;  %v4738_v18 = vsel %vm1316_vm1, %v5597_v55, 0.0  ;;  %v1465_v45 = vsel %vm1316_vm1, %v5598_v59, 0.0  ;;  %v5600_v3 = vld [vmem:[#allocation219_spill] sm:$0xff]  ;;  %v5603_v58 = vld [vmem:[#allocation158_spill] sm:$0xff]  ;;  %v5609_v60 = vld [vmem:[#allocation169_spill] sm:$0xff] }
 0x1e9   : > { %v1506_v43 = vadd.f32 %v1505_v36, %v4414_v16  ;;  %v1680_v14 = vsel %vm1638_vm9, %v4460_v13, 0.0  ;;  %vm1319_vm4 = vcmp.lt.s32.totalorder %v5599_v28, 514  ;;  %v1544_v2 = vadd.f32 %v1543_v56, %v4430_v35  ;;  %v5604_v63 = vld [vmem:[#allocation167_spill] sm:$0xff]  ;;  %v5607_v56 = vld [vmem:[#allocation168_spill] sm:$0xff]  ;;  %v5610_v59 = vld [vmem:[#allocation142_spill] sm:$0xff] }
 0x1ea   : > { %v1582_v1 = vadd.f32 %v1581_v47, %v4443_v22  ;;  %v1620_v11 = vadd.f32 %v1619_v26, %v5600_v3  ;;  %v1679_v19 = vadd.f32 %v1678_v10, %v1677_v20  ;;  %v1466_v48 = vsel %vm1317_vm2, %v5601_v30, 0.0  ;;  %v5606_v10 = vld [vmem:[#allocation141_spill] sm:$0xff]  ;;  %v5608_v47 = vld [vmem:[#allocation166_spill] sm:$0xff]  ;;  %v5613_v30 = vld [vmem:[#allocation127_spill] sm:$0xff] }
 0x1eb   : > { %v1467_v16 = vsel %vm1317_vm2, %v5602_v24, 0.0  ;;  %v1507_v39 = vadd.f32 %v1506_v43, %v4465_v37  ;;  %v1682_v13 = vsel %vm1638_vm9, %v4497_v49, 0.0  ;;  %v1545_v35 = vadd.f32 %v1544_v2, %v5603_v58 }
 0x1ec   : > { %v1583_v22 = vadd.f32 %v1582_v1, %v4481_v12  ;;  %v1621_v17 = vadd.f32 %v1620_v11, %v5604_v63  ;;  %v1681_v42 = vadd.f32 %v1680_v14, %v1679_v19  ;;  %v1468_v36 = vsel %vm1317_vm2, %v5605_v32, 0.0  ;;  %v5611_v14 = vld [vmem:[#allocation143_spill] sm:$0xff]  ;;  %v5612_v19 = vld [vmem:[#allocation144_spill] sm:$0xff] }
 0x1ed   : > { %v1469_v25 = vsel %vm1317_vm2, %v5606_v10, 0.0  ;;  %v1508_v37 = vadd.f32 %v1507_v39, %v5607_v56  ;;  %v1684_v49 = vsel %vm1638_vm9, %v4542_v34, 0.0  ;;  %vm1320_vm5 = vcmp.lt.s32.totalorder %v5608_v47, 514  ;;  %v5617_v32 = vld [vmem:[#allocation148_spill] sm:$0xff]  ;;  %v5618_v56 = vld [vmem:[#allocation149_spill] sm:$0xff] }
 0x1ee   : > { %v1546_v12 = vadd.f32 %v1545_v35, %v4514_v46  ;;  %v1584_v26 = vadd.f32 %v1583_v22, %v5609_v60  ;;  %v1622_v20 = vadd.f32 %v1621_v17, %v4530_v51  ;;  %v1683_v55 = vadd.f32 %v1682_v13, %v1681_v42  ;;  %v5614_v13 = vld [vmem:[#allocation145_spill] sm:$0xff]  ;;  %v5615_v35 = vld [vmem:[#allocation146_spill] sm:$0xff]  ;;  %v5616_v17 = vld [vmem:[#allocation147_spill] sm:$0xff] }
 0x1ef   : > { %v1470_v43 = vsel %vm1317_vm2, %v5610_v59, 0.0  ;;  %v1471_v2 = vsel %vm1318_vm3, %v5611_v14, 0.0  ;;  %v1509_v1 = vadd.f32 %v1508_v37, %v4547_v5  ;;  %v1686_v34 = vsel %vm1638_vm9, %v4579_v41, 0.0 }
 0x1f0   : > { %v1547_v46 = vadd.f32 %v1546_v12, %v4558_v8  ;;  %v1585_v3 = vadd.f32 %v1584_v26, %v4563_v15  ;;  %v1623_v51 = vadd.f32 %v1622_v20, %v4574_v29  ;;  %v1685_v11 = vadd.f32 %v1684_v49, %v1683_v55  ;;  %v5619_v49 = vld [vmem:[#allocation150_spill] sm:$0xff]  ;;  %v5620_v26 = vld [vmem:[#allocation151_spill] sm:$0xff]  ;;  %v5621_v55 = vld [vmem:[#allocation152_spill] sm:$0xff] }
 0x1f1   : > { %v1472_v44 = vsel %vm1318_vm3, %v5612_v19, 0.0  ;;  %v1473_v24 = vsel %vm1318_vm3, %v5613_v30, 0.0  ;;  %v1510_v5 = vadd.f32 %v1509_v1, %v4591_v38  ;;  %v1688_v41 = vsel %vm1638_vm9, %v4624_v4, 0.0 }
 0x1f2   : > { %v1548_v8 = vadd.f32 %v1547_v46, %v4596_v52  ;;  %v1586_v15 = vadd.f32 %v1585_v3, %v4607_v7  ;;  %v1624_v29 = vadd.f32 %v1623_v51, %v4612_v40  ;;  %v1687_v39 = vadd.f32 %v1686_v34, %v1685_v11  ;;  %v5622_v46 = vld [vmem:[#allocation153_spill] sm:$0xff] }
 0x1f3   : > { %v1474_v58 = vsel %vm1318_vm3, %v5614_v13, 0.0  ;;  %v1475_v22 = vsel %vm1318_vm3, %v5615_v35, 0.0  ;;  %v1511_v38 = vadd.f32 %v1510_v5, %v4629_v54  ;;  %v1690_v4 = vsel %vm1638_vm9, %v4661_v50, 0.0 }
 0x1f4   : > { %v1549_v52 = vadd.f32 %v1548_v8, %v4640_v33  ;;  %v1587_v7 = vadd.f32 %v1586_v15, %v4645_v62  ;;  %v1625_v40 = vadd.f32 %v1624_v29, %v4656_v9  ;;  %v1689_v63 = vadd.f32 %v1688_v41, %v1687_v39 }
 0x1f5   : > { %v1476_v42 = vsel %vm1319_vm4, %v5616_v17, 0.0  ;;  %v1477_v61 = vsel %vm1319_vm4, %v5617_v32, 0.0  ;;  %v1512_v54 = vadd.f32 %v1511_v38, %v4673_v6  ;;  %v1692_v50 = vsel %vm1638_vm9, %v4706_v57, 0.0 }
 0x1f6   : > { %v1550_v33 = vadd.f32 %v1549_v52, %v4678_v0  ;;  %v1588_v62 = vadd.f32 %v1587_v7, %v4689_v53  ;;  %v1626_v9 = vadd.f32 %v1625_v40, %v4694_v31  ;;  %v1691_v10 = vadd.f32 %v1690_v4, %v1689_v63 }
 0x1f7   : > { %v1478_v37 = vsel %vm1319_vm4, %v5618_v56, 0.0  ;;  %v1479_v12 = vsel %vm1319_vm4, %v5619_v49, 0.0  ;;  %v1513_v6 = vadd.f32 %v1512_v54, %v4711_v23  ;;  %v1694_v60 = vsel %vm1638_vm9, %v1465_v45, 0.0 }
 0x1f8   : > { %v1551_v57 = vadd.f32 %v1550_v33, %v4722_v27  ;;  %v1589_v0 = vadd.f32 %v1588_v62, %v4727_v21  ;;  %v1627_v53 = vadd.f32 %v1626_v9, %v4738_v18  ;;  %v1693_v31 = vadd.f32 %v1692_v50, %v1691_v10  ;;  %v5623_v18 = vld [vmem:[#allocation156_spill] sm:$0xff] }
 0x1f9   : > { %v1480_v20 = vsel %vm1319_vm4, %v5620_v26, 0.0  ;;  %v1481_v59 = vsel %vm1320_vm5, %v5621_v55, 0.0  ;;  %v1514_v14 = vadd.f32 %v1513_v6, %v1466_v48  ;;  %v1696_v23 = vsel %vm1638_vm9, %v1470_v43, 0.0  ;;  %v5624_v43 = vld [vmem:[#allocation154_spill] sm:$0xff] }
 0x1fa   : > { %v1552_v1 = vadd.f32 %v1551_v57, %v1467_v16  ;;  %v1590_v45 = vadd.f32 %v1589_v0, %v1468_v36  ;;  %v1628_v34 = vadd.f32 %v1627_v53, %v1469_v25  ;;  %v1695_v27 = vadd.f32 %v1694_v60, %v1693_v31  ;;  %v5625_v36 = vld [vmem:[#allocation155_spill] sm:$0xff] }
 0x1fb   : > { %v1482_v21 = vsel %vm1320_vm5, %v5622_v46, 0.0  ;;  %v1485_v28 = vsel %vm1320_vm5, %v5623_v18, 0.0  ;;  %v1515_v3 = vadd.f32 %v1514_v14, %v1471_v2  ;;  %v1698_v51 = vsel %vm1638_vm9, %v1475_v22, 0.0 }
 0x1fc   : > { %v1553_v11 = vadd.f32 %v1552_v1, %v1472_v44  ;;  %v1591_v19 = vadd.f32 %v1590_v45, %v1473_v24  ;;  %v1629_v48 = vadd.f32 %v1628_v34, %v1474_v58  ;;  %v1697_v30 = vadd.f32 %v1696_v23, %v1695_v27 }
 0x1fd   : > { %v1483_v16 = vsel %vm1320_vm5, %v5624_v43, 0.0  ;;  %v1484_v25 = vsel %vm1320_vm5, %v5625_v36, 0.0  ;;  %v1516_v5 = vadd.f32 %v1515_v3, %v1476_v42  ;;  %v1700_v41 = vsel %vm1638_vm9, %v1480_v20, 0.0  ;;  %v5626_v20 = vld [vmem:[#allocation157_spill] sm:$0xff] }
 0x1fe   : > { %v1554_v8 = vadd.f32 %v1553_v11, %v1477_v61  ;;  %v1592_v15 = vadd.f32 %v1591_v19, %v1478_v37  ;;  %v1630_v2 = vadd.f32 %v1629_v48, %v1479_v12  ;;  %v1699_v29 = vadd.f32 %v1698_v51, %v1697_v30  ;;  %v1287_v11 = vld [vmem:[#allocation2] sm:$0x1f] }
 0x1ff   : > { %v1517_v39 = vadd.f32 %v1516_v5, %v1481_v59  ;;  %v1702_v44 = vsel %vm1638_vm9, %v1485_v28, 0.0  ;;  %v2107_v40 = vmov 1966171168  }
 0x200   : > { %v1555_v24 = vadd.f32 %v1554_v8, %v1482_v21  ;;  %v1593_v13 = vadd.f32 %v1592_v15, %v1483_v16  ;;  %v1631_v58 = vadd.f32 %v1630_v2, %v1484_v25  ;;  %v1701_v35 = vadd.f32 %v1700_v41, %v1699_v29 }
 0x201   : > { %v1518_v22 = vrot.slane %v1517_v39, 4  ;;  %v1718_v63 = vunpack.c.l.s4 %v2107_v40 }
 0x202   : > { %v1556_v38 = vrot.slane %v1555_v24, 4  ;;  %v1594_v4 = vrot.slane %v1593_v13, 4  ;;  %v1632_v52 = vrot.slane %v1631_v58, 4  ;;  %v1703_v47 = vadd.f32 %v1702_v44, %v1701_v35 }
 0x203   : > { %v1519_v7 = vadd.f32 %v1518_v22, %v1517_v39  ;;  %v1719_v56 = vunpack.c.0.s8 %v1718_v63 }
 0x204   : > { %v1557_v17 = vadd.f32 %v1556_v38, %v1555_v24  ;;  %v1595_v42 = vadd.f32 %v1594_v4, %v1593_v13  ;;  %v1633_v32 = vadd.f32 %v1632_v52, %v1631_v58  ;;  %v1704_v61 = vrot.slane %v1703_v47, 4 }
 0x205   : > { %v1520_v54 = vrot.slane %v1519_v7, 2  ;;  %v1722_v55 = vsub.s32 %v1719_v56, %v5626_v20 }
 0x206   : > { %v1558_v50 = vrot.slane %v1557_v17, 2  ;;  %v1596_v33 = vrot.slane %v1595_v42, 2  ;;  %v1634_v62 = vrot.slane %v1633_v32, 2  ;;  %v1705_v9 = vadd.f32 %v1704_v61, %v1703_v47 }
 0x207   : > { %v1521_v10 = vadd.f32 %v1520_v54, %v1519_v7 }
 0x208   : > { %v1559_v37 = vadd.f32 %v1558_v50, %v1557_v17  ;;  %v1597_v49 = vadd.f32 %v1596_v33, %v1595_v42  ;;  %v1635_v12 = vadd.f32 %v1634_v62, %v1633_v32  ;;  %v1706_v6 = vrot.slane %v1705_v9, 2 }
 0x209   : > { %v1522_v60 = vrot.slane %v1521_v10, 1 }
 0x20a   : > { %v1560_v57 = vrot.slane %v1559_v37, 1  ;;  %v1598_v0 = vrot.slane %v1597_v49, 1  ;;  %v1636_v53 = vrot.slane %v1635_v12, 1  ;;  %v1707_v31 = vadd.f32 %v1706_v6, %v1705_v9 }
 0x20b   : > { %v1523_v26 = vadd.f32 %v1522_v60, %v1521_v10 }
 0x20c   : > { %v1561_v59 = vadd.f32 %v1560_v57, %v1559_v37  ;;  %v1599_v14 = vadd.f32 %v1598_v0, %v1597_v49  ;;  %v1637_v23 = vadd.f32 %v1636_v53, %v1635_v12  ;;  %v1708_v1 = vrot.slane %v1707_v31, 1 }
 0x20e   : > { %v1709_v45 = vadd.f32 %v1708_v1, %v1707_v31  ;;  %v1715_v34 = vcombine.low %v1523_v26, %v1561_v59  ;;  %v1716_v27 = vcombine.low %v1599_v14, %v1637_v23 }
 0x210   : > { %v1723_v46 = vrot.slane %v1715_v34, %v1722_v55  ;;  %v1730_v21 = vrot.slane %v1716_v27, %v1722_v55  ;;  %v1737_v18 = vrot.slane %v1709_v45, %v1722_v55 }
 0x212   : > { %v1738_v28 = vcombine.low %v1723_v46, %v1730_v21  ;;  %v1752_v3 = vrot.slane %v1737_v18, %v1722_v55 }
 0x214   : > { %v1745_v51 = vrot.slane %v1738_v28, %v1722_v55 }
 0x216   : > { %v1753_v19 = vcombine.low %v1745_v51, %v1752_v3 }
 0x218   : > { %v1755_v48 = vadd.f32 %v1753_v19, %v1287_v11 }
 0x21a   : > { %1760 = vst.msk [vmem:[#allocation2] sm:$0x1f] %vm2279_vm0, %v1755_v48 }
 0x21b PF: > { %v5628_v43 = vlaneseq  ;;  %vm1791_vm6 = vcmask 1040384   ;;  %vm1799_vm0 = vcmask 679936   ;;  %vm1814_vm7 = vcmask 0  }
 0x21d   : > { %v1767_v16 = vshrl.u32 %v5628_v43, 7 }
 0x21f   : > { %v1768_v25 = vsub.s32 0, %v1767_v16  ;;  %v1772_v5 = vsub.s32 1, %v1767_v16  ;;  %v1776_v41 = vsub.s32 2, %v1767_v16  ;;  %v1780_v8 = vsub.s32 3, %v1767_v16 }
 0x220   : > { %v1784_v15 = vsub.s32 4, %v1767_v16 }
 0x221   : > { %v1764_v36 = vld [vmem:[#allocation2] sm:$0x1f] }
 0x222   : > { %v1769_v2 = vrot.slane %v1764_v36, %v1768_v25  ;;  %v1773_v29 = vrot.slane %v1764_v36, %v1772_v5  ;;  %v1777_v39 = vrot.slane %v1764_v36, %v1776_v41  ;;  %v1781_v44 = vrot.slane %v1764_v36, %v1780_v8 }
 0x223   : > { %v1785_v24 = vrot.slane %v1764_v36, %v1784_v15 }
 0x224   : > { %v1792_v13 = vsel %vm1791_vm6, %v1769_v2, 0.0  ;;  %v1793_v58 = vsel %vm1791_vm6, %v1773_v29, 0.0  ;;  %v1795_v35 = vsel %vm1791_vm6, %v1777_v39, 0.0  ;;  %v1797_v38 = vsel %vm1791_vm6, %v1781_v44, 0.0 }
 0x225   : > { %v1794_v22 = vadd.f32 %v1793_v58, %v1792_v13  ;;  %v1800_v52 = vsel %vm1799_vm0, %v1785_v24, 0.0 }
 0x227   : > { %v1796_v4 = vadd.f32 %v1795_v35, %v1794_v22 }
 0x229   : > { %v1798_v47 = vadd.f32 %v1797_v38, %v1796_v4 }
 0x22b   : > { %v1801_v7 = vadd.f32 %v1800_v52, %v1798_v47 }
 0x22d   : > { %1802 = vadd.xlane.f32.xlu0 %v1801_v7 }
 0x2b6   : > { %v1803_v40 = vpop.xlane.xlu0 %1802 }
 0x2b7   : > { %v1804_v63 = vrot.slane %v1803_v40, 4 }
 0x2b9   : > { %v1805_v17 = vadd.f32 %v1804_v63, %v1803_v40 }
 0x2bb   : > { %v1806_v42 = vrot.slane %v1805_v17, 2 }
 0x2bd   : > { %v1807_v32 = vadd.f32 %v1806_v42, %v1805_v17 }
 0x2bf   : > { %v1808_v61 = vrot.slane %v1807_v32, 1 }
 0x2c1   : > { %v1809_v54 = vadd.f32 %v1808_v61, %v1807_v32 }
 0x2c3   : > { %1930 = vpush %v1809_v54 }
 0x2f4   : > { %s1931_s12 = spop %1930 }
 0x2f5   : > { %s1811_s22 = smul.f32 3.2643043e-06, %s1931_s12 }
 0x2f7   : > { %v1812_v50 = vstv %s1811_s22 }
 0x2f8   : > { %1815 = vst.msk [vmem:[%s263_s8] sm:$0x1] %vm1814_vm7, %v1812_v50 }
 0x2f9 PF: > { %s18_s14 = sadd.s32 1, %s2097_s14   ;;  %s5629_s9 = smov %s2081_s10 }
 0x2fa   : > { %p15_p3 = scmp.ge.s32.totalorder %s18_s14, 4   ;;  %s5630_s10 = smov %s2085_s11 }
 0x2fb   : > { %s5631_s11 = smov %s2176_s23  ;;  %s5632_s12 = smov %s2093_s13 }
 0x2fc   : > { %s5633_s13 = smov %s5635_s15  ;;  %17 = sbr.rel (!%p15_p3) target bundleno = 6 (0x6), region = 97 }
 0x301   :  { %1833 = vsyncpa [#allocation4], 1 }
 0x302   :  { %1835 = vsyncpa [#allocation4 + $0x1], 1 }
 0x303   :  { %1836 = vsyncpa [#allocation6], 1 }
 0x304   :  { %1838 = vsyncpa [#allocation6 + $0x1], 1 }

</bundles_post_ra>
